<compile_context>
chip_gen: v7x
topology: tpu7x:2x2x1
jax: 0.10.0
libtpu: 0.0.40
codegen_flags: <defaults>
</compile_context>

<pallas_src>
import functools
import math

import jax
import jax.numpy as jnp
from jax import lax
from jax.experimental import pallas as pl
from jax.experimental.pallas import tpu as pltpu

BN_EPS = 1e-5


def _round_up(x, m):
    return (x + m - 1) // m * m


def _pick_rows_per_chunk(H, pitch, width, cout):
    """Largest divisor of H such that a chunk's f32 accumulators stay small (v5e-friendly)."""
    cap = max(1, (256 * 1024) // (4 * pitch * max(width, cout)))
    best = 1
    for rc in range(1, H + 1):
        if H % rc == 0 and rc <= cap:
            best = rc
    return best


# ----------------------------------------------------------------------------
# Fused bottleneck kernel (one grid step == one batch image)
# ----------------------------------------------------------------------------
def _bottleneck_kernel(*refs, H, W, Ho, Wo, stride, dilation, has_down,
                       pitch, base0, rows_per_chunk):
    x_ref, w1_ref, b1_ref, w2_ref, b2_ref, w3_ref, b3_ref = refs[:7]
    i = 7
    if has_down:
        wd_ref, bd_ref = refs[i], refs[i + 1]
        i += 2
    o_ref = refs[i]
    u_pad = refs[i + 1]                       # (Lx, width) bf16: padded, row-flattened conv1 out
    v2s = refs[i + 2] if stride != 1 else None

    f32 = jnp.float32
    d = dilation
    P = pitch
    width = w1_ref.shape[1]
    RC = rows_per_chunk

    # ---- conv1 (1x1) + bn1 + relu, written into a zero-padded row-flattened VMEM scratch ----
    u_pad[...] = jnp.zeros(u_pad.shape, u_pad.dtype)      # zero halo rows + slack columns
    u = jnp.dot(x_ref[0], w1_ref[...], preferred_element_type=f32) + b1_ref[...]
    u = jnp.maximum(u, 0.0).astype(u_pad.dtype)           # (H*W, width)
    for h in range(H):                                    # aligned stores: base0 % 8 == P % 8 == 0
        u_pad[pl.ds(base0 + h * P, W), :] = u[h * W:(h + 1) * W, :]

    # 3x3 tap offsets in the flattened padded layout (relative to output index ho*P + wo).
    offs = tuple(((ki - 1) * P + (kj - 1)) * d for ki in range(3) for kj in range(3))
    b2 = b2_ref[...]
    b3 = b3_ref[...]

    if stride == 1:
        for h0 in range(0, H, RC):                        # static row-chunk loop
            Lc = RC * P
            base = h0 * P
            # ---- conv2 (3x3, dilated) + bn2 + relu: 9 contiguous-slab MXU matmuls ----
            acc = jnp.zeros((Lc, width), f32)
            for t in range(9):
                acc += jnp.dot(u_pad[pl.ds(base0 + base + offs[t], Lc), :], w2_ref[t],
                               preferred_element_type=f32)
            v2 = jnp.maximum(acc + b2, 0.0).astype(jnp.bfloat16)
            # ---- conv3 (1x1) + bn3 ----
            y = jnp.dot(v2, w3_ref[...], preferred_element_type=f32) + b3   # (Lc, Cout) f32
            # ---- downsample / identity residual for this chunk of image rows ----
            xr = x_ref[0, pl.ds(h0 * W, RC * W), :]
            if has_down:
                res = jnp.dot(xr, wd_ref[...], preferred_element_type=f32) + bd_ref[...]
            else:
                res = xr.astype(f32)
            # ---- residual add + relu + store (valid columns only; lane-dense Cout) ----
            for hh in range(RC):
                o_ref[0, h0 + hh, :, :] = jnp.maximum(
                    y[hh * P:hh * P + W, :] + res[hh * W:(hh + 1) * W, :],
                    0.0).astype(o_ref.dtype)
    else:
        # conv2 at stride 1 into VMEM scratch, then strided selection fused with conv3 +
        # downsample + residual + relu at the store (no XLA subsample / crop passes).
        for h0 in range(0, H, RC):
            Lc = RC * P
            base = h0 * P
            acc = jnp.zeros((Lc, width), f32)
            for t in range(9):
                acc += jnp.dot(u_pad[pl.ds(base0 + base + offs[t], Lc), :], w2_ref[t],
                               preferred_element_type=f32)
            v2s[pl.ds(base, Lc), :] = jnp.maximum(acc + b2, 0.0).astype(v2s.dtype)
        for ho in range(Ho):
            sel = v2s[pl.ds(ho * stride * P, Wo, stride=stride), :]
            y = jnp.dot(sel, w3_ref[...], preferred_element_type=f32) + b3
            xr = x_ref[0, pl.ds(ho * stride * W, Wo, stride=stride), :]
            res = jnp.dot(xr, wd_ref[...], preferred_element_type=f32) + bd_ref[...]
            o_ref[0, ho, :, :] = jnp.maximum(y + res, 0.0).astype(o_ref.dtype)


# ----------------------------------------------------------------------------
# Bottleneck forward (Pallas wrapper)
# ----------------------------------------------------------------------------
def bottleneck_forward(x_nchw, fused, *, stride=1, dilation=1):
    N, Cin, H, W = x_nchw.shape
    width = fused["w1"].shape[1]
    Cout = fused["w3"].shape[1]
    has_down = "wd" in fused
    if stride != 1:
        assert has_down, "stride != 1 requires a downsample projection"
    d = dilation
    Ho = (H - 1) // stride + 1
    Wo = (W - 1) // stride + 1

    # Row pitch of the padded/flattened conv1 output: 8-aligned so all scratch stores and value
    # slices are sublane-aligned; the (pitch - W) slack columns double as the left/right halo.
    pitch = _round_up(W + 2 * d, 8)
    base0 = _round_up((pitch + 1) * d, 8)                              # top halo (8-aligned)
    Lx = _round_up(base0 + H * pitch + (pitch + 1) * d, 8)             # conv1-padded rows
    Ls = _round_up(H * pitch, 8)                                       # stride-1 conv2 rows
    RC = _pick_rows_per_chunk(H, pitch, width, Cout)

    x = jnp.transpose(x_nchw, (0, 2, 3, 1)).astype(jnp.bfloat16)       # NCHW -> NHWC bf16
    xf = x.reshape(N, H * W, Cin)                                      # free view

    inputs = [xf, fused["w1"], fused["b1"], fused["w2"], fused["b2"], fused["w3"], fused["b3"]]
    in_specs = [
        pl.BlockSpec((1, H * W, Cin), lambda n: (n, 0, 0)),
        pl.BlockSpec((Cin, width), lambda n: (0, 0)),
        pl.BlockSpec((1, width), lambda n: (0, 0)),
        pl.BlockSpec((9, width, width), lambda n: (0, 0, 0)),
        pl.BlockSpec((1, width), lambda n: (0, 0)),
        pl.BlockSpec((width, Cout), lambda n: (0, 0)),
        pl.BlockSpec((1, Cout), lambda n: (0, 0)),
    ]
    if has_down:
        inputs += [fused["wd"], fused["bd"]]
        in_specs += [pl.BlockSpec((Cin, Cout), lambda n: (0, 0)),
                     pl.BlockSpec((1, Cout), lambda n: (0, 0))]

    scratch = [pltpu.VMEM((Lx, width), jnp.bfloat16)]
    if stride != 1:
        scratch.append(pltpu.VMEM((Ls, width), jnp.bfloat16))

    kern = functools.partial(
        _bottleneck_kernel, H=H, W=W, Ho=Ho, Wo=Wo, stride=stride, dilation=d,
        has_down=has_down, pitch=pitch, base0=base0, rows_per_chunk=RC)

    out = pl.pallas_call(
        kern,
        out_shape=jax.ShapeDtypeStruct((N, Ho, Wo, Cout), jnp.bfloat16),
        grid=(N,),
        in_specs=in_specs,
        out_specs=pl.BlockSpec((1, Ho, Wo, Cout), lambda n: (n, 0, 0, 0)),
        scratch_shapes=scratch,
        compiler_params=pltpu.CompilerParams(dimension_semantics=("parallel",)),
    )(*inputs)

    return jnp.transpose(out, (0, 3, 1, 2)).astype(jnp.float32)        # NHWC -> NCHW f32


# ----------------------------------------------------------------------------
# Parameters: raw (f32, for the XLA reference) and fused (bf16, BN folded, pre-reshaped once)
# ----------------------------------------------------------------------------
def make_bn_params(key, c):
    k1, k2, k3, k4 = jax.random.split(key, 4)
    return {"gamma": 1.0 + 0.2 * jax.random.normal(k1, (c,), jnp.float32),
            "beta": 0.1 * jax.random.normal(k2, (c,), jnp.float32),
            "mean": 0.1 * jax.random.normal(k3, (c,), jnp.float32),
            "var": 1.0 + 0.2 * jax.random.uniform(k4, (c,), jnp.float32)}


def make_conv_w(key, kh, kw, cin, cout):
    std = math.sqrt(2.0 / (kh * kw * cout))          # kaiming_normal, fan_out
    return std * jax.random.normal(key, (kh, kw, cin, cout), jnp.float32)   # HWIO


def fold_bn(w_hwio, bn):
    scale = bn["gamma"] / jnp.sqrt(bn["var"] + BN_EPS)
    bias = bn["beta"] - bn["mean"] * scale
    return (w_hwio * scale).astype(jnp.bfloat16), bias.reshape(1, -1).astype(jnp.float32)


def make_bottleneck_params(key, inplanes, planes, stride=1):
    expansion = 4
    width = planes
    out_planes = planes * expansion
    ks = jax.random.split(key, 8)
    raw = {"w1": make_conv_w(ks[0], 1, 1, inplanes, width), "bn1": make_bn_params(ks[1], width),
           "w2": make_conv_w(ks[2], 3, 3, width, width),    "bn2": make_bn_params(ks[3], width),
           "w3": make_conv_w(ks[4], 1, 1, width, out_planes), "bn3": make_bn_params(ks[5], out_planes)}
    if stride != 1 or inplanes != out_planes:
        raw["wd"] = make_conv_w(ks[6], 1, 1, inplanes, out_planes)
        raw["bnd"] = make_bn_params(ks[7], out_planes)

    fused = {}
    w1f, fused["b1"] = fold_bn(raw["w1"], raw["bn1"]); fused["w1"] = w1f.reshape(inplanes, width)
    w2f, fused["b2"] = fold_bn(raw["w2"], raw["bn2"]); fused["w2"] = w2f.reshape(9, width, width)
    w3f, fused["b3"] = fold_bn(raw["w3"], raw["bn3"]); fused["w3"] = w3f.reshape(width, out_planes)
    if "wd" in raw:
        wdf, fused["bd"] = fold_bn(raw["wd"], raw["bnd"]); fused["wd"] = wdf.reshape(inplanes, out_planes)
    return raw, fused


# ----------------------------------------------------------------------------
# Pure-XLA reference (f32, lax.conv) for correctness check
# ----------------------------------------------------------------------------
def _bn_eval(y, bn):
    scale = bn["gamma"] / jnp.sqrt(bn["var"] + BN_EPS)
    bias = bn["beta"] - bn["mean"] * scale
    return y * scale[None, :, None, None] + bias[None, :, None, None]


def _conv_ref(x, w_hwio, stride=1, padding=0, dilation=1):
    w_oihw = jnp.transpose(w_hwio, (3, 2, 0, 1))
    return lax.conv_general_dilated(
        x, w_oihw, window_strides=(stride, stride),
        padding=[(padding, padding), (padding, padding)],
        rhs_dilation=(dilation, dilation),
        dimension_numbers=("NCHW", "OIHW", "NCHW"))


def bottleneck_reference(x, raw, *, stride=1, dilation=1):
    out = jax.nn.relu(_bn_eval(_conv_ref(x, raw["w1"]), raw["bn1"]))
    out = jax.nn.relu(_bn_eval(_conv_ref(out, raw["w2"], stride=stride,
                                         padding=dilation, dilation=dilation), raw["bn2"]))
    out = _bn_eval(_conv_ref(out, raw["w3"]), raw["bn3"])
    identity = _bn_eval(_conv_ref(x, raw["wd"], stride=stride), raw["bnd"]) if "wd" in raw else x
    return jax.nn.relu(out + identity)


if __name__ == "__main__":
    key = jax.random.PRNGKey(0)
    kx, kp, kx2, kp2 = jax.random.split(key, 4)

    # Case 1: inplanes != planes*4 -> 1x1+BN downsample projection, stride=1, dilation=1.
    N, inplanes, H, W = 2, 64, 16, 16
    planes, stride, dilation = 32, 1, 1
    x = jax.random.normal(kx, (N, inplanes, H, W), jnp.float32)          # NCHW, like PyTorch
    raw, fused = make_bottleneck_params(kp, inplanes, planes, stride)

    fwd = jax.jit(functools.partial(bottleneck_forward, stride=stride, dilation=dilation))
    out = jax.block_until_ready(fwd(x, fused))
    assert out.shape == (N, 4 * planes, H, W), out.shape
    assert bool(jnp.all(jnp.isfinite(out)))
    ref = bottleneck_reference(x, raw, stride=stride, dilation=dilation)
    err = float(jnp.max(jnp.abs(out - ref)) / (jnp.max(jnp.abs(ref)) + 1e-6))
    assert err < 5e-2, f"case1 max-normalized error too large: {err}"

    # Case 2: inplanes == planes*4 -> pure identity residual (no downsample branch).
    inplanes2, planes2 = 128, 32
    x2 = jax.random.normal(kx2, (N, inplanes2, H, W), jnp.float32)
    raw2, fused2 = make_bottleneck_params(kp2, inplanes2, planes2, 1)
    fwd2 = jax.jit(functools.partial(bottleneck_forward, stride=1, dilation=1))
    out2 = jax.block_until_ready(fwd2(x2, fused2))
    assert out2.shape == (N, 4 * planes2, H, W), out2.shape
    ref2 = bottleneck_reference(x2, raw2, stride=1, dilation=1)
    err2 = float(jnp.max(jnp.abs(out2 - ref2)) / (jnp.max(jnp.abs(ref2)) + 1e-6))
    assert err2 < 5e-2, f"case2 max-normalized error too large: {err2}"

    print("KERNEL_OK")
</pallas_src>

<mosaic_0001>
module attributes {stable_mosaic.version = 11 : i64} {
  func.func @_bottleneck_kernel(%arg0: i32, %arg1: memref<1x256x64xbf16, #tpu.memory_space<vmem>>, %arg2: memref<64x32xbf16, #tpu.memory_space<vmem>>, %arg3: memref<1x32xf32, #tpu.memory_space<vmem>>, %arg4: memref<9x32x32xbf16, #tpu.memory_space<vmem>>, %arg5: memref<1x32xf32, #tpu.memory_space<vmem>>, %arg6: memref<32x128xbf16, #tpu.memory_space<vmem>>, %arg7: memref<1x128xf32, #tpu.memory_space<vmem>>, %arg8: memref<64x128xbf16, #tpu.memory_space<vmem>>, %arg9: memref<1x128xf32, #tpu.memory_space<vmem>>, %arg10: memref<1x16x16x128xbf16, #tpu.memory_space<vmem>>, %arg11: memref<448x32xbf16, #tpu.memory_space<vmem>>) attributes {dimension_semantics = [#tpu.dimension_semantics<parallel>], iteration_bounds = array<i64: 2>, scalar_prefetch = 0 : i64, scratch_operands = 1 : i64, tpu.core_type = #tpu.core_type<tc>, window_params = [{transform_indices = @transform_0, window_bounds = array<i64: 1, 256, 64>}, {pipeline_mode = #tpu.pipeline_mode<synchronous>, transform_indices = @transform_1, window_bounds = array<i64: 64, 32>}, {pipeline_mode = #tpu.pipeline_mode<synchronous>, transform_indices = @transform_2, window_bounds = array<i64: 1, 32>}, {pipeline_mode = #tpu.pipeline_mode<synchronous>, transform_indices = @transform_3, window_bounds = array<i64: 9, 32, 32>}, {pipeline_mode = #tpu.pipeline_mode<synchronous>, transform_indices = @transform_4, window_bounds = array<i64: 1, 32>}, {pipeline_mode = #tpu.pipeline_mode<synchronous>, transform_indices = @transform_5, window_bounds = array<i64: 32, 128>}, {pipeline_mode = #tpu.pipeline_mode<synchronous>, transform_indices = @transform_6, window_bounds = array<i64: 1, 128>}, {pipeline_mode = #tpu.pipeline_mode<synchronous>, transform_indices = @transform_7, window_bounds = array<i64: 64, 128>}, {pipeline_mode = #tpu.pipeline_mode<synchronous>, transform_indices = @transform_8, window_bounds = array<i64: 1, 128>}, {transform_indices = @transform_9, window_bounds = array<i64: 1, 16, 16, 128>}]} {
    %cst = arith.constant 0.000000e+00 : bf16
    %0 = vector.broadcast %cst : bf16 to vector<448x32xbf16>
    %c0 = arith.constant 0 : index
    %c0_0 = arith.constant 0 : index
    %1 = vector.load %arg11[%c0, %c0_0] : memref<448x32xbf16, #tpu.memory_space<vmem>>, vector<448x32xbf16>
    tpu.vector_store %arg11[%c0, %c0_0], %0 {strides = array<i32>} : memref<448x32xbf16, #tpu.memory_space<vmem>>, vector<448x32xbf16>,
    %c0_1 = arith.constant 0 : index
    %c0_2 = arith.constant 0 : index
    %c0_3 = arith.constant 0 : index
    %2 = vector.load %arg1[%c0_1, %c0_2, %c0_3] : memref<1x256x64xbf16, #tpu.memory_space<vmem>>, vector<1x256x64xbf16>
    %3 = vector.shape_cast %2 : vector<1x256x64xbf16> to vector<256x64xbf16>
    %c0_4 = arith.constant 0 : index
    %c0_5 = arith.constant 0 : index
    %4 = vector.load %arg2[%c0_4, %c0_5] : memref<64x32xbf16, #tpu.memory_space<vmem>>, vector<64x32xbf16>
    %cst_6 = arith.constant dense<0.000000e+00> : vector<256x32xf32>
    %5 = tpu.matmul %3, %4, %cst_6 {dimension_numbers = #tpu.dot_dimension_numbers<[1], [0], [0], [1], [0, 0, 1, 1], [], []>} : vector<256x64xbf16>, vector<64x32xbf16>, vector<256x32xf32> -> vector<256x32xf32>
    %c0_7 = arith.constant 0 : index
    %c0_8 = arith.constant 0 : index
    %6 = vector.load %arg3[%c0_7, %c0_8] : memref<1x32xf32, #tpu.memory_space<vmem>>, vector<1x32xf32>
    %7 = vector.broadcast %6 : vector<1x32xf32> to vector<256x32xf32>
    %8 = arith.addf %5, %7 : vector<256x32xf32>
    %cst_9 = arith.constant 0.000000e+00 : f32
    %9 = vector.broadcast %cst_9 : f32 to vector<256x32xf32>
    %10 = arith.maximumf %8, %9 : vector<256x32xf32>
    %11 = arith.truncf %10 : vector<256x32xf32> to vector<256x32xbf16>
    %12 = vector.extract_strided_slice %11 {offsets = [0, 0], sizes = [16, 32], strides = [1, 1]} : vector<256x32xbf16> to vector<16x32xbf16>
    %c32 = arith.constant 32 : index
    %c0_10 = arith.constant 0 : index
    %13 = vector.load %arg11[%c32, %c0_10] : memref<448x32xbf16, #tpu.memory_space<vmem>>, vector<16x32xbf16>
    tpu.vector_store %arg11[%c32, %c0_10], %12 {strides = array<i32>} : memref<448x32xbf16, #tpu.memory_space<vmem>>, vector<16x32xbf16>,
    %14 = vector.extract_strided_slice %11 {offsets = [16, 0], sizes = [16, 32], strides = [1, 1]} : vector<256x32xbf16> to vector<16x32xbf16>
    %c56 = arith.constant 56 : index
    %c0_11 = arith.constant 0 : index
    %15 = vector.load %arg11[%c56, %c0_11] : memref<448x32xbf16, #tpu.memory_space<vmem>>, vector<16x32xbf16>
    tpu.vector_store %arg11[%c56, %c0_11], %14 {strides = array<i32>} : memref<448x32xbf16, #tpu.memory_space<vmem>>, vector<16x32xbf16>,
    %16 = vector.extract_strided_slice %11 {offsets = [32, 0], sizes = [16, 32], strides = [1, 1]} : vector<256x32xbf16> to vector<16x32xbf16>
    %c80 = arith.constant 80 : index
    %c0_12 = arith.constant 0 : index
    %17 = vector.load %arg11[%c80, %c0_12] : memref<448x32xbf16, #tpu.memory_space<vmem>>, vector<16x32xbf16>
    tpu.vector_store %arg11[%c80, %c0_12], %16 {strides = array<i32>} : memref<448x32xbf16, #tpu.memory_space<vmem>>, vector<16x32xbf16>,
    %18 = vector.extract_strided_slice %11 {offsets = [48, 0], sizes = [16, 32], strides = [1, 1]} : vector<256x32xbf16> to vector<16x32xbf16>
    %c104 = arith.constant 104 : index
    %c0_13 = arith.constant 0 : index
    %19 = vector.load %arg11[%c104, %c0_13] : memref<448x32xbf16, #tpu.memory_space<vmem>>, vector<16x32xbf16>
    tpu.vector_store %arg11[%c104, %c0_13], %18 {strides = array<i32>} : memref<448x32xbf16, #tpu.memory_space<vmem>>, vector<16x32xbf16>,
    %20 = vector.extract_strided_slice %11 {offsets = [64, 0], sizes = [16, 32], strides = [1, 1]} : vector<256x32xbf16> to vector<16x32xbf16>
    %c128 = arith.constant 128 : index
    %c0_14 = arith.constant 0 : index
    %21 = vector.load %arg11[%c128, %c0_14] : memref<448x32xbf16, #tpu.memory_space<vmem>>, vector<16x32xbf16>
    tpu.vector_store %arg11[%c128, %c0_14], %20 {strides = array<i32>} : memref<448x32xbf16, #tpu.memory_space<vmem>>, vector<16x32xbf16>,
    %22 = vector.extract_strided_slice %11 {offsets = [80, 0], sizes = [16, 32], strides = [1, 1]} : vector<256x32xbf16> to vector<16x32xbf16>
    %c152 = arith.constant 152 : index
    %c0_15 = arith.constant 0 : index
    %23 = vector.load %arg11[%c152, %c0_15] : memref<448x32xbf16, #tpu.memory_space<vmem>>, vector<16x32xbf16>
    tpu.vector_store %arg11[%c152, %c0_15], %22 {strides = array<i32>} : memref<448x32xbf16, #tpu.memory_space<vmem>>, vector<16x32xbf16>,
    %24 = vector.extract_strided_slice %11 {offsets = [96, 0], sizes = [16, 32], strides = [1, 1]} : vector<256x32xbf16> to vector<16x32xbf16>
    %c176 = arith.constant 176 : index
    %c0_16 = arith.constant 0 : index
    %25 = vector.load %arg11[%c176, %c0_16] : memref<448x32xbf16, #tpu.memory_space<vmem>>, vector<16x32xbf16>
    tpu.vector_store %arg11[%c176, %c0_16], %24 {strides = array<i32>} : memref<448x32xbf16, #tpu.memory_space<vmem>>, vector<16x32xbf16>,
    %26 = vector.extract_strided_slice %11 {offsets = [112, 0], sizes = [16, 32], strides = [1, 1]} : vector<256x32xbf16> to vector<16x32xbf16>
    %c200 = arith.constant 200 : index
    %c0_17 = arith.constant 0 : index
    %27 = vector.load %arg11[%c200, %c0_17] : memref<448x32xbf16, #tpu.memory_space<vmem>>, vector<16x32xbf16>
    tpu.vector_store %arg11[%c200, %c0_17], %26 {strides = array<i32>} : memref<448x32xbf16, #tpu.memory_space<vmem>>, vector<16x32xbf16>,
    %28 = vector.extract_strided_slice %11 {offsets = [128, 0], sizes = [16, 32], strides = [1, 1]} : vector<256x32xbf16> to vector<16x32xbf16>
    %c224 = arith.constant 224 : index
    %c0_18 = arith.constant 0 : index
    %29 = vector.load %arg11[%c224, %c0_18] : memref<448x32xbf16, #tpu.memory_space<vmem>>, vector<16x32xbf16>
    tpu.vector_store %arg11[%c224, %c0_18], %28 {strides = array<i32>} : memref<448x32xbf16, #tpu.memory_space<vmem>>, vector<16x32xbf16>,
    %30 = vector.extract_strided_slice %11 {offsets = [144, 0], sizes = [16, 32], strides = [1, 1]} : vector<256x32xbf16> to vector<16x32xbf16>
    %c248 = arith.constant 248 : index
    %c0_19 = arith.constant 0 : index
    %31 = vector.load %arg11[%c248, %c0_19] : memref<448x32xbf16, #tpu.memory_space<vmem>>, vector<16x32xbf16>
    tpu.vector_store %arg11[%c248, %c0_19], %30 {strides = array<i32>} : memref<448x32xbf16, #tpu.memory_space<vmem>>, vector<16x32xbf16>,
    %32 = vector.extract_strided_slice %11 {offsets = [160, 0], sizes = [16, 32], strides = [1, 1]} : vector<256x32xbf16> to vector<16x32xbf16>
    %c272 = arith.constant 272 : index
    %c0_20 = arith.constant 0 : index
    %33 = vector.load %arg11[%c272, %c0_20] : memref<448x32xbf16, #tpu.memory_space<vmem>>, vector<16x32xbf16>
    tpu.vector_store %arg11[%c272, %c0_20], %32 {strides = array<i32>} : memref<448x32xbf16, #tpu.memory_space<vmem>>, vector<16x32xbf16>,
    %34 = vector.extract_strided_slice %11 {offsets = [176, 0], sizes = [16, 32], strides = [1, 1]} : vector<256x32xbf16> to vector<16x32xbf16>
    %c296 = arith.constant 296 : index
    %c0_21 = arith.constant 0 : index
    %35 = vector.load %arg11[%c296, %c0_21] : memref<448x32xbf16, #tpu.memory_space<vmem>>, vector<16x32xbf16>
    tpu.vector_store %arg11[%c296, %c0_21], %34 {strides = array<i32>} : memref<448x32xbf16, #tpu.memory_space<vmem>>, vector<16x32xbf16>,
    %36 = vector.extract_strided_slice %11 {offsets = [192, 0], sizes = [16, 32], strides = [1, 1]} : vector<256x32xbf16> to vector<16x32xbf16>
    %c320 = arith.constant 320 : index
    %c0_22 = arith.constant 0 : index
    %37 = vector.load %arg11[%c320, %c0_22] : memref<448x32xbf16, #tpu.memory_space<vmem>>, vector<16x32xbf16>
    tpu.vector_store %arg11[%c320, %c0_22], %36 {strides = array<i32>} : memref<448x32xbf16, #tpu.memory_space<vmem>>, vector<16x32xbf16>,
    %38 = vector.extract_strided_slice %11 {offsets = [208, 0], sizes = [16, 32], strides = [1, 1]} : vector<256x32xbf16> to vector<16x32xbf16>
    %c344 = arith.constant 344 : index
    %c0_23 = arith.constant 0 : index
    %39 = vector.load %arg11[%c344, %c0_23] : memref<448x32xbf16, #tpu.memory_space<vmem>>, vector<16x32xbf16>
    tpu.vector_store %arg11[%c344, %c0_23], %38 {strides = array<i32>} : memref<448x32xbf16, #tpu.memory_space<vmem>>, vector<16x32xbf16>,
    %40 = vector.extract_strided_slice %11 {offsets = [224, 0], sizes = [16, 32], strides = [1, 1]} : vector<256x32xbf16> to vector<16x32xbf16>
    %c368 = arith.constant 368 : index
    %c0_24 = arith.constant 0 : index
    %41 = vector.load %arg11[%c368, %c0_24] : memref<448x32xbf16, #tpu.memory_space<vmem>>, vector<16x32xbf16>
    tpu.vector_store %arg11[%c368, %c0_24], %40 {strides = array<i32>} : memref<448x32xbf16, #tpu.memory_space<vmem>>, vector<16x32xbf16>,
    %42 = vector.extract_strided_slice %11 {offsets = [240, 0], sizes = [16, 32], strides = [1, 1]} : vector<256x32xbf16> to vector<16x32xbf16>
    %c392 = arith.constant 392 : index
    %c0_25 = arith.constant 0 : index
    %43 = vector.load %arg11[%c392, %c0_25] : memref<448x32xbf16, #tpu.memory_space<vmem>>, vector<16x32xbf16>
    tpu.vector_store %arg11[%c392, %c0_25], %42 {strides = array<i32>} : memref<448x32xbf16, #tpu.memory_space<vmem>>, vector<16x32xbf16>,
    %c0_26 = arith.constant 0 : index
    %c0_27 = arith.constant 0 : index
    %44 = vector.load %arg5[%c0_26, %c0_27] : memref<1x32xf32, #tpu.memory_space<vmem>>, vector<1x32xf32>
    %c0_28 = arith.constant 0 : index
    %c0_29 = arith.constant 0 : index
    %45 = vector.load %arg7[%c0_28, %c0_29] : memref<1x128xf32, #tpu.memory_space<vmem>>, vector<1x128xf32>
    %cst_30 = arith.constant 0.000000e+00 : f32
    %46 = vector.broadcast %cst_30 : f32 to vector<384x32xf32>
    %c7 = arith.constant 7 : index
    %c0_31 = arith.constant 0 : index
    %47 = vector.load %arg11[%c7, %c0_31] : memref<448x32xbf16, #tpu.memory_space<vmem>>, vector<384x32xbf16>
    %c0_32 = arith.constant 0 : index
    %c0_33 = arith.constant 0 : index
    %c0_34 = arith.constant 0 : index
    %48 = vector.load %arg4[%c0_32, %c0_33, %c0_34] : memref<9x32x32xbf16, #tpu.memory_space<vmem>>, vector<1x32x32xbf16>
    %49 = vector.shape_cast %48 : vector<1x32x32xbf16> to vector<32x32xbf16>
    %cst_35 = arith.constant dense<0.000000e+00> : vector<384x32xf32>
    %50 = tpu.matmul %47, %49, %cst_35 {dimension_numbers = #tpu.dot_dimension_numbers<[1], [0], [0], [1], [0, 0, 1, 1], [], []>} : vector<384x32xbf16>, vector<32x32xbf16>, vector<384x32xf32> -> vector<384x32xf32>
    %51 = arith.addf %46, %50 : vector<384x32xf32>
    %c8 = arith.constant 8 : index
    %c0_36 = arith.constant 0 : index
    %52 = vector.load %arg11[%c8, %c0_36] : memref<448x32xbf16, #tpu.memory_space<vmem>>, vector<384x32xbf16>
    %c1 = arith.constant 1 : index
    %c0_37 = arith.constant 0 : index
    %c0_38 = arith.constant 0 : index
    %53 = vector.load %arg4[%c1, %c0_37, %c0_38] : memref<9x32x32xbf16, #tpu.memory_space<vmem>>, vector<1x32x32xbf16>
    %54 = vector.shape_cast %53 : vector<1x32x32xbf16> to vector<32x32xbf16>
    %cst_39 = arith.constant dense<0.000000e+00> : vector<384x32xf32>
    %55 = tpu.matmul %52, %54, %cst_39 {dimension_numbers = #tpu.dot_dimension_numbers<[1], [0], [0], [1], [0, 0, 1, 1], [], []>} : vector<384x32xbf16>, vector<32x32xbf16>, vector<384x32xf32> -> vector<384x32xf32>
    %56 = arith.addf %51, %55 : vector<384x32xf32>
    %c9 = arith.constant 9 : index
    %c0_40 = arith.constant 0 : index
    %57 = vector.load %arg11[%c9, %c0_40] : memref<448x32xbf16, #tpu.memory_space<vmem>>, vector<384x32xbf16>
    %c2 = arith.constant 2 : index
    %c0_41 = arith.constant 0 : index
    %c0_42 = arith.constant 0 : index
    %58 = vector.load %arg4[%c2, %c0_41, %c0_42] : memref<9x32x32xbf16, #tpu.memory_space<vmem>>, vector<1x32x32xbf16>
    %59 = vector.shape_cast %58 : vector<1x32x32xbf16> to vector<32x32xbf16>
    %cst_43 = arith.constant dense<0.000000e+00> : vector<384x32xf32>
    %60 = tpu.matmul %57, %59, %cst_43 {dimension_numbers = #tpu.dot_dimension_numbers<[1], [0], [0], [1], [0, 0, 1, 1], [], []>} : vector<384x32xbf16>, vector<32x32xbf16>, vector<384x32xf32> -> vector<384x32xf32>
    %61 = arith.addf %56, %60 : vector<384x32xf32>
    %c31 = arith.constant 31 : index
    %c0_44 = arith.constant 0 : index
    %62 = vector.load %arg11[%c31, %c0_44] : memref<448x32xbf16, #tpu.memory_space<vmem>>, vector<384x32xbf16>
    %c3 = arith.constant 3 : index
    %c0_45 = arith.constant 0 : index
    %c0_46 = arith.constant 0 : index
    %63 = vector.load %arg4[%c3, %c0_45, %c0_46] : memref<9x32x32xbf16, #tpu.memory_space<vmem>>, vector<1x32x32xbf16>
    %64 = vector.shape_cast %63 : vector<1x32x32xbf16> to vector<32x32xbf16>
    %cst_47 = arith.constant dense<0.000000e+00> : vector<384x32xf32>
    %65 = tpu.matmul %62, %64, %cst_47 {dimension_numbers = #tpu.dot_dimension_numbers<[1], [0], [0], [1], [0, 0, 1, 1], [], []>} : vector<384x32xbf16>, vector<32x32xbf16>, vector<384x32xf32> -> vector<384x32xf32>
    %66 = arith.addf %61, %65 : vector<384x32xf32>
    %c32_48 = arith.constant 32 : index
    %c0_49 = arith.constant 0 : index
    %67 = vector.load %arg11[%c32_48, %c0_49] : memref<448x32xbf16, #tpu.memory_space<vmem>>, vector<384x32xbf16>
    %c4 = arith.constant 4 : index
    %c0_50 = arith.constant 0 : index
    %c0_51 = arith.constant 0 : index
    %68 = vector.load %arg4[%c4, %c0_50, %c0_51] : memref<9x32x32xbf16, #tpu.memory_space<vmem>>, vector<1x32x32xbf16>
    %69 = vector.shape_cast %68 : vector<1x32x32xbf16> to vector<32x32xbf16>
    %cst_52 = arith.constant dense<0.000000e+00> : vector<384x32xf32>
    %70 = tpu.matmul %67, %69, %cst_52 {dimension_numbers = #tpu.dot_dimension_numbers<[1], [0], [0], [1], [0, 0, 1, 1], [], []>} : vector<384x32xbf16>, vector<32x32xbf16>, vector<384x32xf32> -> vector<384x32xf32>
    %71 = arith.addf %66, %70 : vector<384x32xf32>
    %c33 = arith.constant 33 : index
    %c0_53 = arith.constant 0 : index
    %72 = vector.load %arg11[%c33, %c0_53] : memref<448x32xbf16, #tpu.memory_space<vmem>>, vector<384x32xbf16>
    %c5 = arith.constant 5 : index
    %c0_54 = arith.constant 0 : index
    %c0_55 = arith.constant 0 : index
    %73 = vector.load %arg4[%c5, %c0_54, %c0_55] : memref<9x32x32xbf16, #tpu.memory_space<vmem>>, vector<1x32x32xbf16>
    %74 = vector.shape_cast %73 : vector<1x32x32xbf16> to vector<32x32xbf16>
    %cst_56 = arith.constant dense<0.000000e+00> : vector<384x32xf32>
    %75 = tpu.matmul %72, %74, %cst_56 {dimension_numbers = #tpu.dot_dimension_numbers<[1], [0], [0], [1], [0, 0, 1, 1], [], []>} : vector<384x32xbf16>, vector<32x32xbf16>, vector<384x32xf32> -> vector<384x32xf32>
    %76 = arith.addf %71, %75 : vector<384x32xf32>
    %c55 = arith.constant 55 : index
    %c0_57 = arith.constant 0 : index
    %77 = vector.load %arg11[%c55, %c0_57] : memref<448x32xbf16, #tpu.memory_space<vmem>>, vector<384x32xbf16>
    %c6 = arith.constant 6 : index
    %c0_58 = arith.constant 0 : index
    %c0_59 = arith.constant 0 : index
    %78 = vector.load %arg4[%c6, %c0_58, %c0_59] : memref<9x32x32xbf16, #tpu.memory_space<vmem>>, vector<1x32x32xbf16>
    %79 = vector.shape_cast %78 : vector<1x32x32xbf16> to vector<32x32xbf16>
    %cst_60 = arith.constant dense<0.000000e+00> : vector<384x32xf32>
    %80 = tpu.matmul %77, %79, %cst_60 {dimension_numbers = #tpu.dot_dimension_numbers<[1], [0], [0], [1], [0, 0, 1, 1], [], []>} : vector<384x32xbf16>, vector<32x32xbf16>, vector<384x32xf32> -> vector<384x32xf32>
    %81 = arith.addf %76, %80 : vector<384x32xf32>
    %c56_61 = arith.constant 56 : index
    %c0_62 = arith.constant 0 : index
    %82 = vector.load %arg11[%c56_61, %c0_62] : memref<448x32xbf16, #tpu.memory_space<vmem>>, vector<384x32xbf16>
    %c7_63 = arith.constant 7 : index
    %c0_64 = arith.constant 0 : index
    %c0_65 = arith.constant 0 : index
    %83 = vector.load %arg4[%c7_63, %c0_64, %c0_65] : memref<9x32x32xbf16, #tpu.memory_space<vmem>>, vector<1x32x32xbf16>
    %84 = vector.shape_cast %83 : vector<1x32x32xbf16> to vector<32x32xbf16>
    %cst_66 = arith.constant dense<0.000000e+00> : vector<384x32xf32>
    %85 = tpu.matmul %82, %84, %cst_66 {dimension_numbers = #tpu.dot_dimension_numbers<[1], [0], [0], [1], [0, 0, 1, 1], [], []>} : vector<384x32xbf16>, vector<32x32xbf16>, vector<384x32xf32> -> vector<384x32xf32>
    %86 = arith.addf %81, %85 : vector<384x32xf32>
    %c57 = arith.constant 57 : index
    %c0_67 = arith.constant 0 : index
    %87 = vector.load %arg11[%c57, %c0_67] : memref<448x32xbf16, #tpu.memory_space<vmem>>, vector<384x32xbf16>
    %c8_68 = arith.constant 8 : index
    %c0_69 = arith.constant 0 : index
    %c0_70 = arith.constant 0 : index
    %88 = vector.load %arg4[%c8_68, %c0_69, %c0_70] : memref<9x32x32xbf16, #tpu.memory_space<vmem>>, vector<1x32x32xbf16>
    %89 = vector.shape_cast %88 : vector<1x32x32xbf16> to vector<32x32xbf16>
    %cst_71 = arith.constant dense<0.000000e+00> : vector<384x32xf32>
    %90 = tpu.matmul %87, %89, %cst_71 {dimension_numbers = #tpu.dot_dimension_numbers<[1], [0], [0], [1], [0, 0, 1, 1], [], []>} : vector<384x32xbf16>, vector<32x32xbf16>, vector<384x32xf32> -> vector<384x32xf32>
    %91 = arith.addf %86, %90 : vector<384x32xf32>
    %92 = vector.broadcast %44 : vector<1x32xf32> to vector<384x32xf32>
    %93 = arith.addf %91, %92 : vector<384x32xf32>
    %cst_72 = arith.constant 0.000000e+00 : f32
    %94 = vector.broadcast %cst_72 : f32 to vector<384x32xf32>
    %95 = arith.maximumf %93, %94 : vector<384x32xf32>
    %96 = arith.truncf %95 : vector<384x32xf32> to vector<384x32xbf16>
    %c0_73 = arith.constant 0 : index
    %c0_74 = arith.constant 0 : index
    %97 = vector.load %arg6[%c0_73, %c0_74] : memref<32x128xbf16, #tpu.memory_space<vmem>>, vector<32x128xbf16>
    %cst_75 = arith.constant dense<0.000000e+00> : vector<384x128xf32>
    %98 = tpu.matmul %96, %97, %cst_75 {dimension_numbers = #tpu.dot_dimension_numbers<[1], [0], [0], [1], [0, 0, 1, 1], [], []>} : vector<384x32xbf16>, vector<32x128xbf16>, vector<384x128xf32> -> vector<384x128xf32>
    %99 = vector.broadcast %45 : vector<1x128xf32> to vector<384x128xf32>
    %100 = arith.addf %98, %99 : vector<384x128xf32>
    %c0_76 = arith.constant 0 : index
    %c0_77 = arith.constant 0 : index
    %c0_78 = arith.constant 0 : index
    %101 = vector.load %arg1[%c0_76, %c0_77, %c0_78] : memref<1x256x64xbf16, #tpu.memory_space<vmem>>, vector<1x256x64xbf16>
    %102 = vector.shape_cast %101 : vector<1x256x64xbf16> to vector<256x64xbf16>
    %c0_79 = arith.constant 0 : index
    %c0_80 = arith.constant 0 : index
    %103 = vector.load %arg8[%c0_79, %c0_80] : memref<64x128xbf16, #tpu.memory_space<vmem>>, vector<64x128xbf16>
    %cst_81 = arith.constant dense<0.000000e+00> : vector<256x128xf32>
    %104 = tpu.matmul %102, %103, %cst_81 {dimension_numbers = #tpu.dot_dimension_numbers<[1], [0], [0], [1], [0, 0, 1, 1], [], []>} : vector<256x64xbf16>, vector<64x128xbf16>, vector<256x128xf32> -> vector<256x128xf32>
    %c0_82 = arith.constant 0 : index
    %c0_83 = arith.constant 0 : index
    %105 = vector.load %arg9[%c0_82, %c0_83] : memref<1x128xf32, #tpu.memory_space<vmem>>, vector<1x128xf32>
    %106 = vector.broadcast %105 : vector<1x128xf32> to vector<256x128xf32>
    %107 = arith.addf %104, %106 : vector<256x128xf32>
    %108 = vector.extract_strided_slice %100 {offsets = [0, 0], sizes = [16, 128], strides = [1, 1]} : vector<384x128xf32> to vector<16x128xf32>
    %109 = vector.extract_strided_slice %107 {offsets = [0, 0], sizes = [16, 128], strides = [1, 1]} : vector<256x128xf32> to vector<16x128xf32>
    %110 = arith.addf %108, %109 : vector<16x128xf32>
    %cst_84 = arith.constant 0.000000e+00 : f32
    %111 = vector.broadcast %cst_84 : f32 to vector<16x128xf32>
    %112 = arith.maximumf %110, %111 : vector<16x128xf32>
    %113 = arith.truncf %112 : vector<16x128xf32> to vector<16x128xbf16>
    %c0_85 = arith.constant 0 : index
    %c0_86 = arith.constant 0 : index
    %c0_87 = arith.constant 0 : index
    %c0_88 = arith.constant 0 : index
    %114 = vector.load %arg10[%c0_85, %c0_86, %c0_87, %c0_88] : memref<1x16x16x128xbf16, #tpu.memory_space<vmem>>, vector<1x1x16x128xbf16>
    %115 = vector.shape_cast %114 : vector<1x1x16x128xbf16> to vector<16x128xbf16>
    %116 = vector.shape_cast %113 : vector<16x128xbf16> to vector<1x1x16x128xbf16>
    tpu.vector_store %arg10[%c0_85, %c0_86, %c0_87, %c0_88], %116 {strides = array<i32>} : memref<1x16x16x128xbf16, #tpu.memory_space<vmem>>, vector<1x1x16x128xbf16>,
    %117 = vector.extract_strided_slice %100 {offsets = [24, 0], sizes = [16, 128], strides = [1, 1]} : vector<384x128xf32> to vector<16x128xf32>
    %118 = vector.extract_strided_slice %107 {offsets = [16, 0], sizes = [16, 128], strides = [1, 1]} : vector<256x128xf32> to vector<16x128xf32>
    %119 = arith.addf %117, %118 : vector<16x128xf32>
    %cst_89 = arith.constant 0.000000e+00 : f32
    %120 = vector.broadcast %cst_89 : f32 to vector<16x128xf32>
    %121 = arith.maximumf %119, %120 : vector<16x128xf32>
    %122 = arith.truncf %121 : vector<16x128xf32> to vector<16x128xbf16>
    %c0_90 = arith.constant 0 : index
    %c1_91 = arith.constant 1 : index
    %c0_92 = arith.constant 0 : index
    %c0_93 = arith.constant 0 : index
    %123 = vector.load %arg10[%c0_90, %c1_91, %c0_92, %c0_93] : memref<1x16x16x128xbf16, #tpu.memory_space<vmem>>, vector<1x1x16x128xbf16>
    %124 = vector.shape_cast %123 : vector<1x1x16x128xbf16> to vector<16x128xbf16>
    %125 = vector.shape_cast %122 : vector<16x128xbf16> to vector<1x1x16x128xbf16>
    tpu.vector_store %arg10[%c0_90, %c1_91, %c0_92, %c0_93], %125 {strides = array<i32>} : memref<1x16x16x128xbf16, #tpu.memory_space<vmem>>, vector<1x1x16x128xbf16>,
    %126 = vector.extract_strided_slice %100 {offsets = [48, 0], sizes = [16, 128], strides = [1, 1]} : vector<384x128xf32> to vector<16x128xf32>
    %127 = vector.extract_strided_slice %107 {offsets = [32, 0], sizes = [16, 128], strides = [1, 1]} : vector<256x128xf32> to vector<16x128xf32>
    %128 = arith.addf %126, %127 : vector<16x128xf32>
    %cst_94 = arith.constant 0.000000e+00 : f32
    %129 = vector.broadcast %cst_94 : f32 to vector<16x128xf32>
    %130 = arith.maximumf %128, %129 : vector<16x128xf32>
    %131 = arith.truncf %130 : vector<16x128xf32> to vector<16x128xbf16>
    %c0_95 = arith.constant 0 : index
    %c2_96 = arith.constant 2 : index
    %c0_97 = arith.constant 0 : index
    %c0_98 = arith.constant 0 : index
    %132 = vector.load %arg10[%c0_95, %c2_96, %c0_97, %c0_98] : memref<1x16x16x128xbf16, #tpu.memory_space<vmem>>, vector<1x1x16x128xbf16>
    %133 = vector.shape_cast %132 : vector<1x1x16x128xbf16> to vector<16x128xbf16>
    %134 = vector.shape_cast %131 : vector<16x128xbf16> to vector<1x1x16x128xbf16>
    tpu.vector_store %arg10[%c0_95, %c2_96, %c0_97, %c0_98], %134 {strides = array<i32>} : memref<1x16x16x128xbf16, #tpu.memory_space<vmem>>, vector<1x1x16x128xbf16>,
    %135 = vector.extract_strided_slice %100 {offsets = [72, 0], sizes = [16, 128], strides = [1, 1]} : vector<384x128xf32> to vector<16x128xf32>
    %136 = vector.extract_strided_slice %107 {offsets = [48, 0], sizes = [16, 128], strides = [1, 1]} : vector<256x128xf32> to vector<16x128xf32>
    %137 = arith.addf %135, %136 : vector<16x128xf32>
    %cst_99 = arith.constant 0.000000e+00 : f32
    %138 = vector.broadcast %cst_99 : f32 to vector<16x128xf32>
    %139 = arith.maximumf %137, %138 : vector<16x128xf32>
    %140 = arith.truncf %139 : vector<16x128xf32> to vector<16x128xbf16>
    %c0_100 = arith.constant 0 : index
    %c3_101 = arith.constant 3 : index
    %c0_102 = arith.constant 0 : index
    %c0_103 = arith.constant 0 : index
    %141 = vector.load %arg10[%c0_100, %c3_101, %c0_102, %c0_103] : memref<1x16x16x128xbf16, #tpu.memory_space<vmem>>, vector<1x1x16x128xbf16>
    %142 = vector.shape_cast %141 : vector<1x1x16x128xbf16> to vector<16x128xbf16>
    %143 = vector.shape_cast %140 : vector<16x128xbf16> to vector<1x1x16x128xbf16>
    tpu.vector_store %arg10[%c0_100, %c3_101, %c0_102, %c0_103], %143 {strides = array<i32>} : memref<1x16x16x128xbf16, #tpu.memory_space<vmem>>, vector<1x1x16x128xbf16>,
    %144 = vector.extract_strided_slice %100 {offsets = [96, 0], sizes = [16, 128], strides = [1, 1]} : vector<384x128xf32> to vector<16x128xf32>
    %145 = vector.extract_strided_slice %107 {offsets = [64, 0], sizes = [16, 128], strides = [1, 1]} : vector<256x128xf32> to vector<16x128xf32>
    %146 = arith.addf %144, %145 : vector<16x128xf32>
    %cst_104 = arith.constant 0.000000e+00 : f32
    %147 = vector.broadcast %cst_104 : f32 to vector<16x128xf32>
    %148 = arith.maximumf %146, %147 : vector<16x128xf32>
    %149 = arith.truncf %148 : vector<16x128xf32> to vector<16x128xbf16>
    %c0_105 = arith.constant 0 : index
    %c4_106 = arith.constant 4 : index
    %c0_107 = arith.constant 0 : index
    %c0_108 = arith.constant 0 : index
    %150 = vector.load %arg10[%c0_105, %c4_106, %c0_107, %c0_108] : memref<1x16x16x128xbf16, #tpu.memory_space<vmem>>, vector<1x1x16x128xbf16>
    %151 = vector.shape_cast %150 : vector<1x1x16x128xbf16> to vector<16x128xbf16>
    %152 = vector.shape_cast %149 : vector<16x128xbf16> to vector<1x1x16x128xbf16>
    tpu.vector_store %arg10[%c0_105, %c4_106, %c0_107, %c0_108], %152 {strides = array<i32>} : memref<1x16x16x128xbf16, #tpu.memory_space<vmem>>, vector<1x1x16x128xbf16>,
    %153 = vector.extract_strided_slice %100 {offsets = [120, 0], sizes = [16, 128], strides = [1, 1]} : vector<384x128xf32> to vector<16x128xf32>
    %154 = vector.extract_strided_slice %107 {offsets = [80, 0], sizes = [16, 128], strides = [1, 1]} : vector<256x128xf32> to vector<16x128xf32>
    %155 = arith.addf %153, %154 : vector<16x128xf32>
    %cst_109 = arith.constant 0.000000e+00 : f32
    %156 = vector.broadcast %cst_109 : f32 to vector<16x128xf32>
    %157 = arith.maximumf %155, %156 : vector<16x128xf32>
    %158 = arith.truncf %157 : vector<16x128xf32> to vector<16x128xbf16>
    %c0_110 = arith.constant 0 : index
    %c5_111 = arith.constant 5 : index
    %c0_112 = arith.constant 0 : index
    %c0_113 = arith.constant 0 : index
    %159 = vector.load %arg10[%c0_110, %c5_111, %c0_112, %c0_113] : memref<1x16x16x128xbf16, #tpu.memory_space<vmem>>, vector<1x1x16x128xbf16>
    %160 = vector.shape_cast %159 : vector<1x1x16x128xbf16> to vector<16x128xbf16>
    %161 = vector.shape_cast %158 : vector<16x128xbf16> to vector<1x1x16x128xbf16>
    tpu.vector_store %arg10[%c0_110, %c5_111, %c0_112, %c0_113], %161 {strides = array<i32>} : memref<1x16x16x128xbf16, #tpu.memory_space<vmem>>, vector<1x1x16x128xbf16>,
    %162 = vector.extract_strided_slice %100 {offsets = [144, 0], sizes = [16, 128], strides = [1, 1]} : vector<384x128xf32> to vector<16x128xf32>
    %163 = vector.extract_strided_slice %107 {offsets = [96, 0], sizes = [16, 128], strides = [1, 1]} : vector<256x128xf32> to vector<16x128xf32>
    %164 = arith.addf %162, %163 : vector<16x128xf32>
    %cst_114 = arith.constant 0.000000e+00 : f32
    %165 = vector.broadcast %cst_114 : f32 to vector<16x128xf32>
    %166 = arith.maximumf %164, %165 : vector<16x128xf32>
    %167 = arith.truncf %166 : vector<16x128xf32> to vector<16x128xbf16>
    %c0_115 = arith.constant 0 : index
    %c6_116 = arith.constant 6 : index
    %c0_117 = arith.constant 0 : index
    %c0_118 = arith.constant 0 : index
    %168 = vector.load %arg10[%c0_115, %c6_116, %c0_117, %c0_118] : memref<1x16x16x128xbf16, #tpu.memory_space<vmem>>, vector<1x1x16x128xbf16>
    %169 = vector.shape_cast %168 : vector<1x1x16x128xbf16> to vector<16x128xbf16>
    %170 = vector.shape_cast %167 : vector<16x128xbf16> to vector<1x1x16x128xbf16>
    tpu.vector_store %arg10[%c0_115, %c6_116, %c0_117, %c0_118], %170 {strides = array<i32>} : memref<1x16x16x128xbf16, #tpu.memory_space<vmem>>, vector<1x1x16x128xbf16>,
    %171 = vector.extract_strided_slice %100 {offsets = [168, 0], sizes = [16, 128], strides = [1, 1]} : vector<384x128xf32> to vector<16x128xf32>
    %172 = vector.extract_strided_slice %107 {offsets = [112, 0], sizes = [16, 128], strides = [1, 1]} : vector<256x128xf32> to vector<16x128xf32>
    %173 = arith.addf %171, %172 : vector<16x128xf32>
    %cst_119 = arith.constant 0.000000e+00 : f32
    %174 = vector.broadcast %cst_119 : f32 to vector<16x128xf32>
    %175 = arith.maximumf %173, %174 : vector<16x128xf32>
    %176 = arith.truncf %175 : vector<16x128xf32> to vector<16x128xbf16>
    %c0_120 = arith.constant 0 : index
    %c7_121 = arith.constant 7 : index
    %c0_122 = arith.constant 0 : index
    %c0_123 = arith.constant 0 : index
    %177 = vector.load %arg10[%c0_120, %c7_121, %c0_122, %c0_123] : memref<1x16x16x128xbf16, #tpu.memory_space<vmem>>, vector<1x1x16x128xbf16>
    %178 = vector.shape_cast %177 : vector<1x1x16x128xbf16> to vector<16x128xbf16>
    %179 = vector.shape_cast %176 : vector<16x128xbf16> to vector<1x1x16x128xbf16>
    tpu.vector_store %arg10[%c0_120, %c7_121, %c0_122, %c0_123], %179 {strides = array<i32>} : memref<1x16x16x128xbf16, #tpu.memory_space<vmem>>, vector<1x1x16x128xbf16>,
    %180 = vector.extract_strided_slice %100 {offsets = [192, 0], sizes = [16, 128], strides = [1, 1]} : vector<384x128xf32> to vector<16x128xf32>
    %181 = vector.extract_strided_slice %107 {offsets = [128, 0], sizes = [16, 128], strides = [1, 1]} : vector<256x128xf32> to vector<16x128xf32>
    %182 = arith.addf %180, %181 : vector<16x128xf32>
    %cst_124 = arith.constant 0.000000e+00 : f32
    %183 = vector.broadcast %cst_124 : f32 to vector<16x128xf32>
    %184 = arith.maximumf %182, %183 : vector<16x128xf32>
    %185 = arith.truncf %184 : vector<16x128xf32> to vector<16x128xbf16>
    %c0_125 = arith.constant 0 : index
    %c8_126 = arith.constant 8 : index
    %c0_127 = arith.constant 0 : index
    %c0_128 = arith.constant 0 : index
    %186 = vector.load %arg10[%c0_125, %c8_126, %c0_127, %c0_128] : memref<1x16x16x128xbf16, #tpu.memory_space<vmem>>, vector<1x1x16x128xbf16>
    %187 = vector.shape_cast %186 : vector<1x1x16x128xbf16> to vector<16x128xbf16>
    %188 = vector.shape_cast %185 : vector<16x128xbf16> to vector<1x1x16x128xbf16>
    tpu.vector_store %arg10[%c0_125, %c8_126, %c0_127, %c0_128], %188 {strides = array<i32>} : memref<1x16x16x128xbf16, #tpu.memory_space<vmem>>, vector<1x1x16x128xbf16>,
    %189 = vector.extract_strided_slice %100 {offsets = [216, 0], sizes = [16, 128], strides = [1, 1]} : vector<384x128xf32> to vector<16x128xf32>
    %190 = vector.extract_strided_slice %107 {offsets = [144, 0], sizes = [16, 128], strides = [1, 1]} : vector<256x128xf32> to vector<16x128xf32>
    %191 = arith.addf %189, %190 : vector<16x128xf32>
    %cst_129 = arith.constant 0.000000e+00 : f32
    %192 = vector.broadcast %cst_129 : f32 to vector<16x128xf32>
    %193 = arith.maximumf %191, %192 : vector<16x128xf32>
    %194 = arith.truncf %193 : vector<16x128xf32> to vector<16x128xbf16>
    %c0_130 = arith.constant 0 : index
    %c9_131 = arith.constant 9 : index
    %c0_132 = arith.constant 0 : index
    %c0_133 = arith.constant 0 : index
    %195 = vector.load %arg10[%c0_130, %c9_131, %c0_132, %c0_133] : memref<1x16x16x128xbf16, #tpu.memory_space<vmem>>, vector<1x1x16x128xbf16>
    %196 = vector.shape_cast %195 : vector<1x1x16x128xbf16> to vector<16x128xbf16>
    %197 = vector.shape_cast %194 : vector<16x128xbf16> to vector<1x1x16x128xbf16>
    tpu.vector_store %arg10[%c0_130, %c9_131, %c0_132, %c0_133], %197 {strides = array<i32>} : memref<1x16x16x128xbf16, #tpu.memory_space<vmem>>, vector<1x1x16x128xbf16>,
    %198 = vector.extract_strided_slice %100 {offsets = [240, 0], sizes = [16, 128], strides = [1, 1]} : vector<384x128xf32> to vector<16x128xf32>
    %199 = vector.extract_strided_slice %107 {offsets = [160, 0], sizes = [16, 128], strides = [1, 1]} : vector<256x128xf32> to vector<16x128xf32>
    %200 = arith.addf %198, %199 : vector<16x128xf32>
    %cst_134 = arith.constant 0.000000e+00 : f32
    %201 = vector.broadcast %cst_134 : f32 to vector<16x128xf32>
    %202 = arith.maximumf %200, %201 : vector<16x128xf32>
    %203 = arith.truncf %202 : vector<16x128xf32> to vector<16x128xbf16>
    %c0_135 = arith.constant 0 : index
    %c10 = arith.constant 10 : index
    %c0_136 = arith.constant 0 : index
    %c0_137 = arith.constant 0 : index
    %204 = vector.load %arg10[%c0_135, %c10, %c0_136, %c0_137] : memref<1x16x16x128xbf16, #tpu.memory_space<vmem>>, vector<1x1x16x128xbf16>
    %205 = vector.shape_cast %204 : vector<1x1x16x128xbf16> to vector<16x128xbf16>
    %206 = vector.shape_cast %203 : vector<16x128xbf16> to vector<1x1x16x128xbf16>
    tpu.vector_store %arg10[%c0_135, %c10, %c0_136, %c0_137], %206 {strides = array<i32>} : memref<1x16x16x128xbf16, #tpu.memory_space<vmem>>, vector<1x1x16x128xbf16>,
    %207 = vector.extract_strided_slice %100 {offsets = [264, 0], sizes = [16, 128], strides = [1, 1]} : vector<384x128xf32> to vector<16x128xf32>
    %208 = vector.extract_strided_slice %107 {offsets = [176, 0], sizes = [16, 128], strides = [1, 1]} : vector<256x128xf32> to vector<16x128xf32>
    %209 = arith.addf %207, %208 : vector<16x128xf32>
    %cst_138 = arith.constant 0.000000e+00 : f32
    %210 = vector.broadcast %cst_138 : f32 to vector<16x128xf32>
    %211 = arith.maximumf %209, %210 : vector<16x128xf32>
    %212 = arith.truncf %211 : vector<16x128xf32> to vector<16x128xbf16>
    %c0_139 = arith.constant 0 : index
    %c11 = arith.constant 11 : index
    %c0_140 = arith.constant 0 : index
    %c0_141 = arith.constant 0 : index
    %213 = vector.load %arg10[%c0_139, %c11, %c0_140, %c0_141] : memref<1x16x16x128xbf16, #tpu.memory_space<vmem>>, vector<1x1x16x128xbf16>
    %214 = vector.shape_cast %213 : vector<1x1x16x128xbf16> to vector<16x128xbf16>
    %215 = vector.shape_cast %212 : vector<16x128xbf16> to vector<1x1x16x128xbf16>
    tpu.vector_store %arg10[%c0_139, %c11, %c0_140, %c0_141], %215 {strides = array<i32>} : memref<1x16x16x128xbf16, #tpu.memory_space<vmem>>, vector<1x1x16x128xbf16>,
    %216 = vector.extract_strided_slice %100 {offsets = [288, 0], sizes = [16, 128], strides = [1, 1]} : vector<384x128xf32> to vector<16x128xf32>
    %217 = vector.extract_strided_slice %107 {offsets = [192, 0], sizes = [16, 128], strides = [1, 1]} : vector<256x128xf32> to vector<16x128xf32>
    %218 = arith.addf %216, %217 : vector<16x128xf32>
    %cst_142 = arith.constant 0.000000e+00 : f32
    %219 = vector.broadcast %cst_142 : f32 to vector<16x128xf32>
    %220 = arith.maximumf %218, %219 : vector<16x128xf32>
    %221 = arith.truncf %220 : vector<16x128xf32> to vector<16x128xbf16>
    %c0_143 = arith.constant 0 : index
    %c12 = arith.constant 12 : index
    %c0_144 = arith.constant 0 : index
    %c0_145 = arith.constant 0 : index
    %222 = vector.load %arg10[%c0_143, %c12, %c0_144, %c0_145] : memref<1x16x16x128xbf16, #tpu.memory_space<vmem>>, vector<1x1x16x128xbf16>
    %223 = vector.shape_cast %222 : vector<1x1x16x128xbf16> to vector<16x128xbf16>
    %224 = vector.shape_cast %221 : vector<16x128xbf16> to vector<1x1x16x128xbf16>
    tpu.vector_store %arg10[%c0_143, %c12, %c0_144, %c0_145], %224 {strides = array<i32>} : memref<1x16x16x128xbf16, #tpu.memory_space<vmem>>, vector<1x1x16x128xbf16>,
    %225 = vector.extract_strided_slice %100 {offsets = [312, 0], sizes = [16, 128], strides = [1, 1]} : vector<384x128xf32> to vector<16x128xf32>
    %226 = vector.extract_strided_slice %107 {offsets = [208, 0], sizes = [16, 128], strides = [1, 1]} : vector<256x128xf32> to vector<16x128xf32>
    %227 = arith.addf %225, %226 : vector<16x128xf32>
    %cst_146 = arith.constant 0.000000e+00 : f32
    %228 = vector.broadcast %cst_146 : f32 to vector<16x128xf32>
    %229 = arith.maximumf %227, %228 : vector<16x128xf32>
    %230 = arith.truncf %229 : vector<16x128xf32> to vector<16x128xbf16>
    %c0_147 = arith.constant 0 : index
    %c13 = arith.constant 13 : index
    %c0_148 = arith.constant 0 : index
    %c0_149 = arith.constant 0 : index
    %231 = vector.load %arg10[%c0_147, %c13, %c0_148, %c0_149] : memref<1x16x16x128xbf16, #tpu.memory_space<vmem>>, vector<1x1x16x128xbf16>
    %232 = vector.shape_cast %231 : vector<1x1x16x128xbf16> to vector<16x128xbf16>
    %233 = vector.shape_cast %230 : vector<16x128xbf16> to vector<1x1x16x128xbf16>
    tpu.vector_store %arg10[%c0_147, %c13, %c0_148, %c0_149], %233 {strides = array<i32>} : memref<1x16x16x128xbf16, #tpu.memory_space<vmem>>, vector<1x1x16x128xbf16>,
    %234 = vector.extract_strided_slice %100 {offsets = [336, 0], sizes = [16, 128], strides = [1, 1]} : vector<384x128xf32> to vector<16x128xf32>
    %235 = vector.extract_strided_slice %107 {offsets = [224, 0], sizes = [16, 128], strides = [1, 1]} : vector<256x128xf32> to vector<16x128xf32>
    %236 = arith.addf %234, %235 : vector<16x128xf32>
    %cst_150 = arith.constant 0.000000e+00 : f32
    %237 = vector.broadcast %cst_150 : f32 to vector<16x128xf32>
    %238 = arith.maximumf %236, %237 : vector<16x128xf32>
    %239 = arith.truncf %238 : vector<16x128xf32> to vector<16x128xbf16>
    %c0_151 = arith.constant 0 : index
    %c14 = arith.constant 14 : index
    %c0_152 = arith.constant 0 : index
    %c0_153 = arith.constant 0 : index
    %240 = vector.load %arg10[%c0_151, %c14, %c0_152, %c0_153] : memref<1x16x16x128xbf16, #tpu.memory_space<vmem>>, vector<1x1x16x128xbf16>
    %241 = vector.shape_cast %240 : vector<1x1x16x128xbf16> to vector<16x128xbf16>
    %242 = vector.shape_cast %239 : vector<16x128xbf16> to vector<1x1x16x128xbf16>
    tpu.vector_store %arg10[%c0_151, %c14, %c0_152, %c0_153], %242 {strides = array<i32>} : memref<1x16x16x128xbf16, #tpu.memory_space<vmem>>, vector<1x1x16x128xbf16>,
    %243 = vector.extract_strided_slice %100 {offsets = [360, 0], sizes = [16, 128], strides = [1, 1]} : vector<384x128xf32> to vector<16x128xf32>
    %244 = vector.extract_strided_slice %107 {offsets = [240, 0], sizes = [16, 128], strides = [1, 1]} : vector<256x128xf32> to vector<16x128xf32>
    %245 = arith.addf %243, %244 : vector<16x128xf32>
    %cst_154 = arith.constant 0.000000e+00 : f32
    %246 = vector.broadcast %cst_154 : f32 to vector<16x128xf32>
    %247 = arith.maximumf %245, %246 : vector<16x128xf32>
    %248 = arith.truncf %247 : vector<16x128xf32> to vector<16x128xbf16>
    %c0_155 = arith.constant 0 : index
    %c15 = arith.constant 15 : index
    %c0_156 = arith.constant 0 : index
    %c0_157 = arith.constant 0 : index
    %249 = vector.load %arg10[%c0_155, %c15, %c0_156, %c0_157] : memref<1x16x16x128xbf16, #tpu.memory_space<vmem>>, vector<1x1x16x128xbf16>
    %250 = vector.shape_cast %249 : vector<1x1x16x128xbf16> to vector<16x128xbf16>
    %251 = vector.shape_cast %248 : vector<16x128xbf16> to vector<1x1x16x128xbf16>
    tpu.vector_store %arg10[%c0_155, %c15, %c0_156, %c0_157], %251 {strides = array<i32>} : memref<1x16x16x128xbf16, #tpu.memory_space<vmem>>, vector<1x1x16x128xbf16>,
    return
  }
  func.func @transform_0(%arg0: i32) -> (i32, i32, i32) {
    %c0_i32 = arith.constant 0 : i32
    %c0_i32_0 = arith.constant 0 : i32
    %c0_i32_1 = arith.constant 0 : i32
    return %arg0, %c0_i32, %c0_i32_0 : i32, i32, i32
  }
  func.func @transform_1(%arg0: i32) -> (i32, i32) {
    %c0_i32 = arith.constant 0 : i32
    %c0_i32_0 = arith.constant 0 : i32
    %c0_i32_1 = arith.constant 0 : i32
    return %c0_i32, %c0_i32_0 : i32, i32
  }
  func.func @transform_2(%arg0: i32) -> (i32, i32) {
    %c0_i32 = arith.constant 0 : i32
    %c0_i32_0 = arith.constant 0 : i32
    %c0_i32_1 = arith.constant 0 : i32
    return %c0_i32, %c0_i32_0 : i32, i32
  }
  func.func @transform_3(%arg0: i32) -> (i32, i32, i32) {
    %c0_i32 = arith.constant 0 : i32
    %c0_i32_0 = arith.constant 0 : i32
    %c0_i32_1 = arith.constant 0 : i32
    %c0_i32_2 = arith.constant 0 : i32
    return %c0_i32, %c0_i32_0, %c0_i32_1 : i32, i32, i32
  }
  func.func @transform_4(%arg0: i32) -> (i32, i32) {
    %c0_i32 = arith.constant 0 : i32
    %c0_i32_0 = arith.constant 0 : i32
    %c0_i32_1 = arith.constant 0 : i32
    return %c0_i32, %c0_i32_0 : i32, i32
  }
  func.func @transform_5(%arg0: i32) -> (i32, i32) {
    %c0_i32 = arith.constant 0 : i32
    %c0_i32_0 = arith.constant 0 : i32
    %c0_i32_1 = arith.constant 0 : i32
    return %c0_i32, %c0_i32_0 : i32, i32
  }
  func.func @transform_6(%arg0: i32) -> (i32, i32) {
    %c0_i32 = arith.constant 0 : i32
    %c0_i32_0 = arith.constant 0 : i32
    %c0_i32_1 = arith.constant 0 : i32
    return %c0_i32, %c0_i32_0 : i32, i32
  }
  func.func @transform_7(%arg0: i32) -> (i32, i32) {
    %c0_i32 = arith.constant 0 : i32
    %c0_i32_0 = arith.constant 0 : i32
    %c0_i32_1 = arith.constant 0 : i32
    return %c0_i32, %c0_i32_0 : i32, i32
  }
  func.func @transform_8(%arg0: i32) -> (i32, i32) {
    %c0_i32 = arith.constant 0 : i32
    %c0_i32_0 = arith.constant 0 : i32
    %c0_i32_1 = arith.constant 0 : i32
    return %c0_i32, %c0_i32_0 : i32, i32
  }
  func.func @transform_9(%arg0: i32) -> (i32, i32, i32, i32) {
    %c0_i32 = arith.constant 0 : i32
    %c0_i32_0 = arith.constant 0 : i32
    %c0_i32_1 = arith.constant 0 : i32
    %c0_i32_2 = arith.constant 0 : i32
    return %arg0, %c0_i32, %c0_i32_0, %c0_i32_1 : i32, i32, i32, i32
  }
}

</mosaic_0001>

<bundles_post_ra>
// kernel: bottleneck_forward.1
= control target key start
LH: loop header
LB: loop body
LE: loop exit
PB: predicated region body
PF: predicated region fallthrough
CT: control target
= control target key end

     0   :  { %s8348_s30 = smov 0   ;;  %s10272_s0 = inlined_call_operand.vmem [shape: bf16[2,256,64], index: 0, kind: input, shape index: {}]   ;;  %s10273_s1 = inlined_call_operand.vmem [shape: bf16[64,32], index: 1, kind: input, shape index: {}]   ;;  %s10274_s2 = inlined_call_operand.vmem [shape: f32[1,32], index: 2, kind: input, shape index: {}]   ;;  %s10275_s3 = inlined_call_operand.vmem [shape: bf16[9,32,32], index: 3, kind: input, shape index: {}]   ;;  %s10276_s4 = inlined_call_operand.vmem [shape: f32[1,32], index: 4, kind: input, shape index: {}]   ;;  %s10277_s5 = inlined_call_operand.vmem [shape: bf16[32,128], index: 5, kind: input, shape index: {}]   ;;  %s10278_s6 = inlined_call_operand.vmem [shape: f32[1,128], index: 6, kind: input, shape index: {}]   ;;  %s10279_s7 = inlined_call_operand.vmem [shape: bf16[64,128], index: 7, kind: input, shape index: {}]   ;;  %s10280_s8 = inlined_call_operand.vmem [shape: f32[1,128], index: 8, kind: input, shape index: {}]   ;;  %s10281_s9 = inlined_call_operand.vmem [shape: bf16[2,16,16,128], index: 9, kind: output, shape index: {}]  }
   0x1 LB: > { %s6359_s10 = sadd.s32 4294967295, %s8295_s30   ;;  %p6363_p0 = scmp.ge.s32.totalorder %s8295_s30, 1  ;;  %s8295_s30 = sphi %s8348_s30, %s19_s30  }
   0x2   : > { %p287_p1 = scmp.lt.s32.totalorder %s8295_s30, 3 }
   0x4   : > { %p288_p2 = pnand %p6363_p0, %p287_p1 }
   0x6   : > { %291 = sbr.rel (%p288_p2) target bundleno = 1339 (0x53b), region = 56 }
   0xd   : > { %v8226_v0 = vld [vmem:[%s10273_s1] sm:$0xff]   ;;  %p323_p3 = scmp.lt.s32.totalorder %s6359_s10, 1  ;;  %v8227_v1 = vld [vmem:[%s10273_s1 + $0x8] sm:$0xff]   ;;  %vm514_vm0 = vcmask 523264   ;;  %v8228_v2 = vld [vmem:[%s10273_s1 + $0x10] sm:$0xff]   ;;  %vm334_vm1 = vcmask 261120  }
   0xe   : > { %7229 = vmatprep.subr.bf16.mxu0 %v8226_v0  ;;  %v8229_v4 = vld [vmem:[%s10273_s1 + $0x18] sm:$0xff]   ;;  %v8297_v20 = vmov 0   ;;  %v8246_v21 = vld [vmem:[%s10275_s3 + $0x10] sm:$0xff]   ;;  %vm884_vm2 = vcmask 1043456   ;;  %v8464_v30 = vld [vmem:[%s10275_s3 + $0x40] sm:$0xff]   ;;  %vm776_vm3 = vcmask 261124  }
   0xf   : > { %s10566_s10 = smov (!%p323_p3, %s6359_s10), 1  ;;  %7230 = vmatpush3.bf16.msra.mxu0 %v8226_v0  ;;  %338 = vst.msk [vmem:[#allocation2 + $0x18] sm:$0xff] %vm334_vm1, %v8297_v20  ;;  %339 = vst.msk [vmem:[#allocation2 + $0x20] sm:$0xff] %vm334_vm1, %v8297_v20  ;;  %v8247_v22 = vld [vmem:[%s10275_s3 + $0x18] sm:$0xff]   ;;  %v8454_v28 = vld [vmem:[%s10275_s3 + $0x30] sm:$0xff]   ;;  %vm778_vm4 = vcmask 257024  }
  0x10   : > { %7231 = vmatprep.subr.bf16.mxu0 %v8227_v1  ;;  %s6800_s17 = sshll.u32 %s10566_s10, 7  ;;  %335 = vst.msk [vmem:[#allocation2] sm:$0xff] %vm334_vm1, %v8297_v20  ;;  %336 = vst.msk [vmem:[#allocation2 + $0x8] sm:$0xff] %vm334_vm1, %v8297_v20  ;;  %7829 = vmatprep.subr.bf16.mxu1 %v8454_v28  ;;  %v8249_v29 = vld [vmem:[%s10275_s3 + $0x38] sm:$0xff]   ;;  %v8470_v31 = vld [vmem:[%s10275_s3] sm:$0xff]  }
  0x11   : > { %s8373_s20 = scalar_lea.vmem %s10272_s0, %s6800_s17  ;;  %337 = vst.msk [vmem:[#allocation2 + $0x10] sm:$0xff] %vm334_vm1, %v8297_v20  ;;  %340 = vst.msk [vmem:[#allocation2 + $0x28] sm:$0xff] %vm334_vm1, %v8297_v20  ;;  %7831 = vmatpush3.bf16.msra.mxu1 %v8454_v28  ;;  %v8476_v32 = vld [vmem:[%s10274_s2] ss:$0 sm:$0xff]  ;;  %vm2280_vm5 = vsmask.f32 256  ;;  %s10168_s14 = scalar_lea.vmem %s10281_s9, %s6800_s17 }
  0x12   : > { %v8230_v3 = vld [vmem:[%s8373_s20] sm:$0xff]   ;;  %v8231_v5 = vld [vmem:[%s8373_s20 + $0x8] sm:$0xff]   ;;  %v8232_v6 = vld [vmem:[%s8373_s20 + $0x10] sm:$0xff]   ;;  %341 = vst.msk [vmem:[#allocation2 + $0x30] sm:$0xff] %vm334_vm1, %v8297_v20  ;;  %7830 = vmatprep.subr.bf16.mxu1 %v8249_v29  ;;  %vm1243_vm6 = vsmask.f32 4352 }
  0x13   : > { %7232 = vmatpush3.bf16.msra.mxu0 %v8227_v1  ;;  %7237 = vmatprep.mubr.msk.bf16.mxu0 %vm514_vm0, %v8230_v3  ;;  %v8233_v7 = vld [vmem:[%s8373_s20 + $0x18] sm:$0xff]   ;;  %v8234_v8 = vld [vmem:[%s8373_s20 + $0x20] sm:$0xff]   ;;  %v8235_v9 = vld [vmem:[%s8373_s20 + $0x28] sm:$0xff]   ;;  %342 = vst.msk [vmem:[#allocation2 + $0x38] sm:$0xff] %vm334_vm1, %v8297_v20  ;;  %vm3202_vm7 = vsmask.f32 7424 }
  0x14   : > { %7233 = vmatprep.subr.bf16.mxu0 %v8228_v2  ;;  %v8236_v10 = vld [vmem:[%s8373_s20 + $0x30] sm:$0xff]   ;;  %v8237_v11 = vld [vmem:[%s8373_s20 + $0x38] sm:$0xff]   ;;  %v8238_v12 = vld [vmem:[%s8373_s20 + $0x40] sm:$0xff]   ;;  %343 = vst.msk [vmem:[#allocation2 + $0x40] sm:$0xff] %vm334_vm1, %v8297_v20  ;;  %vm1783_vm8 = vsmask.f32 3328 }
  0x15   : > { %v8239_v13 = vld [vmem:[%s8373_s20 + $0x48] sm:$0xff]   ;;  %v8240_v14 = vld [vmem:[%s8373_s20 + $0x50] sm:$0xff]   ;;  %v8241_v15 = vld [vmem:[%s8373_s20 + $0x58] sm:$0xff]   ;;  %344 = vst.msk [vmem:[#allocation2 + $0x48] sm:$0xff] %vm334_vm1, %v8297_v20  ;;  %7832 = vmatpush3.bf16.msra.mxu1 %v8249_v29 }
  0x16   : > { %v8242_v16 = vld [vmem:[%s8373_s20 + $0x60] sm:$0xff]   ;;  %v8243_v17 = vld [vmem:[%s8373_s20 + $0x68] sm:$0xff]   ;;  %v8244_v18 = vld [vmem:[%s8373_s20 + $0x70] sm:$0xff]   ;;  %345 = vst.msk [vmem:[#allocation2 + $0x50] sm:$0xff] %vm334_vm1, %v8297_v20  ;;  %7477 = vmatprep.subr.bf16.mxu1 %v8464_v30 }
  0x17   : > { %7234 = vmatpush3.bf16.msra.mxu0 %v8228_v2  ;;  %v8245_v19 = vld [vmem:[%s8373_s20 + $0x78] sm:$0xff]   ;;  %346 = vst.msk [vmem:[#allocation2 + $0x58] sm:$0xff] %vm334_vm1, %v8297_v20  ;;  %347 = vst.msk [vmem:[#allocation2 + $0x60] sm:$0xff] %vm334_vm1, %v8297_v20  ;;  %v8444_v23 = vld [vmem:[#allocation2 + $0x8] sm:$0xff] }
  0x18   : > { %7235 = vmatprep.subr.bf16.mxu0 %v8229_v4  ;;  %348 = vst.msk [vmem:[#allocation2 + $0x68] sm:$0xff] %vm334_vm1, %v8297_v20  ;;  %349 = vst.msk [vmem:[#allocation2 + $0x70] sm:$0xff] %vm334_vm1, %v8297_v20  ;;  %v853_v24 = vld [vmem:[#allocation2] sm:$0xf0]  ;;  %v886_v26 = vrot.slane %v8444_v23, 4 }
  0x19   : > { %350 = vst.msk [vmem:[#allocation2 + $0x78] sm:$0xff] %vm334_vm1, %v8297_v20  ;;  %351 = vst.msk [vmem:[#allocation2 + $0x80] sm:$0xff] %vm334_vm1, %v8297_v20  ;;  %v885_v25 = vrot.slane %v853_v24, 4 }
  0x1a   : > { %352 = vst.msk [vmem:[#allocation2 + $0x88] sm:$0xff] %vm334_vm1, %v8297_v20  ;;  %353 = vst.msk [vmem:[#allocation2 + $0x90] sm:$0xff] %vm334_vm1, %v8297_v20 }
  0x1b   : > { %7236 = vmatpush3.bf16.msra.mxu0 %v8229_v4  ;;  %354 = vst.msk [vmem:[#allocation2 + $0x98] sm:$0xff] %vm334_vm1, %v8297_v20  ;;  %355 = vst.msk [vmem:[#allocation2 + $0xa0] sm:$0xff] %vm334_vm1, %v8297_v20  ;;  %v887_v27 = vsel %vm884_vm2, %v885_v25, %v886_v26 }
  0x1c   : > { %356 = vst.msk [vmem:[#allocation2 + $0xa8] sm:$0xff] %vm334_vm1, %v8297_v20  ;;  %357 = vst.msk [vmem:[#allocation2 + $0xb0] sm:$0xff] %vm334_vm1, %v8297_v20  ;;  %7269 = vmatprep.subr.bf16.mxu0 %v8246_v21 }
  0x1d   : > { %358 = vst.msk [vmem:[#allocation2 + $0xb8] sm:$0xff] %vm334_vm1, %v8297_v20  ;;  %359 = vst.msk [vmem:[#allocation2 + $0xc0] sm:$0xff] %vm334_vm1, %v8297_v20 }
  0x1e   : > { %7238 = vmatmul.mubr.msk.bf16.vlgmr.msra.gmra.mrb[0].mxu0 %vm514_vm0, %v8231_v5  ;;  %360 = vst.msk [vmem:[#allocation2 + $0xc8] sm:$0xff] %vm334_vm1, %v8297_v20  ;;  %361 = vst.msk [vmem:[#allocation2 + $0xd0] sm:$0xff] %vm334_vm1, %v8297_v20 }
  0x1f   : > { %7241 = vmatprep.mubr.msk.bf16.mxu0 %vm514_vm0, %v8232_v6  ;;  %362 = vst.msk [vmem:[#allocation2 + $0xd8] sm:$0xff] %vm334_vm1, %v8297_v20  ;;  %7270 = vmatpush3.bf16.msra.mxu0 %v8246_v21 }
  0x20   : > { %7271 = vmatprep.subr.bf16.mxu0 %v8247_v22 }
  0x23   : > { %7272 = vmatpush3.bf16.msra.mxu0 %v8247_v22 }
  0x24   : > { %7321 = vmatprep.subr.bf16.mxu0 %v8470_v31 }
  0x26   : > { %7242 = vmatmul.mubr.msk.bf16.gmra.mrb[4].mxu0 %vm514_vm0, %v8233_v7 }
  0x27   : > { %7245 = vmatprep.mubr.msk.bf16.mxu0 %vm514_vm0, %v8234_v8 }
  0x2e   : > { %7246 = vmatmul.mubr.msk.bf16.gmra.mrb[8].mxu0 %vm514_vm0, %v8235_v9 }
  0x2f   : > { %7249 = vmatprep.mubr.msk.bf16.mxu0 %vm514_vm0, %v8236_v10  ;;  %v8253_v10 = vld [vmem:[%s10275_s3 + $0x8] sm:$0xff]  }
  0x36   : > { %7250 = vmatmul.mubr.msk.bf16.gmra.mrb[12].mxu0 %vm514_vm0, %v8237_v11 }
  0x37   : > { %7253 = vmatprep.mubr.msk.bf16.mxu0 %vm514_vm0, %v8238_v12 }
  0x3e   : > { %7254 = vmatmul.mubr.msk.bf16.gmra.mrb[16].mxu0 %vm514_vm0, %v8239_v13 }
  0x3f   : > { %7257 = vmatprep.mubr.msk.bf16.mxu0 %vm514_vm0, %v8240_v14 }
  0x46   : > { %7258 = vmatmul.mubr.msk.bf16.gmra.mrb[20].mxu0 %vm514_vm0, %v8241_v15 }
  0x47   : > { %7261 = vmatprep.mubr.msk.bf16.mxu0 %vm514_vm0, %v8242_v16 }
  0x4e   : > { %7262 = vmatmul.mubr.msk.bf16.gmra.mrb[24].mxu0 %vm514_vm0, %v8243_v17 }
  0x4f   : > { %7265 = vmatprep.mubr.msk.bf16.mxu0 %vm514_vm0, %v8244_v18 }
  0x56   : > { %7266 = vmatmul.mubr.msk.bf16.gmra.mrb[28].mxu0 %vm514_vm0, %v8245_v19 }
  0x57   : > { %7273 = vmatprep.mubr.msk.bf16.mxu0 %vm334_vm1, %v887_v27 }
  0xf1   : > { %v7239_v33 = vpop.f32.mrb[0].mxu0 }
  0xf2   : > { %v606_v34 = vadd.f32 %v7239_v33, %v8476_v32  ;;  %v597_v35 = vpop.f32.mrb[1].mxu0 }
  0xf3   : > { %v598_v36 = vadd.f32 %v8476_v32, %v597_v35  ;;  %v7240_v37 = vpop.f32.mrb[2].mxu0 }
  0xf4   : > { %v609_v38 = vadd.f32 %v7240_v37, %v8476_v32  ;;  %v600_v39 = vpop.f32.mrb[3].mxu0  ;;  %v726_v41 = vmax.f32 %v606_v34, 0.0 }
  0xf5   : > { %v601_v40 = vadd.f32 %v8476_v32, %v600_v39  ;;  %v724_v43 = vmax.f32 %v598_v36, 0.0 }
  0xf6   : > { %v727_v42 = vmax.f32 %v609_v38, 0.0 }
  0xf7   : > { %v725_v44 = vmax.f32 %v601_v40, 0.0 }
  0xf8   : > { %v757_v45 = vpack.c.bf16 %v727_v42, %v726_v41 }
  0xf9   : > { %v756_v46 = vpack.c.bf16 %v725_v44, %v724_v43  ;;  %v7243_v47 = vpop.f32.mrb[4].mxu0 }
  0xfa   : > { %v774_v48 = vrot.slane %v757_v45, 4  ;;  %v622_v49 = vadd.f32 %v7243_v47, %v8476_v32  ;;  %v613_v50 = vpop.f32.mrb[5].mxu0 }
  0xfb   : > { %772 = vst.msk [vmem:[#allocation2 + $0x10] sm:$0xff] %vm334_vm1, %v756_v46  ;;  %v614_v51 = vadd.f32 %v8476_v32, %v613_v50  ;;  %v7244_v52 = vpop.f32.mrb[6].mxu0 }
  0xfc   : > { %777 = vst.msk [vmem:[#allocation2 + $0x18] sm:$0xf0] %vm776_vm3, %v774_v48  ;;  %v625_v53 = vadd.f32 %v7244_v52, %v8476_v32  ;;  %v616_v54 = vpop.f32.mrb[7].mxu0  ;;  %v730_v56 = vmax.f32 %v622_v49, 0.0 }
  0xfd   : > { %779 = vst.msk [vmem:[#allocation2 + $0x20] sm:$0xf] %vm778_vm4, %v774_v48  ;;  %v617_v55 = vadd.f32 %v8476_v32, %v616_v54  ;;  %v728_v58 = vmax.f32 %v614_v51, 0.0 }
  0xfe   : > { %v731_v57 = vmax.f32 %v625_v53, 0.0 }
  0xff   : > { %v729_v59 = vmax.f32 %v617_v55, 0.0 }
 0x100   : > { %v759_v60 = vpack.c.bf16 %v731_v57, %v730_v56 }
 0x101   : > { %v758_v61 = vpack.c.bf16 %v729_v59, %v728_v58  ;;  %v7247_v62 = vpop.f32.mrb[8].mxu0 }
 0x102   : > { %v782_v63 = vrot.slane %v759_v60, 4  ;;  %v638_v0 = vadd.f32 %v7247_v62, %v8476_v32  ;;  %v629_v1 = vpop.f32.mrb[9].mxu0  ;;  %v8490_v2 = vld [vmem:[#allocation2 + $0x10] sm:$0xff] }
 0x103   : > { %780 = vst.msk [vmem:[#allocation2 + $0x28] sm:$0xff] %vm334_vm1, %v758_v61  ;;  %v630_v3 = vadd.f32 %v8476_v32, %v629_v1  ;;  %v7248_v4 = vpop.f32.mrb[10].mxu0  ;;  %v888_v5 = vrot.slane %v8490_v2, 4  ;;  %v8495_v6 = vld [vmem:[#allocation2 + $0x18] sm:$0xff] }
 0x104   : > { %784 = vst.msk [vmem:[#allocation2 + $0x30] sm:$0xf0] %vm776_vm3, %v782_v63  ;;  %v641_v7 = vadd.f32 %v7248_v4, %v8476_v32  ;;  %v632_v8 = vpop.f32.mrb[11].mxu0  ;;  %v890_v9 = vrot.slane %v8495_v6, 4  ;;  %v734_v13 = vmax.f32 %v638_v0, 0.0  ;;  %v8510_v16 = vld [vmem:[#allocation2 + $0x20] sm:$0xff] }
 0x105   : > { %785 = vst.msk [vmem:[#allocation2 + $0x38] sm:$0xf] %vm778_vm4, %v782_v63  ;;  %v633_v11 = vadd.f32 %v8476_v32, %v632_v8  ;;  %v889_v12 = vsel %vm884_vm2, %v886_v26, %v888_v5  ;;  %v732_v17 = vmax.f32 %v630_v3, 0.0  ;;  %v892_v22 = vrot.slane %v8510_v16, 4 }
 0x106   : > { %v735_v14 = vmax.f32 %v641_v7, 0.0  ;;  %7274 = vmatmul.mubr.msk.bf16.vlgmr.msra.gmra.mrb[32].mxu0 %vm334_vm1, %v889_v12  ;;  %v891_v15 = vsel %vm884_vm2, %v888_v5, %v890_v9 }
 0x107   : > { %v733_v18 = vmax.f32 %v633_v11, 0.0  ;;  %7277 = vmatprep.mubr.msk.bf16.mxu0 %vm334_vm1, %v891_v15  ;;  %7322 = vmatpush3.bf16.msra.mxu0 %v8470_v31  ;;  %v893_v40 = vsel %vm884_vm2, %v890_v9, %v892_v22 }
 0x108   : > { %v761_v19 = vpack.c.bf16 %v735_v14, %v734_v13  ;;  %7323 = vmatprep.subr.bf16.mxu0 %v8253_v10 }
 0x109   : > { %v760_v20 = vpack.c.bf16 %v733_v18, %v732_v17  ;;  %v7251_v21 = vpop.f32.mrb[12].mxu0 }
 0x10a   : > { %v788_v24 = vrot.slane %v761_v19, 4  ;;  %v654_v25 = vadd.f32 %v7251_v21, %v8476_v32  ;;  %v645_v26 = vpop.f32.mrb[13].mxu0  ;;  %v8516_v27 = vld [vmem:[#allocation2 + $0x28] sm:$0xff] }
 0x10b   : > { %786 = vst.msk [vmem:[#allocation2 + $0x40] sm:$0xff] %vm334_vm1, %v760_v20  ;;  %v646_v29 = vadd.f32 %v8476_v32, %v645_v26  ;;  %v7252_v33 = vpop.f32.mrb[14].mxu0  ;;  %v894_v34 = vrot.slane %v8516_v27, 4  ;;  %v8521_v31 = vld [vmem:[#allocation2 + $0x30] sm:$0xff]  ;;  %7324 = vmatpush3.bf16.msra.mxu0 %v8253_v10 }
 0x10c   : > { %790 = vst.msk [vmem:[#allocation2 + $0x48] sm:$0xf0] %vm776_vm3, %v788_v24  ;;  %v738_v35 = vmax.f32 %v654_v25, 0.0  ;;  %v657_v36 = vadd.f32 %v7252_v33, %v8476_v32  ;;  %v648_v37 = vpop.f32.mrb[15].mxu0  ;;  %v8526_v38 = vld [vmem:[#allocation2 + $0x38] sm:$0xff]  ;;  %v896_v43 = vrot.slane %v8521_v31, 4 }
 0x10d   : > { %791 = vst.msk [vmem:[#allocation2 + $0x50] sm:$0xf] %vm778_vm4, %v788_v24  ;;  %v649_v39 = vadd.f32 %v8476_v32, %v648_v37  ;;  %v895_v41 = vsel %vm884_vm2, %v892_v22, %v894_v34  ;;  %v736_v44 = vmax.f32 %v646_v29, 0.0  ;;  %v898_v46 = vrot.slane %v8526_v38, 4  ;;  %v8251_v29 = vld [vmem:[%s10275_s3 + $0x48] sm:$0xff]  }
 0x10e   : > { %v739_v42 = vmax.f32 %v657_v36, 0.0  ;;  %7278 = vmatmul.mubr.msk.bf16.gmra.mrb[36].mxu0 %vm334_vm1, %v893_v40  ;;  %v8536_v47 = vshrl.u32 %v8526_v38, 16  ;;  %v897_v54 = vsel %vm884_vm2, %v894_v34, %v896_v43 }
 0x10f   : > { %v737_v45 = vmax.f32 %v649_v39, 0.0  ;;  %7281 = vmatprep.mubr.msk.bf16.mxu0 %vm334_vm1, %v895_v41  ;;  %v899_v58 = vsel %vm884_vm2, %v896_v43, %v898_v46 }
 0x110   : > { %v763_v48 = vpack.c.bf16 %v739_v42, %v738_v35  ;;  %v10282_v59 = vrot.slane %v8536_v47, 7 }
 0x111   : > { %v762_v49 = vpack.c.bf16 %v737_v45, %v736_v44  ;;  %v7255_v50 = vpop.f32.mrb[16].mxu0 }
 0x112   : > { %v794_v51 = vrot.slane %v763_v48, 4  ;;  %v670_v52 = vadd.f32 %v7255_v50, %v8476_v32  ;;  %v661_v53 = vpop.f32.mrb[17].mxu0  ;;  %v8540_v55 = vld [vmem:[#allocation2 + $0x40] sm:$0xff] }
 0x113   : > { %792 = vst.msk [vmem:[#allocation2 + $0x58] sm:$0xff] %vm334_vm1, %v762_v49  ;;  %v662_v56 = vadd.f32 %v8476_v32, %v661_v53  ;;  %v7256_v57 = vpop.f32.mrb[18].mxu0  ;;  %v8547_v60 = vshrl.u32 %v8540_v55, 16  ;;  %v8549_v61 = vld [vmem:[#allocation2 + $0x48] sm:$0xff]  ;;  %v8557_v3 = vshll.u32 %v8540_v55, 16  ;;  %v900_v13 = vrot.slane %v8540_v55, 4 }
 0x114   : > { %v8551_v62 = vld [vmem:[#allocation2 + $0x50] sm:$0xff]  ;;  %796 = vst.msk [vmem:[#allocation2 + $0x60] sm:$0xf0] %vm776_vm3, %v794_v51  ;;  %v742_v63 = vmax.f32 %v670_v52, 0.0  ;;  %v673_v0 = vadd.f32 %v7256_v57, %v8476_v32  ;;  %v664_v1 = vpop.f32.mrb[19].mxu0  ;;  %v8560_v4 = vshrl.u32 %v8549_v61, 16 }
 0x115   : > { %797 = vst.msk [vmem:[#allocation2 + $0x68] sm:$0xf] %vm778_vm4, %v794_v51  ;;  %v740_v5 = vmax.f32 %v662_v56, 0.0  ;;  %v665_v7 = vadd.f32 %v8476_v32, %v664_v1  ;;  %v2336_v8 = vrot.slane %v8547_v60, 7  ;;  %v8565_v9 = vshrl.u32 %v8551_v62, 16 }
 0x116   : > { %v743_v10 = vmax.f32 %v673_v0, 0.0  ;;  %7282 = vmatmul.mubr.msk.bf16.gmra.mrb[40].mxu0 %vm334_vm1, %v897_v54  ;;  %v2344_v11 = vrot.slane %v8560_v4, 7  ;;  %v8570_v12 = vshll.u32 %v8549_v61, 16  ;;  %v8577_v18 = vshll.u32 %v8551_v62, 16 }
 0x117   : > { %v741_v14 = vmax.f32 %v665_v7, 0.0  ;;  %7285 = vmatprep.mubr.msk.bf16.mxu0 %vm334_vm1, %v899_v58  ;;  %v2339_v15 = vor.u32 %v8557_v3, %v2336_v8  ;;  %v2352_v17 = vrot.slane %v8565_v9, 7  ;;  %v902_v21 = vrot.slane %v8549_v61, 4 }
 0x118   : > { %v765_v19 = vpack.c.bf16 %v743_v10, %v742_v63  ;;  %v2347_v20 = vor.u32 %v8570_v12, %v2344_v11  ;;  %v901_v42 = vsel %vm884_vm2, %v898_v46, %v900_v13  ;;  %v904_v10 = vrot.slane %v8551_v62, 4 }
 0x119   : > { %v764_v22 = vpack.c.bf16 %v741_v14, %v740_v5  ;;  %v7259_v24 = vpop.f32.mrb[20].mxu0  ;;  %v2340_v25 = vsel %vm2280_vm5, %v10282_v59, %v2339_v15  ;;  %v2355_v26 = vor.u32 %v8577_v18, %v2352_v17  ;;  %v903_v46 = vsel %vm884_vm2, %v900_v13, %v902_v21 }
 0x11a   : > { %v800_v33 = vrot.slane %v765_v19, 4  ;;  %v686_v34 = vadd.f32 %v7259_v24, %v8476_v32  ;;  %v677_v35 = vpop.f32.mrb[21].mxu0  ;;  %7441 = vmatprep.mubr.msk.bf16.mxu1 %vm334_vm1, %v2340_v25  ;;  %v2348_v36 = vsel %vm2280_vm5, %v2336_v8, %v2347_v20  ;;  %v8591_v37 = vld [vmem:[#allocation2 + $0x58] sm:$0xff] }
 0x11b   : > { %798 = vst.msk [vmem:[#allocation2 + $0x70] sm:$0xff] %vm334_vm1, %v764_v22  ;;  %v678_v39 = vadd.f32 %v8476_v32, %v677_v35  ;;  %v7260_v40 = vpop.f32.mrb[22].mxu0  ;;  %7442 = vmatmul.mubr.msk.bf16.vlgmr.msra.gmra.mrb[0].mxu1 %vm334_vm1, %v2348_v36  ;;  %v2356_v41 = vsel %vm2280_vm5, %v2344_v11, %v2355_v26  ;;  %v8599_v43 = vshrl.u32 %v8591_v37, 16  ;;  %v8601_v44 = vld [vmem:[#allocation2 + $0x60] sm:$0xff]  ;;  %v8619_v56 = vshll.u32 %v8591_v37, 16 }
 0x11c   : > { %v8603_v45 = vld [vmem:[#allocation2 + $0x68] sm:$0xff]  ;;  %802 = vst.msk [vmem:[#allocation2 + $0x78] sm:$0xf0] %vm776_vm3, %v800_v33  ;;  %v746_v48 = vmax.f32 %v686_v34, 0.0  ;;  %v689_v49 = vadd.f32 %v7260_v40, %v8476_v32  ;;  %7478 = vmatpush3.bf16.msra.mxu1 %v8464_v30  ;;  %v680_v50 = vpop.f32.mrb[23].mxu0  ;;  %7445 = vmatprep.mubr.msk.bf16.mxu1 %vm334_vm1, %v2356_v41  ;;  %v8614_v51 = vshrl.u32 %v8601_v44, 16  ;;  %v905_v41 = vsel %vm884_vm2, %v902_v21, %v904_v10 }
 0x11d   : > { %803 = vst.msk [vmem:[#allocation2 + $0x80] sm:$0xf] %vm778_vm4, %v800_v33  ;;  %v744_v52 = vmax.f32 %v678_v39, 0.0  ;;  %v681_v53 = vadd.f32 %v8476_v32, %v680_v50  ;;  %v2360_v54 = vrot.slane %v8599_v43, 7  ;;  %7479 = vmatprep.subr.bf16.mxu1 %v8251_v29  ;;  %v8624_v30 = vld [vmem:[%s10275_s3 + $0x50] sm:$0xff]   ;;  %v8629_v63 = vshll.u32 %v8601_v44, 16 }
 0x11e   : > { %v747_v57 = vmax.f32 %v689_v49, 0.0  ;;  %7286 = vmatmul.mubr.msk.bf16.gmra.mrb[44].mxu0 %vm334_vm1, %v901_v42  ;;  %v2368_v58 = vrot.slane %v8614_v51, 7  ;;  %v8632_v0 = vshrl.u32 %v8603_v45, 16  ;;  %v906_v19 = vrot.slane %v8591_v37, 4 }
 0x11f   : > { %v745_v1 = vmax.f32 %v681_v53, 0.0  ;;  %7289 = vmatprep.mubr.msk.bf16.mxu0 %vm334_vm1, %v903_v46  ;;  %v2363_v5 = vor.u32 %v8619_v56, %v2360_v54  ;;  %v8645_v26 = vshll.u32 %v8603_v45, 16 }
 0x120   : > { %v767_v7 = vpack.c.bf16 %v747_v57, %v746_v48  ;;  %v2371_v8 = vor.u32 %v8629_v63, %v2368_v58  ;;  %v2376_v11 = vrot.slane %v8632_v0, 7  ;;  %7480 = vmatpush3.bf16.msra.mxu1 %v8251_v29 }
 0x121   : > { %v766_v13 = vpack.c.bf16 %v745_v1, %v744_v52  ;;  %v7263_v14 = vpop.f32.mrb[24].mxu0  ;;  %v2364_v15 = vsel %vm2280_vm5, %v2352_v17, %v2363_v5  ;;  %7529 = vmatprep.subr.bf16.mxu1 %v8624_v30 }
 0x122   : > { %v806_v20 = vrot.slane %v767_v7, 4  ;;  %v702_v22 = vadd.f32 %v7263_v14, %v8476_v32  ;;  %v693_v24 = vpop.f32.mrb[25].mxu0  ;;  %v2372_v25 = vsel %vm2280_vm5, %v2360_v54, %v2371_v8  ;;  %v8647_v33 = vld [vmem:[#allocation2 + $0x70] sm:$0xff]  ;;  %v2379_v42 = vor.u32 %v8645_v26, %v2376_v11 }
 0x123   : > { %804 = vst.msk [vmem:[#allocation2 + $0x88] sm:$0xff] %vm334_vm1, %v766_v13  ;;  %v694_v29 = vadd.f32 %v8476_v32, %v693_v24  ;;  %v7264_v17 = vpop.f32.mrb[26].mxu0  ;;  %7446 = vmatmul.mubr.msk.bf16.gmra.mrb[4].mxu1 %vm334_vm1, %v2364_v15  ;;  %v8653_v34 = vshrl.u32 %v8647_v33, 16  ;;  %v8655_v35 = vld [vmem:[#allocation2 + $0x78] sm:$0xff]  ;;  %v8670_v52 = vshll.u32 %v8647_v33, 16  ;;  %v907_v54 = vsel %vm884_vm2, %v904_v10, %v906_v19 }
 0x124   : > { %808 = vst.msk [vmem:[#allocation2 + $0x90] sm:$0xf0] %vm776_vm3, %v806_v20  ;;  %v750_v36 = vmax.f32 %v702_v22, 0.0  ;;  %v705_v39 = vadd.f32 %v7264_v17, %v8476_v32  ;;  %v696_v40 = vpop.f32.mrb[27].mxu0  ;;  %7449 = vmatprep.mubr.msk.bf16.mxu1 %vm334_vm1, %v2372_v25  ;;  %v8665_v48 = vld [vmem:[#allocation2 + $0x80] sm:$0xff]  ;;  %v8675_v57 = vshrl.u32 %v8655_v35, 16  ;;  %v2380_v13 = vsel %vm2280_vm5, %v2368_v58, %v2379_v42 }
 0x125   : > { %10371 = vst [vmem:[#allocation3_spill] sm:$0xff] %v8653_v34  ;;  %809 = vst.msk [vmem:[#allocation2 + $0x98] sm:$0xf] %vm778_vm4, %v806_v20  ;;  %v748_v49 = vmax.f32 %v694_v29, 0.0  ;;  %v697_v50 = vadd.f32 %v8476_v32, %v696_v40  ;;  %v2384_v46 = vrot.slane %v8653_v34, 7  ;;  %v8680_v5 = vshrl.u32 %v8665_v48, 16 }
 0x126   : > { %10372 = vst [vmem:[#allocation4_spill] sm:$0xff] %v8670_v52  ;;  %v751_v53 = vmax.f32 %v705_v39, 0.0  ;;  %7290 = vmatmul.mubr.msk.bf16.gmra.mrb[48].mxu0 %vm334_vm1, %v905_v41  ;;  %10373 = vst [vmem:[#allocation5_spill] sm:$0xff] %v8675_v57  ;;  %v908_v15 = vrot.slane %v8601_v44, 4  ;;  %v910_v10 = vrot.slane %v8603_v45, 4  ;;  %v2392_v25 = vrot.slane %v8675_v57, 7 }
 0x127   : > { %v749_v21 = vmax.f32 %v697_v50, 0.0  ;;  %7293 = vmatprep.mubr.msk.bf16.mxu0 %vm334_vm1, %v907_v54  ;;  %v2387_v1 = vor.u32 %v8670_v52, %v2384_v46  ;;  %10374 = vst [vmem:[#allocation6_spill] sm:$0xff] %v8680_v5  ;;  %v8688_v29 = vshll.u32 %v8655_v35, 16  ;;  %v2400_v39 = vrot.slane %v8680_v5, 7 }
 0x128   : > { %v769_v7 = vpack.c.bf16 %v751_v53, %v750_v36  ;;  %v8696_v40 = vshll.u32 %v8665_v48, 16  ;;  %v909_v53 = vsel %vm884_vm2, %v906_v19, %v908_v15 }
 0x129   : > { %v768_v8 = vpack.c.bf16 %v749_v21, %v748_v49  ;;  %v7267_v14 = vpop.f32.mrb[28].mxu0  ;;  %10375 = vst [vmem:[#allocation7_spill] sm:$0xff] %v8688_v29  ;;  %v2388_v58 = vsel %vm2280_vm5, %v2376_v11, %v2387_v1  ;;  %v911_v1 = vsel %vm884_vm2, %v908_v15, %v910_v10 }
 0x12a   : > { %v812_v20 = vrot.slane %v769_v7, 4  ;;  %v718_v22 = vadd.f32 %v7267_v14, %v8476_v32  ;;  %v709_v24 = vpop.f32.mrb[29].mxu0  ;;  %10376 = vst [vmem:[#allocation8_spill] sm:$0xff] %v8696_v40  ;;  %v8698_v41 = vld [vmem:[#allocation2 + $0x88] sm:$0xff] }
 0x12b   : > { %810 = vst.msk [vmem:[#allocation2 + $0xa0] sm:$0xff] %vm334_vm1, %v768_v8  ;;  %7450 = vmatmul.mubr.msk.bf16.gmra.mrb[8].mxu1 %vm334_vm1, %v2380_v13  ;;  %v710_v17 = vadd.f32 %v8476_v32, %v709_v24  ;;  %v7268_v36 = vpop.f32.mrb[30].mxu0  ;;  %v8704_v50 = vld [vmem:[#allocation2 + $0x90] sm:$0xff]  ;;  %v2395_v8 = vor.u32 %v8688_v29, %v2392_v25  ;;  %v8712_v13 = vshrl.u32 %v8698_v41, 16  ;;  %v912_v24 = vrot.slane %v8647_v33, 4 }
 0x12c   : > { %814 = vst.msk [vmem:[#allocation2 + $0xa8] sm:$0xf0] %vm776_vm3, %v812_v20  ;;  %7453 = vmatprep.mubr.msk.bf16.mxu1 %vm334_vm1, %v2388_v58  ;;  %v754_v42 = vmax.f32 %v718_v22, 0.0  ;;  %v721_v49 = vadd.f32 %v7268_v36, %v8476_v32  ;;  %v712_v11 = vpop.f32.mrb[31].mxu0  ;;  %v8717_v19 = vshrl.u32 %v8704_v50, 16 }
 0x12d   : > { %815 = vst.msk [vmem:[#allocation2 + $0xb0] sm:$0xf] %vm778_vm4, %v812_v20  ;;  %v752_v54 = vmax.f32 %v710_v17, 0.0  ;;  %v713_v21 = vadd.f32 %v8476_v32, %v712_v11  ;;  %10377 = vst [vmem:[#allocation9_spill] sm:$0xff] %v8712_v13  ;;  %v2403_v20 = vor.u32 %v8696_v40, %v2400_v39  ;;  %v2396_v15 = vsel %vm2280_vm5, %v2384_v46, %v2395_v8 }
 0x12e   : > { %7294 = vmatmul.mubr.msk.bf16.gmra.mrb[52].mxu0 %vm334_vm1, %v909_v53  ;;  %v755_v7 = vmax.f32 %v721_v49, 0.0  ;;  %10378 = vst [vmem:[#allocation10_spill] sm:$0xff] %v8717_v19  ;;  %v914_v17 = vrot.slane %v8655_v35, 4  ;;  %v2408_v36 = vrot.slane %v8712_v13, 7  ;;  %v2416_v11 = vrot.slane %v8717_v19, 7  ;;  %v8730_v53 = vld [vmem:[#allocation2 + $0x98] sm:$0xff] }
 0x12f   : > { %7297 = vmatprep.mubr.msk.bf16.mxu0 %vm334_vm1, %v911_v1  ;;  %v753_v14 = vmax.f32 %v713_v21, 0.0  ;;  %v2404_v49 = vsel %vm2280_vm5, %v2392_v25, %v2403_v20  ;;  %10380 = vst [vmem:[#allocation12_spill] sm:$0xff] %v8730_v53  ;;  %v8736_v46 = vshll.u32 %v8698_v41, 16  ;;  %v913_v25 = vsel %vm884_vm2, %v910_v10, %v912_v24 }
 0x130   : > { %v771_v22 = vpack.c.bf16 %v755_v7, %v754_v42  ;;  %v8728_v42 = vshll.u32 %v8704_v50, 16  ;;  %v915_v21 = vsel %vm884_vm2, %v912_v24, %v914_v17  ;;  %v8745_v7 = vshrl.u32 %v8730_v53, 16 }
 0x131   : > { %v770_v32 = vpack.c.bf16 %v753_v14, %v752_v54  ;;  %10381 = vst [vmem:[#allocation13_spill] sm:$0xff] %v8736_v46  ;;  %v2411_v1 = vor.u32 %v8736_v46, %v2408_v36  ;;  %v916_v20 = vrot.slane %v8665_v48, 4  ;;  %v8757_v24 = vshll.u32 %v8730_v53, 16 }
 0x132   : > { %v818_v58 = vrot.slane %v771_v22, 4  ;;  %10379 = vst [vmem:[#allocation11_spill] sm:$0xff] %v8728_v42  ;;  %v8738_v54 = vld [vmem:[#allocation2 + $0xa0] sm:$0xff]  ;;  %10383 = vst [vmem:[#allocation15_spill] sm:$0xff] %v8745_v7  ;;  %v2419_v8 = vor.u32 %v8728_v42, %v2416_v11  ;;  %v918_v22 = vrot.slane %v8698_v41, 4  ;;  %v922_v59 = vrot.slane %v8730_v53, 4 }
 0x133   : > { %816 = vst.msk [vmem:[#allocation2 + $0xb8] sm:$0xff] %vm334_vm1, %v770_v32  ;;  %7454 = vmatmul.mubr.msk.bf16.gmra.mrb[12].mxu1 %vm334_vm1, %v2396_v15  ;;  %10382 = vst [vmem:[#allocation14_spill] sm:$0xff] %v8738_v54  ;;  %v8750_v14 = vshrl.u32 %v8738_v54, 16  ;;  %v2412_v10 = vsel %vm2280_vm5, %v2400_v39, %v2411_v1  ;;  %v2424_v32 = vrot.slane %v8745_v7, 7  ;;  %v917_v39 = vsel %vm884_vm2, %v914_v17, %v916_v20 }
 0x134   : > { %820 = vst.msk [vmem:[#allocation2 + $0xc0] sm:$0xf0] %vm776_vm3, %v818_v58  ;;  %7457 = vmatprep.mubr.msk.bf16.mxu1 %vm334_vm1, %v2404_v49  ;;  %10385 = vst [vmem:[#allocation17_spill] sm:$0xff] %v8757_v24  ;;  %v8762_v49 = vld [vmem:[#allocation2 + $0xa8] sm:$0xff]  ;;  %v919_v1 = vsel %vm884_vm2, %v916_v20, %v918_v22  ;;  %v920_v20 = vrot.slane %v8704_v50, 4 }
 0x135   : > { %821 = vst.msk [vmem:[#allocation2 + $0xc8] sm:$0xf] %vm778_vm4, %v818_v58  ;;  %10384 = vst [vmem:[#allocation16_spill] sm:$0xff] %v8750_v14  ;;  %v2420_v58 = vsel %vm2280_vm5, %v2408_v36, %v2419_v8  ;;  %v2432_v15 = vrot.slane %v8750_v14, 7  ;;  %v8775_v36 = vshrl.u32 %v8762_v49, 16  ;;  %v8780_v8 = vld [vmem:[%s10275_s3 + $0x20] sm:$0xff]  }
 0x136   : > { %7298 = vmatmul.mubr.msk.bf16.gmra.mrb[56].mxu0 %vm334_vm1, %v913_v25  ;;  %10386 = vst [vmem:[#allocation18_spill] sm:$0xff] %v8762_v49  ;;  %v8765_v25 = vld [vmem:[#allocation2 + $0xb0] sm:$0xff]  ;;  %7373 = vmatprep.subr.bf16.mxu0 %v8780_v8 }
 0x137   : > { %7301 = vmatprep.mubr.msk.bf16.mxu0 %vm334_vm1, %v915_v21  ;;  %10387 = vst [vmem:[#allocation19_spill] sm:$0xff] %v8765_v25  ;;  %v8769_v21 = vshll.u32 %v8738_v54, 16  ;;  %10389 = vst [vmem:[#allocation21_spill] sm:$0xff] %v8775_v36  ;;  %v2440_v14 = vrot.slane %v8775_v36, 7  ;;  %v8799_v7 = vshll.u32 %v8765_v25, 16  ;;  %v923_v36 = vsel %vm884_vm2, %v920_v20, %v922_v59 }
 0x139   : > { %10388 = vst [vmem:[#allocation20_spill] sm:$0xff] %v8769_v21  ;;  %v2435_v17 = vor.u32 %v8769_v21, %v2432_v15  ;;  %10392 = vst [vmem:[#allocation24_spill] sm:$0xff] %v8799_v7 }
 0x13a   : > { %v8801_v42 = vld [vmem:[#allocation2 + $0xb8] sm:$0xff] }
 0x13b   : > { %7458 = vmatmul.mubr.msk.bf16.gmra.mrb[16].mxu1 %vm334_vm1, %v2412_v10  ;;  %v2427_v10 = vor.u32 %v8757_v24, %v2424_v32  ;;  %v8793_v24 = vshll.u32 %v8762_v49, 16 }
 0x13c   : > { %7461 = vmatprep.mubr.msk.bf16.mxu1 %vm334_vm1, %v2420_v58  ;;  %v8785_v58 = vshrl.u32 %v8765_v25, 16  ;;  %v8826_v19 = vld [vmem:[#allocation2 + $0xc8] sm:$0xff] }
 0x13d   : > { %10391 = vst [vmem:[#allocation23_spill] sm:$0xff] %v8793_v24  ;;  %10396 = vst [vmem:[#allocation28_spill] sm:$0xff] %v8826_v19 }
 0x13e   : > { %7302 = vmatmul.mubr.msk.bf16.gmra.mrb[60].mxu0 %vm334_vm1, %v917_v39  ;;  %10390 = vst [vmem:[#allocation22_spill] sm:$0xff] %v8785_v58  ;;  %v2428_v39 = vsel %vm2280_vm5, %v2416_v11, %v2427_v10  ;;  %v2448_v21 = vrot.slane %v8785_v58, 7  ;;  %v8804_v11 = vld [vmem:[#allocation2 + $0xc0] sm:$0xff]  ;;  %v921_v10 = vsel %vm884_vm2, %v918_v22, %v920_v20  ;;  %v926_v22 = vrot.slane %v8762_v49, 4 }
 0x13f   : > { %7305 = vmatprep.mubr.msk.bf16.mxu0 %vm334_vm1, %v919_v1  ;;  %v2436_v1 = vsel %vm2280_vm5, %v2424_v32, %v2435_v17  ;;  %10393 = vst [vmem:[#allocation25_spill] sm:$0xff] %v8804_v11  ;;  %v8811_v32 = vshrl.u32 %v8801_v42, 16  ;;  %v2462_v58 = vshrl.u32 %v8804_v11, 16  ;;  %v8821_v20 = vshll.u32 %v8801_v42, 16 }
 0x140   : > { %v2451_v17 = vor.u32 %v8799_v7, %v2448_v21  ;;  %v2465_v7 = vshll.u32 %v8804_v11, 16  ;;  %v928_v11 = vrot.slane %v8765_v25, 4 }
 0x141   : > { %10394 = vst [vmem:[#allocation26_spill] sm:$0xff] %v8811_v32  ;;  %10395 = vst [vmem:[#allocation27_spill] sm:$0xff] %v8821_v20 }
 0x142   : > { %v929_v25 = vsel %vm884_vm2, %v926_v22, %v928_v11 }
 0x143   : > { %7462 = vmatmul.mubr.msk.bf16.gmra.mrb[20].mxu1 %vm334_vm1, %v2428_v39  ;;  %v2443_v39 = vor.u32 %v8793_v24, %v2440_v14  ;;  %v2452_v24 = vsel %vm2280_vm5, %v2440_v14, %v2451_v17 }
 0x144   : > { %7465 = vmatprep.mubr.msk.bf16.mxu1 %vm334_vm1, %v2436_v1  ;;  %v924_v1 = vrot.slane %v8738_v54, 4 }
 0x145   : > { %v2444_v53 = vsel %vm2280_vm5, %v2432_v15, %v2443_v39  ;;  %v824_v39 = vld [vmem:[#allocation2] sm:$0xf8] }
 0x146   : > { %7306 = vmatmul.mubr.msk.bf16.gmra.mrb[64].mxu0 %vm334_vm1, %v921_v10  ;;  %v2456_v10 = vrot.slane %v8811_v32, 7  ;;  %v925_v15 = vsel %vm884_vm2, %v922_v59, %v924_v1  ;;  %v927_v49 = vsel %vm884_vm2, %v924_v1, %v926_v22  ;;  %v1248_v17 = vshll.u32 %v824_v39, 16 }
 0x147   : > { %7309 = vmatprep.mubr.msk.bf16.mxu0 %vm334_vm1, %v923_v36  ;;  %v2464_v36 = vrot.slane %v2462_v58, 7  ;;  %v1245_v58 = vshrl.u32 %v824_v39, 16  ;;  %v8858_v22 = vshll.u32 %v8490_v2, 16 }
 0x148   : > { %v2459_v32 = vor.u32 %v8821_v20, %v2456_v10  ;;  %v2473_v20 = vshll.u32 %v8826_v19, 16  ;;  %v1250_v39 = vrot.slane %v1248_v17, 4 }
 0x149   : > { %v2467_v14 = vor.u32 %v2465_v7, %v2464_v36  ;;  %v1247_v7 = vrot.slane %v1245_v58, 3  ;;  %v8866_v58 = vshll.u32 %v8495_v6, 16 }
 0x14a   : > { %v2460_v54 = vsel %vm2280_vm5, %v2448_v21, %v2459_v32  ;;  %v8847_v32 = vld [vmem:[#allocation2 + $0xc0] sm:$0xf] }
 0x14b   : > { %7466 = vmatmul.mubr.msk.bf16.gmra.mrb[24].mxu1 %vm334_vm1, %v2444_v53  ;;  %v2470_v53 = vshrl.u32 %v8826_v19, 16  ;;  %10399 = vst [vmem:[#allocation30_spill] sm:$0xff] %v8866_v58 }
 0x14c   : > { %7469 = vmatprep.mubr.msk.bf16.mxu1 %vm334_vm1, %v2452_v24  ;;  %v10313_v24 = vshrl.u32 %v8444_v23, 16 }
 0x14d   : > { %v2472_v1 = vrot.slane %v2470_v53, 7 }
 0x14e   : > { %7310 = vmatmul.mubr.msk.bf16.gmra.mrb[68].mxu0 %vm334_vm1, %v925_v15  ;;  %v930_v15 = vrot.slane %v8801_v42, 4  ;;  %v1255_v53 = vrot.slane %v10313_v24, 3 }
 0x14f   : > { %7313 = vmatprep.mubr.msk.bf16.mxu0 %vm334_vm1, %v927_v49  ;;  %v2468_v49 = vsel %vm2280_vm5, %v2456_v10, %v2467_v14  ;;  %v2475_v21 = vor.u32 %v2473_v20, %v2472_v1  ;;  %v1251_v10 = vor.u32 %v1250_v39, %v1247_v7  ;;  %v8855_v14 = vshrl.u32 %v8490_v2, 16 }
 0x150   : > { %v931_v59 = vsel %vm884_vm2, %v928_v11, %v930_v15  ;;  %v8863_v20 = vshrl.u32 %v8495_v6, 16  ;;  %v8880_v39 = vshrl.u32 %v8510_v16, 16 }
 0x151   : > { %v2476_v11 = vsel %vm2280_vm5, %v2464_v36, %v2475_v21  ;;  %v1267_v36 = vrot.slane %v8858_v22, 4 }
 0x152   : > { %10398 = vst [vmem:[#allocation29_spill] sm:$0xff] %v8863_v20  ;;  %v1273_v7 = vrot.slane %v8863_v20, 3  ;;  %10400 = vst [vmem:[#allocation31_spill] sm:$0xff] %v8880_v39 }
 0x153   : > { %7470 = vmatmul.mubr.msk.bf16.gmra.mrb[28].mxu1 %vm334_vm1, %v2460_v54  ;;  %v10397_v54 = vshll.u32 %v8444_v23, 16 }
 0x154   : > { %7473 = vmatprep.mubr.msk.bf16.mxu1 %vm334_vm1, %v2468_v49  ;;  %v1264_v49 = vrot.slane %v8855_v14, 3 }
 0x155   : > { %v1258_v19 = vrot.slane %v10397_v54, 4  ;;  %v8889_v54 = vshrl.u32 %v8516_v27, 16 }
 0x156   : > { %7314 = vmatmul.mubr.msk.bf16.gmra.mrb[72].mxu0 %vm334_vm1, %v929_v25  ;;  %v932_v25 = vrot.slane %v8847_v32, 4  ;;  %v1268_v21 = vor.u32 %v1267_v36, %v1264_v49  ;;  %v8920_v36 = vshll.u32 %v8521_v31, 16 }
 0x157   : > { %7317 = vmatprep.mubr.msk.bf16.mxu0 %vm334_vm1, %v931_v59  ;;  %v1259_v17 = vor.u32 %v1258_v19, %v1255_v53  ;;  %v1276_v19 = vrot.slane %v8866_v58, 4  ;;  %10402 = vst [vmem:[#allocation33_spill] sm:$0xff] %v8889_v54 }
 0x158   : > { %v933_v1 = vsel %vm884_vm2, %v930_v15, %v932_v25  ;;  %v8255_v15 = vld [vmem:[%s10275_s3 + $0x58] sm:$0xff]   ;;  %v8257_v25 = vld [vmem:[%s10275_s3 + $0x28] sm:$0xff]  }
 0x159   : > { %v1260_v59 = vsel %vm1243_vm6, %v1251_v10, %v1259_v17  ;;  %v1277_v53 = vor.u32 %v1276_v19, %v1273_v7  ;;  %v8892_v10 = vshll.u32 %v8516_v27, 16  ;;  %v8924_v19 = vshll.u32 %v8526_v38, 16 }
 0x15b   : > { %7474 = vmatmul.mubr.msk.bf16.gmra.mrb[32].mxu1 %vm334_vm1, %v2476_v11  ;;  %10403 = vst [vmem:[#allocation34_spill] sm:$0xff] %v8892_v10  ;;  %v1269_v11 = vsel %vm1243_vm6, %v1259_v17, %v1268_v21  ;;  %v1294_v49 = vrot.slane %v8892_v10, 4  ;;  %v8917_v17 = vshrl.u32 %v8521_v31, 16 }
 0x15c   : > { %7481 = vmatprep.mubr.msk.bf16.mxu1 %vm334_vm1, %v8490_v2  ;;  %v8883_v2 = vshll.u32 %v8510_v16, 16 }
 0x15e   : > { %7318 = vmatmul.mubr.msk.bf16.gmra.mrb[76].mxu0 %vm334_vm1, %v933_v1  ;;  %10401 = vst [vmem:[#allocation32_spill] sm:$0xff] %v8883_v2  ;;  %v1285_v1 = vrot.slane %v8883_v2, 4 }
 0x15f   : > { %7325 = vmatprep.mubr.msk.bf16.mxu0 %vm334_vm1, %v1260_v59  ;;  %v1282_v59 = vrot.slane %v8880_v39, 3 }
 0x161   : > { %v1286_v7 = vor.u32 %v1285_v1, %v1282_v59  ;;  %v1309_v1 = vrot.slane %v8536_v47, 3 }
 0x163   : > { %7482 = vmatmul.mubr.msk.bf16.vlgmr.msra.gmra.mrb[36].mxu1 %vm334_vm1, %v8495_v6  ;;  %v8908_v6 = vld [vmem:[%s10275_s3 + $0x60] sm:$0xff]  }
 0x164   : > { %7530 = vmatpush3.bf16.msra.mxu1 %v8624_v30  ;;  %7485 = vmatprep.mubr.msk.bf16.mxu1 %vm334_vm1, %v8510_v16  ;;  %v1278_v16 = vsel %vm1243_vm6, %v1268_v21, %v1277_v53  ;;  %v1291_v30 = vrot.slane %v8889_v54, 3 }
 0x165   : > { %7531 = vmatprep.subr.bf16.mxu1 %v8255_v15 }
 0x166   : > { %7326 = vmatmul.mubr.msk.bf16.vlgmr.msra.gmra.mrb[32].mxu0 %vm334_vm1, %v1269_v11  ;;  %v1295_v21 = vor.u32 %v1294_v49, %v1291_v30  ;;  %v1303_v11 = vrot.slane %v8920_v36, 4  ;;  %v1327_v49 = vrot.slane %v8560_v4, 3 }
 0x167   : > { %7329 = vmatprep.mubr.msk.bf16.mxu0 %vm334_vm1, %v1278_v16  ;;  %7374 = vmatpush3.bf16.msra.mxu0 %v8780_v8  ;;  %v1287_v8 = vsel %vm1243_vm6, %v1277_v53, %v1286_v7  ;;  %v1318_v53 = vrot.slane %v8547_v60, 3  ;;  %v1321_v16 = vrot.slane %v8557_v3, 4 }
 0x168   : > { %7532 = vmatpush3.bf16.msra.mxu1 %v8255_v15  ;;  %7375 = vmatprep.subr.bf16.mxu0 %v8257_v25  ;;  %v1300_v15 = vrot.slane %v8917_v17, 3  ;;  %v1296_v59 = vsel %vm1243_vm6, %v1286_v7, %v1295_v21  ;;  %v1330_v7 = vrot.slane %v8570_v12, 4 }
 0x169   : > { %7581 = vmatprep.subr.bf16.mxu1 %v8908_v6 }
 0x16b   : > { %7486 = vmatmul.mubr.msk.bf16.gmra.mrb[40].mxu1 %vm334_vm1, %v8516_v27  ;;  %7376 = vmatpush3.bf16.msra.mxu0 %v8257_v25  ;;  %v1312_v27 = vrot.slane %v8924_v19, 4  ;;  %v1304_v25 = vor.u32 %v1303_v11, %v1300_v15  ;;  %v1339_v15 = vrot.slane %v8577_v18, 4 }
 0x16c   : > { %7489 = vmatprep.mubr.msk.bf16.mxu1 %vm334_vm1, %v8521_v31  ;;  %7425 = vmatprep.subr.bf16.mxu0 %v8454_v28 }
 0x16d   : > { %v1313_v31 = vor.u32 %v1312_v27, %v1309_v1  ;;  %v1305_v28 = vsel %vm1243_vm6, %v1295_v21, %v1304_v25  ;;  %v1336_v21 = vrot.slane %v8565_v9, 3  ;;  %v1348_v1 = vrot.slane %v8619_v56, 4 }
 0x16e   : > { %7330 = vmatmul.mubr.msk.bf16.gmra.mrb[36].mxu0 %vm334_vm1, %v1287_v8  ;;  %v1331_v8 = vor.u32 %v1330_v7, %v1327_v49  ;;  %v1372_v49 = vrot.slane %v8653_v34, 3  ;;  %v1375_v7 = vrot.slane %v8670_v52, 4  ;;  %v3172_v52 = vld [vmem:[#allocation2 + $0x10] sm:$0xff] }
 0x16f   : > { %7333 = vmatprep.mubr.msk.bf16.mxu0 %vm334_vm1, %v1296_v59  ;;  %v1314_v30 = vsel %vm1243_vm6, %v1304_v25, %v1313_v31  ;;  %v1345_v59 = vrot.slane %v8599_v43, 3  ;;  %v1354_v25 = vrot.slane %v8614_v51, 3  ;;  %v9102_v34 = vld [vmem:[#allocation2 + $0xb0] sm:$0xff] }
 0x171   : > { %v1349_v27 = vor.u32 %v1348_v1, %v1345_v59  ;;  %v1399_v1 = vrot.slane %v8712_v13, 3  ;;  %v10412_v13 = vld [vmem:[#allocation21_spill] sm:$0xff] }
 0x173   : > { %7490 = vmatmul.mubr.msk.bf16.gmra.mrb[44].mxu1 %vm334_vm1, %v8526_v38  ;;  %v1322_v38 = vor.u32 %v1321_v16, %v1318_v53  ;;  %v1363_v53 = vrot.slane %v8632_v0, 3  ;;  %v1366_v16 = vrot.slane %v8645_v26, 4 }
 0x174   : > { %7493 = vmatprep.mubr.msk.bf16.mxu1 %vm334_vm1, %v8540_v55 }
 0x175   : > { %v1323_v55 = vsel %vm1243_vm6, %v1313_v31, %v1322_v38  ;;  %v1332_v11 = vsel %vm1243_vm6, %v1322_v38, %v1331_v8  ;;  %v1357_v31 = vrot.slane %v8629_v63, 4 }
 0x176   : > { %7334 = vmatmul.mubr.msk.bf16.gmra.mrb[40].mxu0 %vm334_vm1, %v1305_v28 }
 0x177   : > { %7337 = vmatprep.mubr.msk.bf16.mxu0 %vm334_vm1, %v1314_v30  ;;  %v1367_v30 = vor.u32 %v1366_v16, %v1363_v53 }
 0x17b   : > { %7494 = vmatmul.mubr.msk.bf16.gmra.mrb[0].mxu1 %vm334_vm1, %v8549_v61  ;;  %v1340_v61 = vor.u32 %v1339_v15, %v1336_v21  ;;  %v1390_v15 = vrot.slane %v8680_v5, 3  ;;  %v10413_v5 = vld [vmem:[#allocation23_spill] sm:$0xff] }
 0x17c   : > { %7497 = vmatprep.mubr.msk.bf16.mxu1 %vm334_vm1, %v8551_v62 }
 0x17d   : > { %v1341_v62 = vsel %vm1243_vm6, %v1331_v8, %v1340_v61  ;;  %v1350_v28 = vsel %vm1243_vm6, %v1340_v61, %v1349_v27  ;;  %v1381_v8 = vrot.slane %v8675_v57, 3  ;;  %v1402_v61 = vrot.slane %v8736_v46, 4  ;;  %v10411_v46 = vld [vmem:[#allocation12_spill] sm:$0xff] }
 0x17e   : > { %7338 = vmatmul.mubr.msk.bf16.gmra.mrb[44].mxu0 %vm334_vm1, %v1323_v55  ;;  %v1384_v55 = vrot.slane %v8688_v29, 4  ;;  %v1438_v29 = vrot.slane %v10413_v5, 4 }
 0x17f   : > { %7341 = vmatprep.mubr.msk.bf16.mxu0 %vm334_vm1, %v1332_v11  ;;  %v1393_v11 = vrot.slane %v8696_v40, 4  ;;  %v1435_v40 = vrot.slane %v10412_v13, 3  ;;  %v10427_v13 = vld [vmem:[#allocation18_spill] sm:$0xff] }
 0x180   : > { %v1385_v21 = vor.u32 %v1384_v55, %v1381_v8  ;;  %v10406_v8 = vld [vmem:[#allocation15_spill] sm:$0xff] }
 0x181   : > { %v1417_v55 = vrot.slane %v10406_v8, 3  ;;  %v10409_v8 = vld [vmem:[#allocation20_spill] sm:$0xff] }
 0x183   : > { %7498 = vmatmul.mubr.msk.bf16.gmra.mrb[4].mxu1 %vm334_vm1, %v8591_v37  ;;  %v1358_v37 = vor.u32 %v1357_v31, %v1354_v25 }
 0x184   : > { %7501 = vmatprep.mubr.msk.bf16.mxu1 %vm334_vm1, %v8601_v44 }
 0x185   : > { %v1359_v44 = vsel %vm1243_vm6, %v1349_v27, %v1358_v37  ;;  %v1368_v38 = vsel %vm1243_vm6, %v1358_v37, %v1367_v30  ;;  %v9001_v27 = vld [vmem:[#allocation2 + $0xc0] sm:$0xff] }
 0x186   : > { %7342 = vmatmul.mubr.msk.bf16.gmra.mrb[48].mxu0 %vm334_vm1, %v1341_v62  ;;  %v1403_v62 = vor.u32 %v1402_v61, %v1399_v1  ;;  %v9014_v53 = vshrl.u32 %v9001_v27, 16  ;;  %v9019_v16 = vshll.u32 %v9001_v27, 16 }
 0x187   : > { %7345 = vmatprep.mubr.msk.bf16.mxu0 %vm334_vm1, %v1350_v28  ;;  %v9011_v28 = vld [vmem:[#allocation2 + $0xc8] sm:$0xff] }
 0x188   : > { %v9022_v37 = vshrl.u32 %v9011_v28, 16 }
 0x18a   : > { %v3986_v1 = vrot.slane %v9022_v37, 3 }
 0x18b   : > { %7502 = vmatmul.mubr.msk.bf16.gmra.mrb[8].mxu1 %vm334_vm1, %v8603_v45  ;;  %v1376_v45 = vor.u32 %v1375_v7, %v1372_v49  ;;  %v10405_v49 = vld [vmem:[#allocation11_spill] sm:$0xff] }
 0x18c   : > { %7505 = vmatprep.mubr.msk.bf16.mxu1 %vm334_vm1, %v8647_v33  ;;  %v1411_v7 = vrot.slane %v10405_v49, 4  ;;  %v1429_v49 = vrot.slane %v10409_v8, 4 }
 0x18d   : > { %v1377_v33 = vsel %vm1243_vm6, %v1367_v30, %v1376_v45  ;;  %v1386_v59 = vsel %vm1243_vm6, %v1376_v45, %v1385_v21  ;;  %v10407_v45 = vld [vmem:[#allocation17_spill] sm:$0xff] }
 0x18e   : > { %7346 = vmatmul.mubr.msk.bf16.gmra.mrb[52].mxu0 %vm334_vm1, %v1359_v44 }
 0x18f   : > { %7349 = vmatprep.mubr.msk.bf16.mxu0 %vm334_vm1, %v1368_v38 }
 0x193   : > { %7506 = vmatmul.mubr.msk.bf16.gmra.mrb[12].mxu1 %vm334_vm1, %v8655_v35  ;;  %v8999_v35 = vld [vmem:[#allocation2 + $0xb8] sm:$0xff] }
 0x194   : > { %7509 = vmatprep.mubr.msk.bf16.mxu1 %vm334_vm1, %v8665_v48  ;;  %v1394_v48 = vor.u32 %v1393_v11, %v1390_v15  ;;  %v9004_v25 = vshrl.u32 %v8999_v35, 16  ;;  %v9009_v31 = vshll.u32 %v8999_v35, 16  ;;  %v9034_v15 = vshll.u32 %v9011_v28, 16 }
 0x195   : > { %v3977_v11 = vrot.slane %v9014_v53, 3 }
 0x196   : > { %7350 = vmatmul.mubr.msk.bf16.gmra.mrb[56].mxu0 %vm334_vm1, %v1377_v33  ;;  %v1395_v30 = vsel %vm1243_vm6, %v1385_v21, %v1394_v48  ;;  %v1404_v38 = vsel %vm1243_vm6, %v1394_v48, %v1403_v62  ;;  %v3968_v33 = vrot.slane %v9004_v25, 3  ;;  %v3971_v21 = vrot.slane %v9009_v31, 4  ;;  %v10408_v48 = vld [vmem:[#allocation16_spill] sm:$0xff] }
 0x197   : > { %7353 = vmatprep.mubr.msk.bf16.mxu0 %vm334_vm1, %v1386_v59  ;;  %v3980_v59 = vrot.slane %v9019_v16, 4  ;;  %v3989_v24 = vrot.slane %v9034_v15, 4 }
 0x199   : > { %v9049_v57 = vor.u32 %v3989_v24, %v3986_v1  ;;  %v9064_v24 = vld [vmem:[#allocation2 + $0x70] sm:$0xff]  ;;  %v10420_v1 = vld [vmem:[#allocation22_spill] sm:$0xff] }
 0x19a   : > { %10418 = vst [vmem:[#allocation37_spill] sm:$0xff] %v9064_v24 }
 0x19b   : > { %7510 = vmatmul.mubr.msk.bf16.gmra.mrb[16].mxu1 %vm334_vm1, %v8698_v41  ;;  %v10404_v41 = vld [vmem:[#allocation10_spill] sm:$0xff]  ;;  %10414 = vst [vmem:[#allocation12_spill] sm:$0xff] %v9049_v57 }
 0x19c   : > { %7513 = vmatprep.mubr.msk.bf16.mxu1 %vm334_vm1, %v8704_v50  ;;  %v1408_v44 = vrot.slane %v10404_v41, 3  ;;  %v1420_v50 = vrot.slane %v10407_v45, 4  ;;  %v3981_v41 = vor.u32 %v3980_v59, %v3977_v11  ;;  %v1439_v11 = vor.u32 %v1438_v29, %v1435_v40  ;;  %v9069_v59 = vld [vmem:[#allocation2 + $0x88] sm:$0xff] }
 0x19d   : > { %10419 = vst [vmem:[#allocation38_spill] sm:$0xff] %v9069_v59 }
 0x19e   : > { %7354 = vmatmul.mubr.msk.bf16.gmra.mrb[60].mxu0 %vm334_vm1, %v1395_v30  ;;  %v1412_v61 = vor.u32 %v1411_v7, %v1408_v44  ;;  %v1426_v30 = vrot.slane %v10408_v48, 3  ;;  %v1421_v45 = vor.u32 %v1420_v50, %v1417_v55  ;;  %v10415_v44 = vld [vmem:[#allocation14_spill] sm:$0xff]  ;;  %v9060_v50 = vsel %vm1243_vm6, %v3981_v41, %v9049_v57  ;;  %v10423_v57 = vld [vmem:[#allocation24_spill] sm:$0xff]  ;;  %v10429_v48 = vld [vmem:[#allocation19_spill] sm:$0xff] }
 0x19f   : > { %7357 = vmatprep.mubr.msk.bf16.mxu0 %vm334_vm1, %v1404_v38  ;;  %v9043_v38 = vor.u32 %v3971_v21, %v3968_v33  ;;  %10417 = vst [vmem:[#allocation36_spill] sm:$0xff] %v9060_v50  ;;  %v9066_v21 = vld [vmem:[#allocation2 + $0x78] sm:$0xff] }
 0x1a0   : > { %v1413_v55 = vsel %vm1243_vm6, %v1403_v62, %v1412_v61  ;;  %v1430_v33 = vor.u32 %v1429_v49, %v1426_v30  ;;  %v1444_v62 = vrot.slane %v10420_v1, 3  ;;  %v10424_v50 = vld [vmem:[#allocation26_spill] sm:$0xff]  ;;  %v9078_v49 = vld [vmem:[#allocation2 + $0xa0] sm:$0xff]  ;;  %v9080_v30 = vld [vmem:[#allocation2 + $0xa8] sm:$0xff]  ;;  %v4421_v29 = vrot.slane %v9066_v21, 4 }
 0x1a1   : > { %10410 = vst [vmem:[#allocation35_spill] sm:$0xff] %v9043_v38  ;;  %v9055_v7 = vsel %vm1243_vm6, %v9043_v38, %v3981_v41  ;;  %v9074_v41 = vld [vmem:[#allocation2 + $0x90] sm:$0xff]  ;;  %v9086_v1 = vld [vmem:[#allocation2 + $0x98] sm:$0xff] }
 0x1a2   : > { %10416 = vst [vmem:[#allocation14_spill] sm:$0xff] %v9055_v7  ;;  %10422 = vst [vmem:[#allocation40_spill] sm:$0xff] %v9074_v41  ;;  %v10326_v7 = vrot.slane %v9064_v24, 4  ;;  %v1431_v40 = vsel %vm1243_vm6, %v1421_v45, %v1430_v33 }
 0x1a3   : > { %7514 = vmatmul.mubr.msk.bf16.gmra.mrb[20].mxu1 %vm334_vm1, %v10411_v46  ;;  %v1422_v46 = vsel %vm1243_vm6, %v1412_v61, %v1421_v45  ;;  %v1453_v61 = vrot.slane %v10424_v50, 3  ;;  %10426 = vst [vmem:[#allocation41_spill] sm:$0xff] %v9086_v1  ;;  %v1440_v50 = vsel %vm1243_vm6, %v1430_v33, %v1439_v11  ;;  %v4427_v45 = vrot.slane %v9074_v41, 4 }
 0x1a4   : > { %7517 = vmatprep.mubr.msk.bf16.mxu1 %vm334_vm1, %v10415_v44  ;;  %v9072_v44 = vld [vmem:[#allocation2 + $0x80] sm:$0xff]  ;;  %v9096_v8 = vsel %vm884_vm2, %v10326_v7, %v4421_v29  ;;  %v4431_v7 = vrot.slane %v9078_v49, 4  ;;  %v4435_v41 = vrot.slane %v9102_v34, 4 }
 0x1a5   : > { %10421 = vst [vmem:[#allocation39_spill] sm:$0xff] %v9072_v44  ;;  %v4423_v5 = vrot.slane %v9072_v44, 4  ;;  %10428 = vst [vmem:[#allocation18_spill] sm:$0xff] %v9096_v8  ;;  %v4433_v8 = vrot.slane %v9080_v30, 4  ;;  %v4437_v44 = vrot.slane %v8999_v35, 4 }
 0x1a6   : > { %7358 = vmatmul.mubr.msk.bf16.gmra.mrb[64].mxu0 %vm334_vm1, %v1413_v55  ;;  %v1447_v55 = vrot.slane %v10423_v57, 4  ;;  %v4425_v57 = vrot.slane %v9069_v59, 4  ;;  %v9104_v59 = vld [vmem:[#allocation2 + $0xd0] sm:$0xff] }
 0x1a7   : > { %7361 = vmatprep.mubr.msk.bf16.mxu0 %vm334_vm1, %v1422_v46  ;;  %v10425_v46 = vld [vmem:[#allocation27_spill] sm:$0xff]  ;;  %10430 = vst [vmem:[#allocation19_spill] sm:$0xff] %v9104_v59  ;;  %v9136_v35 = vsel %vm884_vm2, %v4435_v41, %v4437_v44 }
 0x1a8   : > { %v1456_v38 = vrot.slane %v10425_v46, 4  ;;  %v4429_v46 = vrot.slane %v9086_v1, 4  ;;  %v9110_v33 = vsel %vm884_vm2, %v4423_v5, %v4425_v57  ;;  %v9115_v1 = vsel %vm884_vm2, %v4425_v57, %v4427_v45  ;;  %10438 = vst [vmem:[#allocation49_spill] sm:$0xff] %v9136_v35 }
 0x1a9   : > { %10432 = vst [vmem:[#allocation43_spill] sm:$0xff] %v9110_v33  ;;  %10433 = vst [vmem:[#allocation44_spill] sm:$0xff] %v9115_v1  ;;  %v4439_v33 = vrot.slane %v9001_v27, 4  ;;  %v4441_v57 = vrot.slane %v9011_v28, 4  ;;  %v1448_v28 = vor.u32 %v1447_v55, %v1444_v62 }
 0x1aa   : > { %v1457_v35 = vor.u32 %v1456_v38, %v1453_v61  ;;  %v9161_v61 = vld [vmem:[#allocation2 + $0x28] sm:$0xff] }
 0x1ab   : > { %7518 = vmatmul.mubr.msk.bf16.gmra.mrb[24].mxu1 %vm334_vm1, %v10427_v13  ;;  %v9107_v13 = vsel %vm884_vm2, %v4421_v29, %v4423_v5  ;;  %v9124_v29 = vsel %vm884_vm2, %v4429_v46, %v4431_v7  ;;  %v9127_v5 = vsel %vm884_vm2, %v4431_v7, %v4433_v8  ;;  %v9143_v27 = vsel %vm884_vm2, %v4439_v33, %v4441_v57 }
 0x1ac   : > { %7521 = vmatprep.mubr.msk.bf16.mxu1 %vm334_vm1, %v10429_v48  ;;  %10431 = vst [vmem:[#allocation42_spill] sm:$0xff] %v9107_v13  ;;  %v9118_v48 = vsel %vm884_vm2, %v4427_v45, %v4429_v46  ;;  %10435 = vst [vmem:[#allocation46_spill] sm:$0xff] %v9124_v29  ;;  %v3206_v45 = vshll.u32 %v3172_v52, 16  ;;  %v3173_v46 = vld [vmem:[#allocation2 + $0x18] sm:$0xff]  ;;  %v8286_v29 = vld [vmem:[#allocation2] sm:$0xf0]  ;;  %v1458_v38 = vsel %vm1243_vm6, %v1448_v28, %v1457_v35 }
 0x1ad   : > { %10434 = vst [vmem:[#allocation45_spill] sm:$0xff] %v9118_v48  ;;  %10436 = vst [vmem:[#allocation47_spill] sm:$0xff] %v9127_v5  ;;  %v9133_v48 = vsel %vm884_vm2, %v4433_v8, %v4435_v41  ;;  %v1785_v1 = vshrl.u32 %v8286_v29, 16  ;;  %v1788_v7 = vshll.u32 %v8286_v29, 16  ;;  %v9140_v5 = vsel %vm884_vm2, %v4437_v44, %v4439_v33  ;;  %v9156_v33 = vld [vmem:[#allocation2 + $0x20] sm:$0xff] }
 0x1ae   : > { %7362 = vmatmul.mubr.msk.bf16.gmra.mrb[68].mxu0 %vm334_vm1, %v1431_v40  ;;  %10437 = vst [vmem:[#allocation48_spill] sm:$0xff] %v9133_v48  ;;  %v10333_v40 = vrot.slane %v9104_v59, 4  ;;  %10439 = vst [vmem:[#allocation50_spill] sm:$0xff] %v9140_v5  ;;  %v1463_v8 = vshll.u32 %v8847_v32, 16  ;;  %v3208_v29 = vrot.slane %v3206_v45, 1  ;;  %v3211_v44 = vshll.u32 %v3173_v46, 16 }
 0x1af   : > { %7365 = vmatprep.mubr.msk.bf16.mxu0 %vm334_vm1, %v1440_v50  ;;  %10440 = vst [vmem:[#allocation51_spill] sm:$0xff] %v9143_v27  ;;  %v1460_v50 = vshrl.u32 %v8847_v32, 16  ;;  %v10442_v5 = vld [vmem:[#allocation25_spill] sm:$0xff]  ;;  %v1787_v62 = vrot.slane %v1785_v1, 4  ;;  %v1790_v55 = vrot.slane %v1788_v7, 5  ;;  %v1449_v32 = vsel %vm1243_vm6, %v1439_v11, %v1448_v28  ;;  %10444 = vst [vmem:[#allocation53_spill] sm:$0xff] %v9161_v61 }
 0x1b0   : > { %v9150_v41 = vsel %vm884_vm2, %v4441_v57, %v10333_v40  ;;  %10443 = vst [vmem:[#allocation25_spill] sm:$0xff] %v9156_v33  ;;  %v3204_v27 = vshrl.u32 %v3172_v52, 16  ;;  %v1465_v13 = vrot.slane %v1463_v8, 4  ;;  %v3213_v7 = vrot.slane %v3211_v44, 1 }
 0x1b1   : > { %10441 = vst [vmem:[#allocation52_spill] sm:$0xff] %v9150_v41  ;;  %v1462_v48 = vrot.slane %v1460_v50, 3  ;;  %v9169_v52 = vshll.u32 %v9156_v33, 16  ;;  %v1791_v11 = vor.u32 %v1790_v55, %v1787_v62  ;;  %v9172_v28 = vshll.u32 %v9161_v61, 16  ;;  %v9184_v62 = vld [vmem:[#allocation2 + $0x30] sm:$0xff]  ;;  %v9225_v41 = vld [vmem:[#allocation2 + $0x40] sm:$0xff] }
 0x1b2   : > { %v3209_v1 = vor.u32 %v3208_v29, %v3204_v27  ;;  %v3215_v8 = vshrl.u32 %v3173_v46, 16  ;;  %v1796_v29 = vrot.slane %v8855_v14, 4  ;;  %v1797_v44 = vrot.slane %v8858_v22, 5  ;;  %10450 = vst [vmem:[#allocation55_spill] sm:$0xff] %v9225_v41 }
 0x1b3   : > { %7522 = vmatmul.mubr.msk.bf16.gmra.mrb[28].mxu1 %vm334_vm1, %v8801_v42  ;;  %v10445_v42 = vshrl.u32 %v8444_v23, 16  ;;  %v1466_v50 = vor.u32 %v1465_v13, %v1462_v48  ;;  %v3221_v27 = vrot.slane %v9169_v52, 1  ;;  %v1800_v48 = vrot.slane %v8863_v20, 4 }
 0x1b4   : > { %7525 = vmatprep.mubr.msk.bf16.mxu1 %vm334_vm1, %v10442_v5  ;;  %v10446_v5 = vshll.u32 %v8444_v23, 16  ;;  %v3214_v23 = vsel %vm3202_vm7, %v3209_v1, %v3213_v7  ;;  %v1801_v46 = vrot.slane %v8866_v58, 5  ;;  %v3217_v55 = vor.u32 %v3215_v8, %v3213_v7  ;;  %v9200_v7 = vld [vmem:[#allocation2 + $0x38] sm:$0xff] }
 0x1b5   : > { %v1792_v57 = vrot.slane %v10445_v42, 4  ;;  %v10447_v42 = vld [vmem:[#allocation28_spill] sm:$0xff]  ;;  %v1798_v1 = vor.u32 %v1797_v44, %v1796_v29  ;;  %10449 = vst [vmem:[#allocation54_spill] sm:$0xff] %v9200_v7  ;;  %v9212_v44 = vshll.u32 %v9200_v7, 16  ;;  %v9249_v20 = vshll.u32 %v9225_v41, 16 }
 0x1b6   : > { %7366 = vmatmul.mubr.msk.bf16.gmra.mrb[72].mxu0 %vm334_vm1, %v1449_v32  ;;  %v1793_v45 = vrot.slane %v10446_v5, 5  ;;  %10448 = vst [vmem:[#allocation28_spill] sm:$0xff] %v9184_v62  ;;  %v3229_v5 = vrot.slane %v9172_v28, 1  ;;  %v8259_v29 = vld [vmem:[%s10275_s3 + $0x68] sm:$0xff]  }
 0x1b7   : > { %7369 = vmatprep.mubr.msk.bf16.mxu0 %vm334_vm1, %v1458_v38  ;;  %v1467_v38 = vsel %vm1243_vm6, %v1457_v35, %v1466_v50  ;;  %v1802_v35 = vor.u32 %v1801_v46, %v1800_v48  ;;  %v3222_v50 = vsel %vm3202_vm7, %v3217_v55, %v3221_v27  ;;  %v1808_v48 = vrot.slane %v8889_v54, 4 }
 0x1b8   : > { %v1794_v32 = vor.u32 %v1793_v45, %v1792_v57  ;;  %v9188_v57 = vshrl.u32 %v9156_v33, 16 }
 0x1b9   : > { %v1803_v40 = vsel %vm1783_vm8, %v1798_v1, %v1802_v35 }
 0x1ba   : > { %v1795_v13 = vsel %vm1783_vm8, %v1791_v11, %v1794_v32  ;;  %v3225_v45 = vor.u32 %v9188_v57, %v3221_v27  ;;  %v9195_v11 = vshrl.u32 %v9161_v61, 16  ;;  %v1799_v46 = vsel %vm1783_vm8, %v1794_v32, %v1798_v1 }
 0x1bb   : > { %7526 = vmatmul.mubr.msk.bf16.gmra.mrb[32].mxu1 %vm334_vm1, %v10447_v42  ;;  %v9198_v42 = vshll.u32 %v9184_v62, 16  ;;  %v4895_v27 = vrot.slane %v9009_v31, 5  ;;  %v4899_v32 = vrot.slane %v9019_v16, 5  ;;  %v4902_v1 = vrot.slane %v9022_v37, 4 }
 0x1bc   : > { %7533 = vmatprep.mubr.msk.bf16.mxu1 %vm334_vm1, %v3214_v23  ;;  %v3230_v8 = vsel %vm3202_vm7, %v3225_v45, %v3229_v5  ;;  %v3233_v23 = vor.u32 %v9195_v11, %v3229_v5  ;;  %v1805_v5 = vrot.slane %v8883_v2, 5  ;;  %v4894_v45 = vrot.slane %v9004_v25, 4 }
 0x1bd   : > { %v3237_v55 = vrot.slane %v9198_v42, 1  ;;  %v10452_v2 = vshrl.u32 %v9104_v59, 16 }
 0x1be   : > { %7370 = vmatmul.mubr.msk.bf16.gmra.mrb[76].mxu0 %vm334_vm1, %v1467_v38  ;;  %v9206_v38 = vshrl.u32 %v9184_v62, 16  ;;  %v1809_v62 = vrot.slane %v8892_v10, 5  ;;  %v9240_v61 = vor.u32 %v4895_v27, %v4894_v45  ;;  %v10453_v10 = vshll.u32 %v9104_v59, 16  ;;  %v9254_v45 = vld [vmem:[#allocation2 + $0x48] sm:$0xff]  ;;  %v10477_v59 = vld [vmem:[#allocation13_spill] sm:$0xff] }
 0x1bf   : > { %7377 = vmatprep.mubr.msk.bf16.mxu0 %vm334_vm1, %v1795_v13  ;;  %v1804_v13 = vrot.slane %v8880_v39, 4  ;;  %v4906_v54 = vrot.slane %v10452_v2, 4  ;;  %10454 = vst [vmem:[#allocation57_spill] sm:$0xff] %v9254_v45  ;;  %v8288_v2 = vld [vmem:[%s10275_s3 + $0x38] sm:$0xff]  }
 0x1c0   : > { %10451 = vst [vmem:[#allocation56_spill] sm:$0xff] %v9240_v61  ;;  %v4907_v58 = vrot.slane %v10453_v10, 5  ;;  %v3241_v39 = vor.u32 %v9206_v38, %v3237_v55 }
 0x1c3   : > { %7534 = vmatmul.mubr.msk.bf16.vlgmr.msra.gmra.mrb[36].mxu1 %vm334_vm1, %v3222_v50  ;;  %v4898_v50 = vrot.slane %v9014_v53, 4 }
 0x1c4   : > { %7582 = vmatpush3.bf16.msra.mxu1 %v8908_v6  ;;  %7537 = vmatprep.mubr.msk.bf16.mxu1 %vm334_vm1, %v3230_v8  ;;  %v9235_v6 = vld [vmem:[%s10275_s3 + $0x70] sm:$0xff]   ;;  %v4903_v8 = vrot.slane %v9034_v15, 5 }
 0x1c5   : > { %7583 = vmatprep.subr.bf16.mxu1 %v8259_v29  ;;  %v4900_v33 = vor.u32 %v4899_v32, %v4898_v50  ;;  %v3245_v50 = vrot.slane %v9212_v44, 1  ;;  %v1806_v32 = vor.u32 %v1805_v5, %v1804_v13  ;;  %v9279_v13 = vshll.u32 %v9254_v45, 16 }
 0x1c6   : > { %7378 = vmatmul.mubr.msk.bf16.vlgmr.msra.gmra.mrb[32].mxu0 %vm334_vm1, %v1799_v46  ;;  %v8287_v46 = vld [vmem:[%s10275_s3 + $0x30] sm:$0xff]   ;;  %v4904_v27 = vor.u32 %v4903_v8, %v4902_v1  ;;  %v1810_v8 = vor.u32 %v1809_v62, %v1808_v48  ;;  %v9284_v62 = vshrl.u32 %v9225_v41, 16  ;;  %v1813_v48 = vrot.slane %v8920_v36, 5 }
 0x1c7   : > { %7381 = vmatprep.mubr.msk.bf16.mxu0 %vm334_vm1, %v1803_v40  ;;  %7426 = vmatpush3.bf16.msra.mxu0 %v8287_v46  ;;  %v9261_v10 = vsel %vm1783_vm8, %v9240_v61, %v4900_v33  ;;  %v9263_v40 = vor.u32 %v4907_v58, %v4906_v54  ;;  %v3246_v58 = vsel %vm3202_vm7, %v3241_v39, %v3245_v50  ;;  %v3253_v54 = vrot.slane %v9249_v20, 1  ;;  %v9316_v61 = vld [vmem:[#allocation2 + $0x60] sm:$0xff] }
 0x1c8   : > { %7584 = vmatpush3.bf16.msra.mxu1 %v8259_v29  ;;  %7427 = vmatprep.subr.bf16.mxu0 %v8288_v2  ;;  %10455 = vst [vmem:[#allocation58_spill] sm:$0xff] %v9261_v10  ;;  %v9268_v1 = vsel %vm1783_vm8, %v4900_v33, %v4904_v27  ;;  %v3238_v29 = vsel %vm3202_vm7, %v3233_v23, %v3237_v55  ;;  %v1812_v23 = vrot.slane %v8917_v17, 4  ;;  %v9291_v55 = vshrl.u32 %v9200_v7, 16 }
 0x1c9   : > { %10456 = vst [vmem:[#allocation59_spill] sm:$0xff] %v9263_v40  ;;  %7633 = vmatprep.subr.bf16.mxu1 %v9235_v6  ;;  %10457 = vst [vmem:[#allocation60_spill] sm:$0xff] %v9268_v1  ;;  %v9273_v46 = vsel %vm1783_vm8, %v4904_v27, %v9263_v40  ;;  %v1807_v33 = vsel %vm1783_vm8, %v1802_v35, %v1806_v32  ;;  %v1811_v39 = vsel %vm1783_vm8, %v1806_v32, %v1810_v8 }
 0x1ca   : > { %10458 = vst [vmem:[#allocation61_spill] sm:$0xff] %v9273_v46  ;;  %v1816_v5 = vrot.slane %v8536_v47, 4  ;;  %v1817_v27 = vrot.slane %v8924_v19, 5  ;;  %v3257_v35 = vor.u32 %v9284_v62, %v3253_v54  ;;  %v1814_v32 = vor.u32 %v1813_v48, %v1812_v23  ;;  %10461 = vst [vmem:[#allocation64_spill] sm:$0xff] %v9316_v61 }
 0x1cb   : > { %7538 = vmatmul.mubr.msk.bf16.gmra.mrb[40].mxu1 %vm334_vm1, %v3238_v29  ;;  %7428 = vmatpush3.bf16.msra.mxu0 %v8288_v2  ;;  %v9295_v2 = vld [vmem:[#allocation2 + $0x50] sm:$0xff]  ;;  %v3261_v29 = vrot.slane %v9279_v13, 1 }
 0x1cc   : > { %7541 = vmatprep.mubr.msk.bf16.mxu1 %vm334_vm1, %v3246_v58  ;;  %10459 = vst [vmem:[#allocation62_spill] sm:$0xff] %v9295_v2  ;;  %v3249_v58 = vor.u32 %v9291_v55, %v3245_v50  ;;  %v9304_v40 = vshll.u32 %v9295_v2, 16  ;;  %v1818_v1 = vor.u32 %v1817_v27, %v1816_v5  ;;  %v9314_v50 = vshrl.u32 %v9254_v45, 16  ;;  %v9337_v45 = vld [vmem:[#allocation2 + $0x68] sm:$0xff] }
 0x1cd   : > { %v3262_v10 = vsel %vm3202_vm7, %v3257_v35, %v3261_v29  ;;  %v1815_v23 = vsel %vm1783_vm8, %v1810_v8, %v1814_v32  ;;  %v1825_v35 = vrot.slane %v8570_v12, 5  ;;  %v9329_v8 = vshrl.u32 %v9295_v2, 16  ;;  %10462 = vst [vmem:[#allocation65_spill] sm:$0xff] %v9337_v45 }
 0x1ce   : > { %7382 = vmatmul.mubr.msk.bf16.gmra.mrb[36].mxu0 %vm334_vm1, %v1807_v33  ;;  %v9301_v33 = vld [vmem:[#allocation2 + $0x58] sm:$0xff]  ;;  %v3254_v46 = vsel %vm3202_vm7, %v3249_v58, %v3253_v54  ;;  %v3269_v48 = vrot.slane %v9304_v40, 1  ;;  %v1820_v54 = vrot.slane %v8547_v60, 4  ;;  %v1819_v5 = vsel %vm1783_vm8, %v1814_v32, %v1818_v1 }
 0x1cf   : > { %7385 = vmatprep.mubr.msk.bf16.mxu0 %vm334_vm1, %v1811_v39  ;;  %10460 = vst [vmem:[#allocation63_spill] sm:$0xff] %v9301_v33  ;;  %v9310_v39 = vshll.u32 %v9301_v33, 16  ;;  %v3265_v27 = vor.u32 %v9314_v50, %v3261_v29  ;;  %v9333_v60 = vshll.u32 %v9316_v61, 16  ;;  %v9347_v2 = vshrl.u32 %v9316_v61, 16 }
 0x1d1   : > { %v3277_v58 = vrot.slane %v9310_v39, 1  ;;  %v3270_v32 = vsel %vm3202_vm7, %v3265_v27, %v3269_v48  ;;  %v3285_v12 = vrot.slane %v9333_v60, 1  ;;  %v1829_v27 = vrot.slane %v8577_v18, 5 }
 0x1d3   : > { %7542 = vmatmul.mubr.msk.bf16.gmra.mrb[44].mxu1 %vm334_vm1, %v3254_v46  ;;  %v1821_v46 = vrot.slane %v8557_v3, 5  ;;  %v3273_v3 = vor.u32 %v9329_v8, %v3269_v48  ;;  %v9351_v48 = vshll.u32 %v9337_v45, 16 }
 0x1d4   : > { %7545 = vmatprep.mubr.msk.bf16.mxu1 %vm334_vm1, %v3262_v10  ;;  %v1824_v10 = vrot.slane %v8560_v4, 4 }
 0x1d5   : > { %v3278_v4 = vsel %vm3202_vm7, %v3273_v3, %v3277_v58  ;;  %v1832_v3 = vrot.slane %v8599_v43, 4  ;;  %v9370_v43 = vshll.u32 %v9066_v21, 16 }
 0x1d6   : > { %7386 = vmatmul.mubr.msk.bf16.gmra.mrb[40].mxu0 %vm334_vm1, %v1815_v23  ;;  %v1822_v23 = vor.u32 %v1821_v46, %v1820_v54  ;;  %v1826_v29 = vor.u32 %v1825_v35, %v1824_v10  ;;  %v1828_v46 = vrot.slane %v8565_v9, 4  ;;  %v9364_v9 = vshll.u32 %v9064_v24, 16 }
 0x1d7   : > { %7389 = vmatprep.mubr.msk.bf16.mxu0 %vm334_vm1, %v1819_v5  ;;  %v9344_v5 = vshrl.u32 %v9301_v33, 16  ;;  %v10469_v33 = vld [vmem:[#allocation7_spill] sm:$0xff] }
 0x1d8   : > { %v1823_v54 = vsel %vm1783_vm8, %v1818_v1, %v1822_v23  ;;  %v1827_v10 = vsel %vm1783_vm8, %v1822_v23, %v1826_v29  ;;  %v3289_v1 = vor.u32 %v9347_v2, %v3285_v12  ;;  %v1830_v61 = vor.u32 %v1829_v27, %v1828_v46 }
 0x1d9   : > { %v3281_v35 = vor.u32 %v9344_v5, %v3277_v58  ;;  %v3301_v46 = vrot.slane %v9364_v9, 1  ;;  %v1836_v27 = vrot.slane %v8614_v51, 4  ;;  %v10463_v51 = vld [vmem:[#allocation39_spill] sm:$0xff]  ;;  %v1849_v41 = vrot.slane %v10469_v33, 5 }
 0x1da   : > { %v1831_v23 = vsel %vm1783_vm8, %v1826_v29, %v1830_v61 }
 0x1db   : > { %7546 = vmatmul.mubr.msk.bf16.gmra.mrb[0].mxu1 %vm334_vm1, %v3270_v32  ;;  %v1833_v32 = vrot.slane %v8619_v56, 5  ;;  %v3286_v18 = vsel %vm3202_vm7, %v3281_v35, %v3285_v12  ;;  %v9374_v56 = vshrl.u32 %v9064_v24, 16  ;;  %v1837_v12 = vrot.slane %v8629_v63, 5  ;;  %v10464_v24 = vld [vmem:[#allocation38_spill] sm:$0xff] }
 0x1dc   : > { %7549 = vmatprep.mubr.msk.bf16.mxu1 %vm334_vm1, %v3278_v4  ;;  %v3293_v4 = vrot.slane %v9351_v48, 1  ;;  %v9383_v35 = vshrl.u32 %v9337_v45, 16  ;;  %v9402_v45 = vshll.u32 %v10464_v24, 16  ;;  %v9428_v33 = vshrl.u32 %v10464_v24, 16  ;;  %v10476_v24 = vld [vmem:[#allocation9_spill] sm:$0xff] }
 0x1dd   : > { %v3305_v29 = vor.u32 %v9374_v56, %v3301_v46 }
 0x1de   : > { %7390 = vmatmul.mubr.msk.bf16.gmra.mrb[44].mxu0 %vm334_vm1, %v1823_v54  ;;  %v1834_v54 = vor.u32 %v1833_v32, %v1832_v3  ;;  %v3294_v58 = vsel %vm3202_vm7, %v3289_v1, %v3293_v4  ;;  %v1840_v3 = vrot.slane %v8632_v0, 4  ;;  %v1841_v32 = vrot.slane %v8645_v26, 5  ;;  %10465 = vst [vmem:[#allocation39_spill] sm:$0xff] %v9402_v45 }
 0x1df   : > { %7393 = vmatprep.mubr.msk.bf16.mxu0 %vm334_vm1, %v1827_v10  ;;  %v3309_v1 = vrot.slane %v9370_v43, 1  ;;  %v3297_v63 = vor.u32 %v9383_v35, %v3293_v4  ;;  %v9406_v4 = vshrl.u32 %v9066_v21, 16 }
 0x1e0   : > { %v1835_v10 = vsel %vm1783_vm8, %v1830_v61, %v1834_v54 }
 0x1e1   : > { %v3302_v61 = vsel %vm3202_vm7, %v3297_v63, %v3301_v46  ;;  %v3310_v0 = vsel %vm3202_vm7, %v3305_v29, %v3309_v1  ;;  %v10468_v63 = vld [vmem:[#allocation5_spill] sm:$0xff] }
 0x1e3   : > { %7550 = vmatmul.mubr.msk.bf16.gmra.mrb[4].mxu1 %vm334_vm1, %v3286_v18  ;;  %v9391_v18 = vshll.u32 %v10463_v51, 16 }
 0x1e4   : > { %7553 = vmatprep.mubr.msk.bf16.mxu1 %vm334_vm1, %v3294_v58  ;;  %v1838_v58 = vor.u32 %v1837_v12, %v1836_v27  ;;  %v10466_v27 = vld [vmem:[#allocation3_spill] sm:$0xff] }
 0x1e5   : > { %v3317_v26 = vrot.slane %v9391_v18, 1  ;;  %v1844_v12 = vrot.slane %v10466_v27, 4 }
 0x1e6   : > { %7394 = vmatmul.mubr.msk.bf16.gmra.mrb[48].mxu0 %vm334_vm1, %v1831_v23  ;;  %v1842_v23 = vor.u32 %v1841_v32, %v1840_v3  ;;  %v1839_v46 = vsel %vm1783_vm8, %v1834_v54, %v1838_v58  ;;  %v10467_v3 = vld [vmem:[#allocation4_spill] sm:$0xff]  ;;  %v3325_v54 = vrot.slane %v9402_v45, 1 }
 0x1e7   : > { %7397 = vmatprep.mubr.msk.bf16.mxu0 %vm334_vm1, %v1835_v10  ;;  %v9399_v10 = vshrl.u32 %v10463_v51, 16  ;;  %v1845_v32 = vrot.slane %v10467_v3, 5  ;;  %v3313_v51 = vor.u32 %v9406_v4, %v3309_v1 }
 0x1e8   : > { %v1843_v29 = vsel %vm1783_vm8, %v1838_v58, %v1842_v23 }
 0x1e9   : > { %v3321_v21 = vor.u32 %v9399_v10, %v3317_v26  ;;  %v1846_v3 = vor.u32 %v1845_v32, %v1844_v12  ;;  %v10472_v12 = vld [vmem:[#allocation41_spill] sm:$0xff] }
 0x1ea   : > { %v9435_v32 = vshll.u32 %v10472_v12, 16 }
 0x1eb   : > { %7554 = vmatmul.mubr.msk.bf16.gmra.mrb[8].mxu1 %vm334_vm1, %v3302_v61  ;;  %v1848_v61 = vrot.slane %v10468_v63, 4  ;;  %v3326_v1 = vsel %vm3202_vm7, %v3321_v21, %v3325_v54  ;;  %v1847_v63 = vsel %vm1783_vm8, %v1842_v23, %v1846_v3 }
 0x1ec   : > { %7557 = vmatprep.mubr.msk.bf16.mxu1 %vm334_vm1, %v3310_v0  ;;  %v10470_v0 = vld [vmem:[#allocation40_spill] sm:$0xff]  ;;  %10473 = vst [vmem:[#allocation3_spill] sm:$0xff] %v9435_v32 }
 0x1ed   : > { %v9420_v27 = vshll.u32 %v10470_v0, 16  ;;  %v1850_v7 = vor.u32 %v1849_v41, %v1848_v61  ;;  %v10474_v41 = vld [vmem:[#allocation6_spill] sm:$0xff] }
 0x1ee   : > { %7398 = vmatmul.mubr.msk.bf16.gmra.mrb[52].mxu0 %vm334_vm1, %v1839_v46  ;;  %v3318_v46 = vsel %vm3202_vm7, %v3313_v51, %v3317_v26  ;;  %v1852_v26 = vrot.slane %v10474_v41, 4  ;;  %v10475_v51 = vld [vmem:[#allocation8_spill] sm:$0xff]  ;;  %v9448_v41 = vshll.u32 %v9078_v49, 16 }
 0x1ef   : > { %7401 = vmatprep.mubr.msk.bf16.mxu0 %vm334_vm1, %v1843_v29  ;;  %10471 = vst [vmem:[#allocation38_spill] sm:$0xff] %v9420_v27  ;;  %v3333_v58 = vrot.slane %v9420_v27, 1  ;;  %v9431_v29 = vshrl.u32 %v10470_v0, 16  ;;  %v1853_v61 = vrot.slane %v10475_v51, 5  ;;  %v1851_v21 = vsel %vm1783_vm8, %v1846_v3, %v1850_v7 }
 0x1f0   : > { %v1857_v0 = vrot.slane %v10477_v59, 5  ;;  %v3341_v27 = vrot.slane %v9435_v32, 1  ;;  %10478 = vst [vmem:[#allocation4_spill] sm:$0xff] %v9448_v41  ;;  %v9452_v3 = vshrl.u32 %v10472_v12, 16  ;;  %v10481_v12 = vld [vmem:[#allocation11_spill] sm:$0xff] }
 0x1f1   : > { %v3337_v23 = vor.u32 %v9431_v29, %v3333_v58  ;;  %v1854_v45 = vor.u32 %v1853_v61, %v1852_v26  ;;  %v9461_v26 = vshrl.u32 %v9078_v49, 16 }
 0x1f3   : > { %7558 = vmatmul.mubr.msk.bf16.gmra.mrb[12].mxu1 %vm334_vm1, %v3318_v46  ;;  %v3329_v46 = vor.u32 %v9428_v33, %v3325_v54  ;;  %v3342_v59 = vsel %vm3202_vm7, %v3337_v23, %v3341_v27  ;;  %v9457_v54 = vshll.u32 %v9080_v30, 16  ;;  %v1855_v61 = vsel %vm1783_vm8, %v1850_v7, %v1854_v45  ;;  %v10482_v23 = vld [vmem:[#allocation15_spill] sm:$0xff] }
 0x1f4   : > { %7561 = vmatprep.mubr.msk.bf16.mxu1 %vm334_vm1, %v3326_v1  ;;  %v1856_v1 = vrot.slane %v10476_v24, 4  ;;  %v1861_v24 = vrot.slane %v10481_v12, 5 }
 0x1f5   : > { %10479 = vst [vmem:[#allocation5_spill] sm:$0xff] %v9457_v54  ;;  %v3357_v7 = vrot.slane %v9457_v54, 1 }
 0x1f6   : > { %7402 = vmatmul.mubr.msk.bf16.gmra.mrb[56].mxu0 %vm334_vm1, %v1847_v63  ;;  %v3334_v63 = vsel %vm3202_vm7, %v3329_v46, %v3333_v58  ;;  %v1858_v51 = vor.u32 %v1857_v0, %v1856_v1  ;;  %v3349_v58 = vrot.slane %v9448_v41, 1  ;;  %v3345_v0 = vor.u32 %v9452_v3, %v3341_v27 }
 0x1f7   : > { %7405 = vmatprep.mubr.msk.bf16.mxu0 %vm334_vm1, %v1851_v21  ;;  %v10480_v21 = vld [vmem:[#allocation10_spill] sm:$0xff] }
 0x1f8   : > { %v1860_v46 = vrot.slane %v10480_v21, 4  ;;  %v1859_v1 = vsel %vm1783_vm8, %v1854_v45, %v1858_v51  ;;  %v3353_v49 = vor.u32 %v9461_v26, %v3349_v58  ;;  %v9476_v21 = vshll.u32 %v9102_v34, 16 }
 0x1fa   : > { %10484 = vst [vmem:[#allocation7_spill] sm:$0xff] %v9476_v21  ;;  %v1862_v12 = vor.u32 %v1861_v24, %v1860_v46  ;;  %v3358_v45 = vsel %vm3202_vm7, %v3353_v49, %v3357_v7  ;;  %v3365_v27 = vrot.slane %v9476_v21, 1  ;;  %v10487_v46 = vld [vmem:[#allocation16_spill] sm:$0xff]  ;;  %v10489_v49 = vld [vmem:[#allocation21_spill] sm:$0xff] }
 0x1fb   : > { %7562 = vmatmul.mubr.msk.bf16.gmra.mrb[16].mxu1 %vm334_vm1, %v3334_v63  ;;  %v1864_v63 = vrot.slane %v10482_v23, 4  ;;  %v9483_v23 = vshrl.u32 %v9102_v34, 16  ;;  %v1868_v24 = vrot.slane %v10487_v46, 4  ;;  %v1872_v34 = vrot.slane %v10489_v49, 4 }
 0x1fc   : > { %7565 = vmatprep.mubr.msk.bf16.mxu1 %vm334_vm1, %v3342_v59  ;;  %v10483_v59 = vld [vmem:[#allocation17_spill] sm:$0xff] }
 0x1fd   : > { %v1865_v32 = vrot.slane %v10483_v59, 5  ;;  %10485 = vst [vmem:[#allocation40_spill] sm:$0xff] %v9483_v23  ;;  %v1863_v59 = vsel %vm1783_vm8, %v1858_v51, %v1862_v12  ;;  %v3373_v51 = vrot.slane %v9009_v31, 1  ;;  %v10492_v31 = vld [vmem:[#allocation24_spill] sm:$0xff] }
 0x1fe   : > { %7406 = vmatmul.mubr.msk.bf16.gmra.mrb[60].mxu0 %vm334_vm1, %v1855_v61  ;;  %v3350_v61 = vsel %vm3202_vm7, %v3345_v0, %v3349_v58  ;;  %v10488_v58 = vld [vmem:[#allocation20_spill] sm:$0xff] }
 0x1ff   : > { %7409 = vmatprep.mubr.msk.bf16.mxu0 %vm334_vm1, %v1859_v1  ;;  %v1866_v41 = vor.u32 %v1865_v32, %v1864_v63  ;;  %v9487_v1 = vshrl.u32 %v9080_v30, 16  ;;  %v1869_v32 = vrot.slane %v10488_v58, 5  ;;  %v3369_v30 = vor.u32 %v9483_v23, %v3365_v27 }
 0x201   : > { %10486 = vst [vmem:[#allocation41_spill] sm:$0xff] %v9487_v1  ;;  %v1867_v0 = vsel %vm1783_vm8, %v1862_v12, %v1866_v41  ;;  %v3361_v63 = vor.u32 %v9487_v1, %v3357_v7  ;;  %v3374_v7 = vsel %vm3202_vm7, %v3369_v30, %v3373_v51  ;;  %v3756_v12 = vld [vmem:[#allocation2 + $0x18] sm:$0xf8]  ;;  %v1777_v30 = vld [vmem:[#allocation2 + $0xc0] sm:$0x1f]  ;;  %v3800_v1 = vrot.slane %v9169_v52, 4 }
 0x203   : > { %7566 = vmatmul.mubr.msk.bf16.gmra.mrb[20].mxu1 %vm334_vm1, %v3350_v61  ;;  %v10490_v61 = vld [vmem:[#allocation23_spill] sm:$0xff]  ;;  %v3366_v46 = vsel %vm3202_vm7, %v3361_v63, %v3365_v27  ;;  %v10493_v27 = vld [vmem:[#allocation26_spill] sm:$0xff] }
 0x204   : > { %7569 = vmatprep.mubr.msk.bf16.mxu1 %vm334_vm1, %v3358_v45  ;;  %v1873_v21 = vrot.slane %v10490_v61, 5  ;;  %v1870_v45 = vor.u32 %v1869_v32, %v1868_v24  ;;  %v10491_v61 = vld [vmem:[#allocation22_spill] sm:$0xff]  ;;  %v1877_v24 = vrot.slane %v10492_v31, 5  ;;  %v1880_v32 = vrot.slane %v10493_v27, 4  ;;  %v10494_v63 = vld [vmem:[#allocation27_spill] sm:$0xff] }
 0x205   : > { %v1876_v23 = vrot.slane %v10491_v61, 4  ;;  %v1885_v61 = vshrl.u32 %v1777_v30, 16  ;;  %v1888_v31 = vshll.u32 %v1777_v30, 16 }
 0x206   : > { %7410 = vmatmul.mubr.msk.bf16.gmra.mrb[64].mxu0 %vm334_vm1, %v1863_v59  ;;  %v1874_v58 = vor.u32 %v1873_v21, %v1872_v34  ;;  %v3381_v59 = vrot.slane %v9019_v16, 1  ;;  %v1871_v49 = vsel %vm1783_vm8, %v1866_v41, %v1870_v45  ;;  %v1881_v34 = vrot.slane %v10494_v63, 5  ;;  %v3196_v41 = vld [vmem:[#allocation2 + $0xd0] sm:$0x1] }
 0x207   : > { %7413 = vmatprep.mubr.msk.bf16.mxu0 %vm334_vm1, %v1867_v0  ;;  %v3377_v0 = vor.u32 %v9004_v25, %v3373_v51  ;;  %v3790_v25 = vshll.u32 %v3756_v12, 16  ;;  %v3389_v51 = vrot.slane %v9034_v15, 1  ;;  %v3395_v54 = vshll.u32 %v3196_v41, 16 }
 0x208   : > { %v1875_v21 = vsel %vm1783_vm8, %v1870_v45, %v1874_v58  ;;  %v3385_v16 = vor.u32 %v9014_v53, %v3381_v59  ;;  %v1882_v53 = vor.u32 %v1881_v34, %v1880_v32  ;;  %v2288_v15 = vrot.slane %v8855_v14, 7 }
 0x209   : > { %v3792_v63 = vrot.slane %v3790_v25, 4  ;;  %v3397_v32 = vrot.slane %v3395_v54, 1  ;;  %v3815_v54 = vrot.slane %v9206_v38, 3 }
 0x20a   : > { %v3390_v45 = vsel %vm3202_vm7, %v3385_v16, %v3389_v51  ;;  %v3393_v16 = vor.u32 %v9022_v37, %v3389_v51  ;;  %v3818_v51 = vrot.slane %v9198_v42, 4 }
 0x20b   : > { %7570 = vmatmul.mubr.msk.bf16.gmra.mrb[24].mxu1 %vm334_vm1, %v3366_v46  ;;  %v3787_v46 = vshrl.u32 %v3756_v12, 16  ;;  %v2250_v12 = vld [vmem:[#allocation2 + $0x8] sm:$0x80] }
 0x20c   : > { %7573 = vmatprep.mubr.msk.bf16.mxu1 %vm334_vm1, %v3374_v7  ;;  %v1878_v7 = vor.u32 %v1877_v24, %v1876_v23  ;;  %v2282_v34 = vshrl.u32 %v2250_v12, 16  ;;  %v3398_v14 = vsel %vm3202_vm7, %v3393_v16, %v3397_v32  ;;  %v10497_v12 = vld [vmem:[#allocation30_spill] sm:$0xff]  ;;  %v3824_v16 = vrot.slane %v9291_v55, 3 }
 0x20d   : > { %v3789_v27 = vrot.slane %v3787_v46, 3  ;;  %v2291_v46 = vor.u32 %v8858_v22, %v2288_v15  ;;  %v3827_v32 = vrot.slane %v9212_v44, 4 }
 0x20e   : > { %7414 = vmatmul.mubr.msk.bf16.gmra.mrb[68].mxu0 %vm334_vm1, %v1871_v49  ;;  %v3382_v49 = vsel %vm3202_vm7, %v3377_v0, %v3381_v59  ;;  %v1879_v23 = vsel %vm1783_vm8, %v1874_v58, %v1878_v7  ;;  %v1887_v59 = vrot.slane %v1885_v61, 4  ;;  %v1890_v0 = vrot.slane %v1888_v31, 5 }
 0x20f   : > { %7417 = vmatprep.mubr.msk.bf16.mxu0 %vm334_vm1, %v1875_v21  ;;  %v3797_v21 = vrot.slane %v9188_v57, 3  ;;  %v1883_v24 = vsel %vm1783_vm8, %v1878_v7, %v1882_v53  ;;  %v3793_v30 = vor.u32 %v3792_v63, %v3789_v27  ;;  %v2284_v58 = vrot.slane %v2282_v34, 7 }
 0x210   : > { %v1891_v25 = vor.u32 %v1890_v0, %v1887_v59  ;;  %v3806_v61 = vrot.slane %v9195_v11, 3  ;;  %v3809_v31 = vrot.slane %v9172_v28, 4  ;;  %v8261_v59 = vld [vmem:[%s10275_s3 + $0x78] sm:$0xff]   ;;  %v10498_v0 = vld [vmem:[#allocation32_spill] sm:$0xff] }
 0x211   : > { %v3801_v41 = vor.u32 %v3800_v1, %v3797_v21  ;;  %v10495_v1 = vld [vmem:[#allocation29_spill] sm:$0xff]  ;;  %v2292_v27 = vsel %vm2280_vm5, %v2284_v58, %v2291_v46  ;;  %v3819_v21 = vor.u32 %v3818_v51, %v3815_v54  ;;  %v3836_v46 = vrot.slane %v9249_v20, 4  ;;  %v9562_v58 = vld [vmem:[%s10275_s3 + $0x80] sm:$0xff]   ;;  %v10500_v54 = vld [vmem:[#allocation34_spill] sm:$0xff] }
 0x212   : > { %v2296_v22 = vrot.slane %v10495_v1, 7  ;;  %v1892_v7 = vsel %vm1783_vm8, %v1882_v53, %v1891_v25  ;;  %v3810_v63 = vor.u32 %v3809_v31, %v3806_v61  ;;  %v10499_v25 = vld [vmem:[#allocation33_spill] sm:$0xff]  ;;  %v2320_v61 = vrot.slane %v8917_v17, 7 }
 0x213   : > { %7574 = vmatmul.mubr.msk.bf16.gmra.mrb[28].mxu1 %vm334_vm1, %v3382_v49  ;;  %v3802_v37 = vsel %vm1243_vm6, %v3793_v30, %v3801_v41  ;;  %v10496_v49 = vld [vmem:[#allocation31_spill] sm:$0xff]  ;;  %v3833_v30 = vrot.slane %v9284_v62, 3  ;;  %v3845_v17 = vrot.slane %v9279_v13, 4 }
 0x214   : > { %7577 = vmatprep.mubr.msk.bf16.mxu1 %vm334_vm1, %v3390_v45  ;;  %v2304_v45 = vrot.slane %v10496_v49, 7  ;;  %v3811_v53 = vsel %vm1243_vm6, %v3801_v41, %v3810_v63  ;;  %v3820_v34 = vsel %vm1243_vm6, %v3810_v63, %v3819_v21  ;;  %v3851_v49 = vrot.slane %v9329_v8, 3 }
 0x216   : > { %7418 = vmatmul.mubr.msk.bf16.gmra.mrb[72].mxu0 %vm334_vm1, %v1879_v23  ;;  %v2299_v23 = vor.u32 %v10497_v12, %v2296_v22 }
 0x217   : > { %7421 = vmatprep.mubr.msk.bf16.mxu0 %vm334_vm1, %v1883_v24  ;;  %v2307_v24 = vor.u32 %v10498_v0, %v2304_v45 }
 0x218   : > { %v2300_v41 = vsel %vm2280_vm5, %v2288_v15, %v2299_v23  ;;  %v2323_v15 = vor.u32 %v8920_v36, %v2320_v61  ;;  %v10501_v23 = vrot.slane %v8536_v47, 7 }
 0x219   : > { %v2308_v31 = vsel %vm2280_vm5, %v2296_v22, %v2307_v24  ;;  %v3860_v24 = vrot.slane %v9344_v5, 3 }
 0x21b   : > { %7578 = vmatmul.mubr.msk.bf16.gmra.mrb[32].mxu1 %vm334_vm1, %v3398_v14  ;;  %v2312_v14 = vrot.slane %v10499_v25, 7  ;;  %v3881_v25 = vrot.slane %v9351_v48, 4 }
 0x21c   : > { %7585 = vmatprep.mubr.msk.bf16.mxu1 %vm334_vm1, %v3802_v37  ;;  %v3828_v37 = vor.u32 %v3827_v32, %v3824_v16  ;;  %v3869_v16 = vrot.slane %v9347_v2, 3  ;;  %v3872_v32 = vrot.slane %v9333_v60, 4 }
 0x21d   : > { %v2315_v51 = vor.u32 %v10500_v54, %v2312_v14  ;;  %v2324_v36 = vsel %vm2280_vm5, %v2312_v14, %v2323_v15  ;;  %v3896_v54 = vrot.slane %v9406_v4, 3 }
 0x21e   : > { %7422 = vmatmul.mubr.msk.bf16.gmra.mrb[76].mxu0 %vm334_vm1, %v1892_v7  ;;  %v3829_v1 = vsel %vm1243_vm6, %v3819_v21, %v3828_v37  ;;  %v3842_v7 = vrot.slane %v9314_v50, 3 }
 0x21f   : > { %7429 = vmatprep.mubr.msk.bf16.mxu0 %vm334_vm1, %v2292_v27  ;;  %v3854_v27 = vrot.slane %v9304_v40, 4  ;;  %v2316_v63 = vsel %vm2280_vm5, %v2304_v45, %v2315_v51  ;;  %v3899_v51 = vrot.slane %v9370_v43, 4 }
 0x220   : > { %v3846_v21 = vor.u32 %v3845_v17, %v3842_v7  ;;  %v3908_v7 = vrot.slane %v9391_v18, 4 }
 0x221   : > { %v3855_v12 = vor.u32 %v3854_v27, %v3851_v49  ;;  %v3900_v17 = vor.u32 %v3899_v51, %v3896_v54  ;;  %v3914_v27 = vrot.slane %v9428_v33, 3  ;;  %v10508_v54 = vld [vmem:[#allocation40_spill] sm:$0xff] }
 0x222   : > { %v3959_v51 = vrot.slane %v10508_v54, 3 }
 0x223   : > { %7586 = vmatmul.mubr.msk.bf16.vlgmr.msra.gmra.mrb[36].mxu1 %vm334_vm1, %v3811_v53  ;;  %v3863_v53 = vrot.slane %v9310_v39, 4  ;;  %v3856_v45 = vsel %vm1243_vm6, %v3846_v21, %v3855_v12 }
 0x224   : > { %7634 = vmatpush3.bf16.msra.mxu1 %v9235_v6  ;;  %7589 = vmatprep.mubr.msk.bf16.mxu1 %vm334_vm1, %v3820_v34  ;;  %v3837_v6 = vor.u32 %v3836_v46, %v3833_v30  ;;  %v3873_v34 = vor.u32 %v3872_v32, %v3869_v16  ;;  %v3878_v46 = vrot.slane %v9383_v35, 3  ;;  %v10504_v16 = vld [vmem:[#allocation3_spill] sm:$0xff] }
 0x225   : > { %7635 = vmatprep.subr.bf16.mxu1 %v8261_v59  ;;  %v3935_v32 = vrot.slane %v10504_v16, 4 }
 0x226   : > { %7430 = vmatmul.mubr.msk.bf16.vlgmr.msra.gmra.mrb[32].mxu0 %vm334_vm1, %v2300_v41  ;;  %v3838_v22 = vsel %vm1243_vm6, %v3828_v37, %v3837_v6  ;;  %v3847_v0 = vsel %vm1243_vm6, %v3837_v6, %v3846_v21  ;;  %v3887_v41 = vrot.slane %v9374_v56, 3 }
 0x227   : > { %7433 = vmatprep.mubr.msk.bf16.mxu0 %vm334_vm1, %v2308_v31  ;;  %v3890_v31 = vrot.slane %v9364_v9, 4 }
 0x228   : > { %7636 = vmatpush3.bf16.msra.mxu1 %v8261_v59  ;;  %v2331_v59 = vor.u32 %v8924_v19, %v10501_v23  ;;  %v3864_v19 = vor.u32 %v3863_v53, %v3860_v24  ;;  %v10503_v23 = vld [vmem:[#allocation38_spill] sm:$0xff] }
 0x229   : > { %7685 = vmatprep.subr.bf16.mxu1 %v9562_v58  ;;  %v3891_v37 = vor.u32 %v3890_v31, %v3887_v41  ;;  %v10506_v41 = vld [vmem:[#allocation41_spill] sm:$0xff] }
 0x22a   : > { %v2332_v47 = vsel %vm2280_vm5, %v2320_v61, %v2331_v59  ;;  %v3865_v30 = vsel %vm1243_vm6, %v3855_v12, %v3864_v19  ;;  %v3874_v14 = vsel %vm1243_vm6, %v3864_v19, %v3873_v34  ;;  %v3882_v61 = vor.u32 %v3881_v25, %v3878_v46 }
 0x22b   : > { %7590 = vmatmul.mubr.msk.bf16.gmra.mrb[40].mxu1 %vm334_vm1, %v3829_v1  ;;  %v3905_v1 = vrot.slane %v9399_v10, 3  ;;  %v3901_v49 = vsel %vm1243_vm6, %v3891_v37, %v3900_v17  ;;  %v3923_v12 = vrot.slane %v9431_v29, 3  ;;  %v3926_v59 = vrot.slane %v10503_v23, 4 }
 0x22c   : > { %7593 = vmatprep.mubr.msk.bf16.mxu1 %vm334_vm1, %v3838_v22  ;;  %v3883_v6 = vsel %vm1243_vm6, %v3873_v34, %v3882_v61  ;;  %v3892_v15 = vsel %vm1243_vm6, %v3882_v61, %v3891_v37  ;;  %v3941_v19 = vrot.slane %v9461_v26, 3  ;;  %v10505_v34 = vld [vmem:[#allocation4_spill] sm:$0xff]  ;;  %v3950_v31 = vrot.slane %v10506_v41, 3  ;;  %v10507_v61 = vld [vmem:[#allocation5_spill] sm:$0xff] }
 0x22d   : > { %v3909_v22 = vor.u32 %v3908_v7, %v3905_v1  ;;  %v3927_v24 = vor.u32 %v3926_v59, %v3923_v12  ;;  %v3953_v37 = vrot.slane %v10507_v61, 4  ;;  %v10511_v12 = vld [vmem:[#allocation19_spill] sm:$0xff] }
 0x22e   : > { %7434 = vmatmul.mubr.msk.bf16.gmra.mrb[36].mxu0 %vm334_vm1, %v2316_v63  ;;  %v10502_v63 = vld [vmem:[#allocation39_spill] sm:$0xff]  ;;  %v10512_v59 = vshrl.u32 %v10511_v12, 16 }
 0x22f   : > { %7437 = vmatprep.mubr.msk.bf16.mxu0 %vm334_vm1, %v2324_v36  ;;  %v3917_v36 = vrot.slane %v10502_v63, 4  ;;  %v3910_v21 = vsel %vm1243_vm6, %v3900_v17, %v3909_v22  ;;  %v3954_v7 = vor.u32 %v3953_v37, %v3950_v31 }
 0x233   : > { %7594 = vmatmul.mubr.msk.bf16.gmra.mrb[44].mxu1 %vm334_vm1, %v3847_v0  ;;  %v3918_v0 = vor.u32 %v3917_v36, %v3914_v27  ;;  %v9640_v27 = vld [vmem:[#allocation2 + $0xd8] sm:$0xf]  ;;  %v10510_v36 = vld [vmem:[#allocation35_spill] sm:$0xff] }
 0x234   : > { %7597 = vmatprep.mubr.msk.bf16.mxu1 %vm334_vm1, %v3856_v45  ;;  %v3932_v45 = vrot.slane %v9452_v3, 3 }
 0x235   : > { %v3919_v53 = vsel %vm1243_vm6, %v3909_v22, %v3918_v0 }
 0x236   : > { %7438 = vmatmul.mubr.msk.bf16.gmra.mrb[40].mxu0 %vm334_vm1, %v2332_v47  ;;  %v3928_v47 = vsel %vm1243_vm6, %v3918_v0, %v3927_v24  ;;  %v3936_v46 = vor.u32 %v3935_v32, %v3932_v45  ;;  %v3995_v0 = vrot.slane %v10512_v59, 3  ;;  %v10514_v45 = vld [vmem:[#allocation14_spill] sm:$0xff]  ;;  %v4002_v32 = vshrl.u32 %v9640_v27, 16 }
 0x23b   : > { %7598 = vmatmul.mubr.msk.bf16.gmra.mrb[0].mxu1 %vm334_vm1, %v3865_v30  ;;  %v3944_v30 = vrot.slane %v10505_v34, 4 }
 0x23c   : > { %7601 = vmatprep.mubr.msk.bf16.mxu1 %vm334_vm1, %v3874_v14  ;;  %v3937_v14 = vsel %vm1243_vm6, %v3927_v24, %v3936_v46  ;;  %v10513_v24 = vshll.u32 %v10511_v12, 16 }
 0x23d   : > { %v3945_v25 = vor.u32 %v3944_v30, %v3941_v19  ;;  %v4004_v30 = vrot.slane %v4002_v32, 3 }
 0x23f   : > { %v3955_v22 = vsel %vm1243_vm6, %v3945_v25, %v3954_v7 }
 0x243   : > { %7602 = vmatmul.mubr.msk.bf16.gmra.mrb[4].mxu1 %vm334_vm1, %v3883_v6  ;;  %v3946_v6 = vsel %vm1243_vm6, %v3936_v46, %v3945_v25  ;;  %v10515_v25 = vld [vmem:[#allocation36_spill] sm:$0xff] }
 0x244   : > { %7605 = vmatprep.mubr.msk.bf16.mxu1 %vm334_vm1, %v3892_v15  ;;  %v10509_v15 = vld [vmem:[#allocation7_spill] sm:$0xff] }
 0x245   : > { %v3962_v1 = vrot.slane %v10509_v15, 4 }
 0x247   : > { %v3963_v17 = vor.u32 %v3962_v1, %v3959_v51  ;;  %v10517_v1 = vld [vmem:[#allocation25_spill] sm:$0xff] }
 0x24b   : > { %7606 = vmatmul.mubr.msk.bf16.gmra.mrb[8].mxu1 %vm334_vm1, %v3901_v49  ;;  %v3964_v49 = vsel %vm1243_vm6, %v3954_v7, %v3963_v17  ;;  %v4399_v7 = vrot.slane %v10517_v1, 4  ;;  %v10524_v1 = vld [vmem:[#allocation63_spill] sm:$0xff] }
 0x24c   : > { %7609 = vmatprep.mubr.msk.bf16.mxu1 %vm334_vm1, %v3910_v21  ;;  %v3973_v21 = vsel %vm1243_vm6, %v3963_v17, %v10510_v36 }
 0x253   : > { %7610 = vmatmul.mubr.msk.bf16.gmra.mrb[12].mxu1 %vm334_vm1, %v3919_v53  ;;  %v3998_v53 = vrot.slane %v10513_v24, 4 }
 0x254   : > { %7613 = vmatprep.mubr.msk.bf16.mxu1 %vm334_vm1, %v3928_v47  ;;  %v4005_v47 = vshll.u32 %v9640_v27, 16 }
 0x255   : > { %v3999_v19 = vor.u32 %v3998_v53, %v3995_v0  ;;  %v8263_v0 = vld [vmem:[%s10275_s3 + $0x88] sm:$0xff]  }
 0x256   : > { %v4007_v46 = vrot.slane %v4005_v47, 4  ;;  %v10521_v47 = vld [vmem:[#allocation55_spill] sm:$0xff] }
 0x258   : > { %v4008_v37 = vor.u32 %v4007_v46, %v4004_v30 }
 0x25a   : > { %v4009_v17 = vsel %vm1243_vm6, %v3999_v19, %v4008_v37 }
 0x25b   : > { %7614 = vmatmul.mubr.msk.bf16.gmra.mrb[16].mxu1 %vm334_vm1, %v3937_v14  ;;  %v10516_v14 = vld [vmem:[#allocation12_spill] sm:$0xff] }
 0x25c   : > { %7617 = vmatprep.mubr.msk.bf16.mxu1 %vm334_vm1, %v3946_v6  ;;  %v4000_v31 = vsel %vm1243_vm6, %v10516_v14, %v3999_v19  ;;  %v9658_v6 = vld [vmem:[#allocation2 + $0x18] sm:$0xf0]  ;;  %v4407_v19 = vrot.slane %v10521_v47, 4 }
 0x25d   : > { %v4398_v51 = vrot.slane %v9658_v6, 4  ;;  %v10530_v47 = vld [vmem:[#allocation42_spill] sm:$0xff] }
 0x263   : > { %7618 = vmatmul.mubr.msk.bf16.gmra.mrb[20].mxu1 %vm334_vm1, %v3955_v22  ;;  %v4400_v22 = vsel %vm884_vm2, %v4398_v51, %v4399_v7 }
 0x264   : > { %7621 = vmatprep.mubr.msk.bf16.mxu1 %vm334_vm1, %v3964_v49  ;;  %v10518_v49 = vld [vmem:[#allocation53_spill] sm:$0xff] }
 0x265   : > { %v4401_v36 = vrot.slane %v10518_v49, 4 }
 0x267   : > { %v4402_v24 = vsel %vm884_vm2, %v4399_v7, %v4401_v36  ;;  %v4413_v7 = vrot.slane %v10524_v1, 4  ;;  %v10533_v1 = vld [vmem:[#allocation45_spill] sm:$0xff] }
 0x26b   : > { %7622 = vmatmul.mubr.msk.bf16.gmra.mrb[24].mxu1 %vm334_vm1, %v3973_v21  ;;  %v10519_v21 = vld [vmem:[#allocation28_spill] sm:$0xff] }
 0x26c   : > { %7625 = vmatprep.mubr.msk.bf16.mxu1 %vm334_vm1, %v10514_v45  ;;  %v4403_v59 = vrot.slane %v10519_v21, 4  ;;  %v10520_v45 = vld [vmem:[#allocation54_spill] sm:$0xff]  ;;  %v10526_v21 = vld [vmem:[#allocation65_spill] sm:$0xff] }
 0x26d   : > { %v4405_v32 = vrot.slane %v10520_v45, 4 }
 0x26e   : > { %v4404_v53 = vsel %vm884_vm2, %v4401_v36, %v4403_v59 }
 0x26f   : > { %v4406_v30 = vsel %vm884_vm2, %v4403_v59, %v4405_v32  ;;  %v4408_v46 = vsel %vm884_vm2, %v4405_v32, %v4407_v19  ;;  %v4417_v59 = vrot.slane %v10526_v21, 4  ;;  %v10529_v32 = vld [vmem:[#allocation18_spill] sm:$0xff] }
 0x273   : > { %7626 = vmatmul.mubr.msk.bf16.gmra.mrb[28].mxu1 %vm334_vm1, %v10515_v25  ;;  %v10522_v25 = vld [vmem:[#allocation57_spill] sm:$0xff] }
 0x274   : > { %7629 = vmatprep.mubr.msk.bf16.mxu1 %vm334_vm1, %v4000_v31  ;;  %v4409_v14 = vrot.slane %v10522_v25, 4  ;;  %v10523_v31 = vld [vmem:[#allocation62_spill] sm:$0xff]  ;;  %v10531_v25 = vld [vmem:[#allocation43_spill] sm:$0xff] }
 0x276   : > { %v4410_v37 = vsel %vm884_vm2, %v4407_v19, %v4409_v14 }
 0x27b   : > { %7630 = vmatmul.mubr.msk.bf16.gmra.mrb[32].mxu1 %vm334_vm1, %v4009_v17  ;;  %v10525_v17 = vld [vmem:[#allocation64_spill] sm:$0xff] }
 0x27c   : > { %7637 = vmatprep.mubr.msk.bf16.mxu1 %vm334_vm1, %v4400_v22  ;;  %v4415_v22 = vrot.slane %v10525_v17, 4 }
 0x27e   : > { %v4416_v36 = vsel %vm884_vm2, %v4413_v7, %v4415_v22 }
 0x283   : > { %7638 = vmatmul.mubr.msk.bf16.vlgmr.msra.gmra.mrb[36].mxu1 %vm334_vm1, %v4402_v24  ;;  %v10527_v24 = vld [vmem:[#allocation37_spill] sm:$0xff] }
 0x284   : > { %7686 = vmatpush3.bf16.msra.mxu1 %v9562_v58  ;;  %7641 = vmatprep.mubr.msk.bf16.mxu1 %vm334_vm1, %v4404_v53  ;;  %v4411_v58 = vrot.slane %v10523_v31, 4  ;;  %v10528_v53 = vrot.slane %v10527_v24, 4  ;;  %v10532_v31 = vld [vmem:[#allocation44_spill] sm:$0xff] }
 0x285   : > { %7687 = vmatprep.subr.bf16.mxu1 %v8263_v0  ;;  %v10538_v24 = vld [vmem:[#allocation48_spill] sm:$0xff] }
 0x286   : > { %v4412_v51 = vsel %vm884_vm2, %v4409_v14, %v4411_v58  ;;  %v4414_v49 = vsel %vm884_vm2, %v4411_v58, %v4413_v7  ;;  %v4420_v45 = vsel %vm884_vm2, %v4417_v59, %v10528_v53  ;;  %v8264_v7 = vld [vmem:[%s10277_s5] sm:$0xff]  }
 0x287   : > { %7737 = vmatprep.subr.bf16.mxu0 %v8264_v7 }
 0x288   : > { %7688 = vmatpush3.bf16.msra.mxu1 %v8263_v0  ;;  %v4418_v0 = vsel %vm884_vm2, %v4415_v22, %v4417_v59  ;;  %v10534_v22 = vld [vmem:[#allocation46_spill] sm:$0xff]  ;;  %7738 = vmatpush3.bf16.msra.mxu0 %v8264_v7  ;;  %v10536_v59 = vld [vmem:[#allocation47_spill] sm:$0xff]  ;;  %v4814_v7 = vshll.u32 %v9658_v6, 16 }
 0x28b   : > { %7642 = vmatmul.mubr.msk.bf16.gmra.mrb[40].mxu1 %vm334_vm1, %v4406_v30 }
 0x28c   : > { %7645 = vmatprep.mubr.msk.bf16.mxu1 %vm334_vm1, %v4408_v46 }
 0x293   : > { %7646 = vmatmul.mubr.msk.bf16.gmra.mrb[44].mxu1 %vm334_vm1, %v4410_v37 }
 0x294   : > { %7649 = vmatprep.mubr.msk.bf16.mxu1 %vm334_vm1, %v4412_v51 }
 0x29b   : > { %7650 = vmatmul.mubr.msk.bf16.gmra.mrb[0].mxu1 %vm334_vm1, %v4414_v49 }
 0x29c   : > { %7653 = vmatprep.mubr.msk.bf16.mxu1 %vm334_vm1, %v4416_v36 }
 0x2a3   : > { %7654 = vmatmul.mubr.msk.bf16.gmra.mrb[4].mxu1 %vm334_vm1, %v4418_v0 }
 0x2a4   : > { %7657 = vmatprep.mubr.msk.bf16.mxu1 %vm334_vm1, %v4420_v45 }
 0x2ab   : > { %7658 = vmatmul.mubr.msk.bf16.gmra.mrb[8].mxu1 %vm334_vm1, %v10529_v32 }
 0x2ac   : > { %7661 = vmatprep.mubr.msk.bf16.mxu1 %vm334_vm1, %v10530_v47  ;;  %v10542_v47 = vld [vmem:[#allocation49_spill] sm:$0xff] }
 0x2b1   : > { %v9705_v19 = vpop.f32.mrb[44].mxu0 }
 0x2b2   : > { %v9707_v30 = vpop.f32.mrb[45].mxu0 }
 0x2b3   : > { %v9709_v46 = vpop.f32.mrb[46].mxu0  ;;  %7662 = vmatmul.mubr.msk.bf16.gmra.mrb[12].mxu1 %vm334_vm1, %v10531_v25 }
 0x2b4   : > { %v9713_v14 = vpop.f32.mrb[47].mxu0  ;;  %7665 = vmatprep.mubr.msk.bf16.mxu1 %vm334_vm1, %v10532_v31  ;;  %v10544_v31 = vld [vmem:[#allocation50_spill] sm:$0xff] }
 0x2b9   : > { %v9717_v58 = vpop.f32.mrb[48].mxu0 }
 0x2ba   : > { %v9719_v37 = vpop.f32.mrb[49].mxu0 }
 0x2bb   : > { %v9721_v51 = vpop.f32.mrb[50].mxu0  ;;  %7666 = vmatmul.mubr.msk.bf16.gmra.mrb[16].mxu1 %vm334_vm1, %v10533_v1  ;;  %v4811_v1 = vshrl.u32 %v9658_v6, 16  ;;  %v4445_v6 = vrot.slane %v9640_v27, 4 }
 0x2bc   : > { %v9728_v17 = vpop.f32.mrb[51].mxu0  ;;  %7669 = vmatprep.mubr.msk.bf16.mxu1 %vm334_vm1, %v10534_v22 }
 0x2c1   : > { %v9732_v49 = vpop.f32.mrb[52].mxu0 }
 0x2c2   : > { %v9734_v36 = vpop.f32.mrb[53].mxu0 }
 0x2c3   : > { %v9736_v21 = vpop.f32.mrb[54].mxu0  ;;  %7670 = vmatmul.mubr.msk.bf16.gmra.mrb[20].mxu1 %vm334_vm1, %v10536_v59 }
 0x2c4   : > { %10535 = vst [vmem:[#allocation6_spill] sm:$0xff] %v9736_v21  ;;  %v9740_v0 = vpop.f32.mrb[55].mxu0  ;;  %7673 = vmatprep.mubr.msk.bf16.mxu1 %vm334_vm1, %v10538_v24 }
 0x2c5   : > { %10537 = vst [vmem:[#allocation8_spill] sm:$0xff] %v9740_v0  ;;  %v10549_v0 = vld [vmem:[#allocation52_spill] sm:$0xff] }
 0x2c9   : > { %v9744_v53 = vpop.f32.mrb[56].mxu0 }
 0x2ca   : > { %10539 = vst [vmem:[#allocation9_spill] sm:$0xff] %v9744_v53  ;;  %v9746_v45 = vpop.f32.mrb[57].mxu0  ;;  %v4819_v53 = vrot.slane %v9169_v52, 5  ;;  %v4823_v52 = vrot.slane %v9172_v28, 5 }
 0x2cb   : > { %10540 = vst [vmem:[#allocation13_spill] sm:$0xff] %v9746_v45  ;;  %v9748_v32 = vpop.f32.mrb[58].mxu0  ;;  %7674 = vmatmul.mubr.msk.bf16.gmra.mrb[24].mxu1 %vm334_vm1, %v10542_v47  ;;  %v10548_v45 = vld [vmem:[#allocation51_spill] sm:$0xff]  ;;  %v4816_v47 = vrot.slane %v4814_v7, 5 }
 0x2cc   : > { %10541 = vst [vmem:[#allocation10_spill] sm:$0xff] %v9748_v32  ;;  %v9752_v25 = vpop.f32.mrb[59].mxu0  ;;  %7677 = vmatprep.mubr.msk.bf16.mxu1 %vm334_vm1, %v10544_v31  ;;  %v4813_v32 = vrot.slane %v4811_v1, 4 }
 0x2cd   : > { %10543 = vst [vmem:[#allocation11_spill] sm:$0xff] %v9752_v25  ;;  %v4818_v25 = vrot.slane %v9188_v57, 4  ;;  %v4822_v57 = vrot.slane %v9195_v11, 4 }
 0x2d1   : > { %v9758_v22 = vpop.f32.mrb[60].mxu0 }
 0x2d2   : > { %10545 = vst [vmem:[#allocation15_spill] sm:$0xff] %v9758_v22  ;;  %v9760_v59 = vpop.f32.mrb[61].mxu0  ;;  %v4817_v22 = vor.u32 %v4816_v47, %v4813_v32  ;;  %v4824_v32 = vor.u32 %v4823_v52, %v4822_v57 }
 0x2d3   : > { %10546 = vst [vmem:[#allocation17_spill] sm:$0xff] %v9760_v59  ;;  %v9762_v24 = vpop.f32.mrb[62].mxu0  ;;  %7678 = vmatmul.mubr.msk.bf16.gmra.mrb[28].mxu1 %vm334_vm1, %v10548_v45  ;;  %v4820_v59 = vor.u32 %v4819_v53, %v4818_v25 }
 0x2d4   : > { %10547 = vst [vmem:[#allocation16_spill] sm:$0xff] %v9762_v24  ;;  %v9768_v31 = vpop.f32.mrb[63].mxu0  ;;  %7681 = vmatprep.mubr.msk.bf16.mxu1 %vm334_vm1, %v10549_v0  ;;  %v10550_v24 = vrot.slane %v10511_v12, 4  ;;  %v4826_v0 = vrot.slane %v9206_v38, 4  ;;  %v4827_v12 = vrot.slane %v9198_v42, 5  ;;  %v4834_v38 = vrot.slane %v9284_v62, 4 }
 0x2d5   : > { %v4821_v27 = vsel %vm1783_vm8, %v4817_v22, %v4820_v59  ;;  %v4825_v28 = vsel %vm1783_vm8, %v4820_v59, %v4824_v32  ;;  %v4831_v22 = vrot.slane %v9212_v44, 5  ;;  %v4842_v62 = vrot.slane %v9329_v8, 4 }
 0x2d6   : > { %v4446_v21 = vsel %vm884_vm2, %v10550_v24, %v4445_v6  ;;  %v4828_v25 = vor.u32 %v4827_v12, %v4826_v0  ;;  %v4835_v6 = vrot.slane %v9249_v20, 5  ;;  %v4838_v0 = vrot.slane %v9314_v50, 4 }
 0x2d7   : > { %v4839_v12 = vrot.slane %v9279_v13, 5  ;;  %v4850_v8 = vrot.slane %v9347_v2, 4 }
 0x2d8   : > { %v4829_v42 = vsel %vm1783_vm8, %v4824_v32, %v4828_v25  ;;  %v4836_v59 = vor.u32 %v4835_v6, %v4834_v38  ;;  %v4846_v38 = vrot.slane %v9344_v5, 4  ;;  %v4847_v6 = vrot.slane %v9310_v39, 5 }
 0x2d9   : > { %v9776_v45 = vpop.f32.mrb[64].mxu0 }
 0x2da   : > { %v9778_v1 = vpop.f32.mrb[65].mxu0 }
 0x2db   : > { %v9782_v7 = vpop.f32.mrb[66].mxu0  ;;  %7682 = vmatmul.mubr.msk.bf16.gmra.mrb[32].mxu1 %vm334_vm1, %v4446_v21  ;;  %v4830_v21 = vrot.slane %v9291_v55, 4 }
 0x2dc   : > { %v9788_v53 = vpop.f32.mrb[67].mxu0  ;;  %7689 = vmatprep.mubr.msk.bf16.mxu1 %vm334_vm1, %v4821_v27 }
 0x2dd   : > { %v4832_v52 = vor.u32 %v4831_v22, %v4830_v21  ;;  %v4840_v22 = vor.u32 %v4839_v12, %v4838_v0  ;;  %v4848_v12 = vor.u32 %v4847_v6, %v4846_v38 }
 0x2df   : > { %v4833_v44 = vsel %vm1783_vm8, %v4828_v25, %v4832_v52  ;;  %v4837_v20 = vsel %vm1783_vm8, %v4832_v52, %v4836_v59  ;;  %v4841_v13 = vsel %vm1783_vm8, %v4836_v59, %v4840_v22 }
 0x2e1   : > { %v9791_v24 = vpop.f32.mrb[68].mxu0 }
 0x2e2   : > { %v9793_v11 = vpop.f32.mrb[69].mxu0 }
 0x2e3   : > { %v9798_v47 = vpop.f32.mrb[70].mxu0  ;;  %7690 = vmatmul.mubr.msk.bf16.vlgmr.msra.gmra.mrb[36].mxu1 %vm334_vm1, %v4825_v28  ;;  %v4843_v28 = vrot.slane %v9304_v40, 5 }
 0x2e4   : > { %v9804_v57 = vpop.f32.mrb[71].mxu0  ;;  %7693 = vmatprep.mubr.msk.bf16.mxu1 %vm334_vm1, %v4829_v42 }
 0x2e5   : > { %v4844_v25 = vor.u32 %v4843_v28, %v4842_v62  ;;  %v4854_v62 = vrot.slane %v9383_v35, 4  ;;  %v4855_v28 = vrot.slane %v9351_v48, 5 }
 0x2e7   : > { %v4845_v40 = vsel %vm1783_vm8, %v4840_v22, %v4844_v25  ;;  %v4849_v39 = vsel %vm1783_vm8, %v4844_v25, %v4848_v12  ;;  %v4856_v6 = vor.u32 %v4855_v28, %v4854_v62 }
 0x2e9   : > { %v9807_v27 = vpop.f32.mrb[72].mxu0 }
 0x2ea   : > { %v9809_v55 = vpop.f32.mrb[73].mxu0 }
 0x2eb   : > { %v9814_v32 = vpop.f32.mrb[74].mxu0  ;;  %7694 = vmatmul.mubr.msk.bf16.gmra.mrb[40].mxu1 %vm334_vm1, %v4833_v44  ;;  %v4851_v44 = vrot.slane %v9333_v60, 5  ;;  %v4858_v60 = vrot.slane %v9374_v56, 4  ;;  %v4866_v56 = vrot.slane %v9399_v10, 4  ;;  %v4874_v10 = vrot.slane %v9431_v29, 4 }
 0x2ec   : > { %v9820_v21 = vpop.f32.mrb[75].mxu0  ;;  %7697 = vmatprep.mubr.msk.bf16.mxu1 %vm334_vm1, %v4837_v20  ;;  %v4882_v29 = vrot.slane %v9461_v26, 4  ;;  %v4891_v26 = vrot.slane %v10509_v15, 5 }
 0x2ed   : > { %v4852_v59 = vor.u32 %v4851_v44, %v4850_v8  ;;  %v4862_v8 = vrot.slane %v9406_v4, 4  ;;  %v4863_v44 = vrot.slane %v9370_v43, 5 }
 0x2ef   : > { %v4853_v2 = vsel %vm1783_vm8, %v4848_v12, %v4852_v59  ;;  %v4857_v48 = vsel %vm1783_vm8, %v4852_v59, %v4856_v6  ;;  %v4864_v28 = vor.u32 %v4863_v44, %v4862_v8 }
 0x2f1   : > { %v9823_v42 = vpop.f32.mrb[76].mxu0 }
 0x2f2   : > { %v9825_v50 = vpop.f32.mrb[77].mxu0 }
 0x2f3   : > { %v9830_v52 = vpop.f32.mrb[78].mxu0  ;;  %7698 = vmatmul.mubr.msk.bf16.gmra.mrb[44].mxu1 %vm334_vm1, %v4841_v13  ;;  %v4859_v13 = vrot.slane %v9364_v9, 5 }
 0x2f4   : > { %v9836_v0 = vpop.f32.mrb[79].mxu0  ;;  %7701 = vmatprep.mubr.msk.bf16.mxu1 %vm334_vm1, %v4845_v40 }
 0x2f5   : > { %v4860_v25 = vor.u32 %v4859_v13, %v4858_v60  ;;  %v4870_v60 = vrot.slane %v9428_v33, 4  ;;  %v4871_v13 = vrot.slane %v10502_v63, 5  ;;  %v4878_v63 = vrot.slane %v9452_v3, 4 }
 0x2f6   : > { %v4887_v3 = vrot.slane %v10507_v61, 5  ;;  %v4804_v61 = vld [vmem:[#allocation2 + $0xd8] sm:$0x1f] }
 0x2f7   : > { %v4861_v9 = vsel %vm1783_vm8, %v4856_v6, %v4860_v25  ;;  %v4865_v43 = vsel %vm1783_vm8, %v4860_v25, %v4864_v28  ;;  %v4872_v44 = vor.u32 %v4871_v13, %v4870_v60  ;;  %v4890_v60 = vrot.slane %v10508_v54, 4  ;;  %v10552_v54 = vld [vmem:[#allocation58_spill] sm:$0xff] }
 0x2f8   : > { %v4911_v15 = vshrl.u32 %v4804_v61, 16 }
 0x2f9   : > { %v9839_v20 = vpop.f32.mrb[32].mxu0  ;;  %v4892_v13 = vor.u32 %v4891_v26, %v4890_v60 }
 0x2fa   : > { %v9841_v5 = vpop.f32.mrb[33].mxu0 }
 0x2fb   : > { %v9846_v22 = vpop.f32.mrb[34].mxu0  ;;  %7702 = vmatmul.mubr.msk.bf16.gmra.mrb[0].mxu1 %vm334_vm1, %v4849_v39  ;;  %v4867_v39 = vrot.slane %v9391_v18, 5 }
 0x2fc   : > { %v9852_v38 = vpop.f32.mrb[35].mxu0  ;;  %7705 = vmatprep.mubr.msk.bf16.mxu1 %vm334_vm1, %v4853_v2 }
 0x2fd   : > { %v4868_v59 = vor.u32 %v4867_v39, %v4866_v56 }
 0x2ff   : > { %v4869_v18 = vsel %vm1783_vm8, %v4864_v28, %v4868_v59  ;;  %v4873_v33 = vsel %vm1783_vm8, %v4868_v59, %v4872_v44  ;;  %v4886_v59 = vrot.slane %v10506_v41, 4 }
 0x301   : > { %v9855_v40 = vpop.f32.mrb[36].mxu0 }
 0x302   : > { %v9857_v35 = vpop.f32.mrb[37].mxu0 }
 0x303   : > { %v9862_v12 = vpop.f32.mrb[38].mxu0  ;;  %7706 = vmatmul.mubr.msk.bf16.gmra.mrb[4].mxu1 %vm334_vm1, %v4857_v48  ;;  %v4875_v48 = vrot.slane %v10503_v23, 5  ;;  %v4883_v23 = vrot.slane %v10505_v34, 5  ;;  %v4888_v34 = vor.u32 %v4887_v3, %v4886_v59 }
 0x304   : > { %v9868_v62 = vpop.f32.mrb[39].mxu0  ;;  %7709 = vmatprep.mubr.msk.bf16.mxu1 %vm334_vm1, %v4861_v9  ;;  %v4879_v9 = vrot.slane %v10504_v16, 5 }
 0x305   : > { %v4876_v25 = vor.u32 %v4875_v48, %v4874_v10  ;;  %v4884_v28 = vor.u32 %v4883_v23, %v4882_v29  ;;  %v4893_v41 = vsel %vm1783_vm8, %v4888_v34, %v4892_v13  ;;  %v10551_v10 = vld [vmem:[#allocation56_spill] sm:$0xff]  ;;  %v10555_v29 = vld [vmem:[#allocation59_spill] sm:$0xff] }
 0x306   : > { %v4880_v39 = vor.u32 %v4879_v9, %v4878_v63  ;;  %v4897_v48 = vsel %vm1783_vm8, %v4892_v13, %v10551_v10  ;;  %v10553_v63 = vld [vmem:[#allocation60_spill] sm:$0xff]  ;;  %v10554_v9 = vld [vmem:[#allocation61_spill] sm:$0xff] }
 0x307   : > { %v4877_v56 = vsel %vm1783_vm8, %v4872_v44, %v4876_v25  ;;  %v4914_v44 = vshll.u32 %v4804_v61, 16 }
 0x308   : > { %v4885_v16 = vsel %vm1783_vm8, %v4880_v39, %v4884_v28 }
 0x309   : > { %v9871_v2 = vpop.f32.mrb[40].mxu0 }
 0x30a   : > { %v9873_v4 = vpop.f32.mrb[41].mxu0 }
 0x30b   : > { %v9878_v6 = vpop.f32.mrb[42].mxu0  ;;  %7710 = vmatmul.mubr.msk.bf16.gmra.mrb[8].mxu1 %vm334_vm1, %v4865_v43  ;;  %v4881_v43 = vsel %vm1783_vm8, %v4876_v25, %v4880_v39  ;;  %v4913_v25 = vrot.slane %v4911_v15, 4  ;;  %v8265_v39 = vld [vmem:[%s10277_s5 + $0x8] sm:$0xff]  }
 0x30c   : > { %v9884_v8 = vpop.f32.mrb[43].mxu0  ;;  %7713 = vmatprep.mubr.msk.bf16.mxu1 %vm334_vm1, %v4869_v18  ;;  %v4889_v18 = vsel %vm1783_vm8, %v4884_v28, %v4888_v34  ;;  %7739 = vmatprep.subr.bf16.mxu0 %v8265_v39  ;;  %v8266_v28 = vld [vmem:[%s10279_s7] sm:$0xff]  }
 0x30d   : > { %7740 = vmatpush3.bf16.msra.mxu0 %v8265_v39  ;;  %v8267_v39 = vld [vmem:[%s10279_s7 + $0x8] sm:$0xff]  }
 0x30e   : > { %7789 = vmatprep.subr.bf16.mxu0 %v8266_v28 }
 0x313   : > { %7714 = vmatmul.mubr.msk.bf16.gmra.mrb[12].mxu1 %vm334_vm1, %v4873_v33  ;;  %v4916_v33 = vrot.slane %v4914_v44, 5 }
 0x314   : > { %7717 = vmatprep.mubr.msk.bf16.mxu1 %vm334_vm1, %v4877_v56 }
 0x315   : > { %v4917_v56 = vor.u32 %v4916_v33, %v4913_v25 }
 0x317   : > { %v4918_v23 = vsel %vm1783_vm8, %v10555_v29, %v4917_v56 }
 0x31b   : > { %7718 = vmatmul.mubr.msk.bf16.gmra.mrb[16].mxu1 %vm334_vm1, %v4881_v43  ;;  %v9928_v43 = vld [vmem:[%s10276_s4] ss:$0 sm:$0xff] }
 0x31c   : > { %7721 = vmatprep.mubr.msk.bf16.mxu1 %vm334_vm1, %v4885_v16 }
 0x323   : > { %7722 = vmatmul.mubr.msk.bf16.gmra.mrb[20].mxu1 %vm334_vm1, %v4889_v18 }
 0x324   : > { %7725 = vmatprep.mubr.msk.bf16.mxu1 %vm334_vm1, %v4893_v41 }
 0x32b   : > { %7726 = vmatmul.mubr.msk.bf16.gmra.mrb[24].mxu1 %vm334_vm1, %v4897_v48 }
 0x32c   : > { %7729 = vmatprep.mubr.msk.bf16.mxu1 %vm334_vm1, %v10552_v54 }
 0x333   : > { %7730 = vmatmul.mubr.msk.bf16.gmra.mrb[28].mxu1 %vm334_vm1, %v10553_v63 }
 0x334   : > { %7733 = vmatprep.mubr.msk.bf16.mxu1 %vm334_vm1, %v10554_v9 }
 0x33b   : > { %7734 = vmatmul.mubr.msk.bf16.gmra.mrb[32].mxu1 %vm334_vm1, %v4918_v23 }
 0x3b6   : > { %v7691_v59 = vpop.f32.mrb[36].mxu1 }
 0x3b7   : > { %v7833_v3 = vadd.f32 %v7691_v59, %v9839_v20  ;;  %v5037_v16 = vpop.f32.mrb[37].mxu1 }
 0x3b8   : > { %v7834_v60 = vadd.f32 %v5037_v16, %v9841_v5  ;;  %v7692_v26 = vpop.f32.mrb[38].mxu1 }
 0x3b9   : > { %v5284_v34 = vadd.f32 %v7833_v3, %v9928_v43  ;;  %v7835_v13 = vadd.f32 %v7692_v26, %v9846_v22  ;;  %v5040_v18 = vpop.f32.mrb[39].mxu1 }
 0x3ba   : > { %v5282_v41 = vadd.f32 %v7834_v60, %v9928_v43  ;;  %v7836_v61 = vadd.f32 %v5040_v18, %v9852_v38  ;;  %v8268_v60 = vld [vmem:[%s10279_s7 + $0x10] sm:$0xff]  }
 0x3bb   : > { %v5285_v10 = vadd.f32 %v7835_v13, %v9928_v43  ;;  %v5332_v54 = vmax.f32 %v5284_v34, 0.0 }
 0x3bc   : > { %v5283_v48 = vadd.f32 %v7836_v61, %v9928_v43  ;;  %v5330_v20 = vmax.f32 %v5282_v41, 0.0 }
 0x3bd   : > { %v5333_v15 = vmax.f32 %v5285_v10, 0.0 }
 0x3be   : > { %v5331_v44 = vmax.f32 %v5283_v48, 0.0  ;;  %v7695_v25 = vpop.f32.mrb[40].mxu1 }
 0x3bf   : > { %v5379_v5 = vpack.c.bf16 %v5333_v15, %v5332_v54  ;;  %v7837_v33 = vadd.f32 %v7695_v25, %v9855_v40  ;;  %v5053_v63 = vpop.f32.mrb[41].mxu1 }
 0x3c0   : > { %v5378_v9 = vpack.c.bf16 %v5331_v44, %v5330_v20  ;;  %v7838_v22 = vadd.f32 %v5053_v63, %v9857_v35  ;;  %v7696_v56 = vpop.f32.mrb[42].mxu1  ;;  %v8269_v20 = vld [vmem:[%s10279_s7 + $0x18] sm:$0xff]  }
 0x3c1   : > { %v5288_v29 = vadd.f32 %v7837_v33, %v9928_v43  ;;  %v7839_v38 = vadd.f32 %v7696_v56, %v9862_v12  ;;  %v5056_v23 = vpop.f32.mrb[43].mxu1 }
 0x3c2   : > { %v5286_v59 = vadd.f32 %v7838_v22, %v9928_v43  ;;  %v7840_v3 = vadd.f32 %v5056_v23, %v9868_v62  ;;  %7741 = vmatprep.mubr.msk.bf16.mxu0 %vm334_vm1, %v5378_v9 }
 0x3c3   : > { %v5289_v40 = vadd.f32 %v7839_v38, %v9928_v43  ;;  %7742 = vmatmul.mubr.msk.bf16.vlgmr.msra.gmra.mrb[80].mxu0 %vm334_vm1, %v5379_v5  ;;  %v5336_v16 = vmax.f32 %v5288_v29, 0.0 }
 0x3c4   : > { %v5287_v35 = vadd.f32 %v7840_v3, %v9928_v43  ;;  %7790 = vmatpush3.bf16.msra.mxu0 %v8266_v28  ;;  %v5334_v26 = vmax.f32 %v5286_v59, 0.0 }
 0x3c5   : > { %v5337_v12 = vmax.f32 %v5289_v40, 0.0  ;;  %7791 = vmatprep.subr.bf16.mxu0 %v8267_v39 }
 0x3c6   : > { %v5335_v34 = vmax.f32 %v5287_v35, 0.0  ;;  %v7699_v13 = vpop.f32.mrb[44].mxu1 }
 0x3c7   : > { %v5381_v62 = vpack.c.bf16 %v5337_v12, %v5336_v16  ;;  %v7841_v18 = vadd.f32 %v7699_v13, %v9871_v2  ;;  %v5069_v41 = vpop.f32.mrb[45].mxu1 }
 0x3c8   : > { %v5380_v61 = vpack.c.bf16 %v5335_v34, %v5334_v26  ;;  %v7842_v10 = vadd.f32 %v5069_v41, %v9873_v4  ;;  %v7700_v48 = vpop.f32.mrb[46].mxu1  ;;  %7792 = vmatpush3.bf16.msra.mxu0 %v8267_v39 }
 0x3c9   : > { %v5292_v28 = vadd.f32 %v7841_v18, %v9928_v43  ;;  %v7843_v54 = vadd.f32 %v7700_v48, %v9878_v6  ;;  %v5072_v15 = vpop.f32.mrb[47].mxu1  ;;  %7793 = vmatprep.subr.bf16.mxu0 %v8268_v60 }
 0x3ca   : > { %v5290_v44 = vadd.f32 %v7842_v10, %v9928_v43  ;;  %v7844_v2 = vadd.f32 %v5072_v15, %v9884_v8  ;;  %7745 = vmatprep.mubr.msk.bf16.mxu0 %vm334_vm1, %v5380_v61 }
 0x3cb   : > { %v5293_v4 = vadd.f32 %v7843_v54, %v9928_v43  ;;  %7746 = vmatmul.mubr.msk.bf16.gmra.mrb[84].mxu0 %vm334_vm1, %v5381_v62  ;;  %v5340_v6 = vmax.f32 %v5292_v28, 0.0 }
 0x3cc   : > { %v5291_v25 = vadd.f32 %v7844_v2, %v9928_v43  ;;  %7794 = vmatpush3.bf16.msra.mxu0 %v8268_v60  ;;  %v5338_v33 = vmax.f32 %v5290_v44, 0.0 }
 0x3cd   : > { %v5341_v5 = vmax.f32 %v5293_v4, 0.0  ;;  %7795 = vmatprep.subr.bf16.mxu0 %v8269_v20 }
 0x3ce   : > { %v5339_v63 = vmax.f32 %v5291_v25, 0.0  ;;  %v7703_v9 = vpop.f32.mrb[0].mxu1 }
 0x3cf   : > { %v5383_v22 = vpack.c.bf16 %v5341_v5, %v5340_v6  ;;  %v7845_v56 = vadd.f32 %v7703_v9, %v9705_v19  ;;  %v5085_v29 = vpop.f32.mrb[1].mxu1  ;;  %v10556_v9 = vld [vmem:[#allocation6_spill] sm:$0xff] }
 0x3d0   : > { %v5382_v8 = vpack.c.bf16 %v5339_v63, %v5338_v33  ;;  %v7846_v38 = vadd.f32 %v5085_v29, %v9707_v30  ;;  %v7704_v23 = vpop.f32.mrb[2].mxu1  ;;  %7796 = vmatpush3.bf16.msra.mxu0 %v8269_v20 }
 0x3d1   : > { %v5296_v39 = vadd.f32 %v7845_v56, %v9928_v43  ;;  %v7847_v59 = vadd.f32 %v7704_v23, %v9709_v46  ;;  %v5088_v3 = vpop.f32.mrb[3].mxu1 }
 0x3d2   : > { %v5294_v40 = vadd.f32 %v7846_v38, %v9928_v43  ;;  %v7848_v35 = vadd.f32 %v5088_v3, %v9713_v14  ;;  %7749 = vmatprep.mubr.msk.bf16.mxu0 %vm334_vm1, %v5382_v8  ;;  %v10557_v8 = vld [vmem:[#allocation8_spill] sm:$0xff] }
 0x3d3   : > { %v5297_v16 = vadd.f32 %v7847_v59, %v9928_v43  ;;  %7750 = vmatmul.mubr.msk.bf16.gmra.mrb[88].mxu0 %vm334_vm1, %v5383_v22  ;;  %v5344_v30 = vmax.f32 %v5296_v39, 0.0 }
 0x3d4   : > { %v5295_v19 = vadd.f32 %v7848_v35, %v9928_v43  ;;  %v5342_v60 = vmax.f32 %v5294_v40, 0.0 }
 0x3d5   : > { %v5345_v12 = vmax.f32 %v5297_v16, 0.0  ;;  %v10558_v16 = vld [vmem:[#allocation9_spill] sm:$0xff] }
 0x3d6   : > { %v5343_v26 = vmax.f32 %v5295_v19, 0.0  ;;  %v7707_v34 = vpop.f32.mrb[4].mxu1 }
 0x3d7   : > { %v5385_v13 = vpack.c.bf16 %v5345_v12, %v5344_v30  ;;  %v7849_v46 = vadd.f32 %v7707_v34, %v9717_v58  ;;  %v5101_v62 = vpop.f32.mrb[5].mxu1 }
 0x3d8   : > { %v5384_v18 = vpack.c.bf16 %v5343_v26, %v5342_v60  ;;  %v7850_v14 = vadd.f32 %v5101_v62, %v9719_v37  ;;  %v7708_v41 = vpop.f32.mrb[6].mxu1  ;;  %v10559_v60 = vld [vmem:[#allocation13_spill] sm:$0xff] }
 0x3d9   : > { %v5300_v61 = vadd.f32 %v7849_v46, %v9928_v43  ;;  %v7851_v10 = vadd.f32 %v7708_v41, %v9721_v51  ;;  %v5104_v48 = vpop.f32.mrb[7].mxu1  ;;  %v10560_v46 = vld [vmem:[#allocation10_spill] sm:$0xff]  ;;  %v10561_v41 = vld [vmem:[#allocation11_spill] sm:$0xff] }
 0x3da   : > { %v5298_v28 = vadd.f32 %v7850_v14, %v9928_v43  ;;  %v7852_v54 = vadd.f32 %v5104_v48, %v9728_v17  ;;  %7753 = vmatprep.mubr.msk.bf16.mxu0 %vm334_vm1, %v5384_v18 }
 0x3db   : > { %v5301_v15 = vadd.f32 %v7851_v10, %v9928_v43  ;;  %7754 = vmatmul.mubr.msk.bf16.gmra.mrb[92].mxu0 %vm334_vm1, %v5385_v13  ;;  %v5348_v20 = vmax.f32 %v5300_v61, 0.0 }
 0x3dc   : > { %v5299_v58 = vadd.f32 %v7852_v54, %v9928_v43  ;;  %v5346_v44 = vmax.f32 %v5298_v28, 0.0 }
 0x3dd   : > { %v5349_v37 = vmax.f32 %v5301_v15, 0.0 }
 0x3de   : > { %v5347_v2 = vmax.f32 %v5299_v58, 0.0  ;;  %v7711_v4 = vpop.f32.mrb[8].mxu1 }
 0x3df   : > { %v5387_v25 = vpack.c.bf16 %v5349_v37, %v5348_v20  ;;  %v7853_v51 = vadd.f32 %v7711_v4, %v9732_v49  ;;  %v5117_v6 = vpop.f32.mrb[9].mxu1 }
 0x3e0   : > { %v5386_v5 = vpack.c.bf16 %v5347_v2, %v5346_v44  ;;  %v7854_v17 = vadd.f32 %v5117_v6, %v9734_v36  ;;  %v7712_v33 = vpop.f32.mrb[10].mxu1  ;;  %v10562_v44 = vld [vmem:[#allocation15_spill] sm:$0xff] }
 0x3e1   : > { %v5304_v63 = vadd.f32 %v7853_v51, %v9928_v43  ;;  %v7855_v22 = vadd.f32 %v7712_v33, %v10556_v9  ;;  %v5120_v56 = vpop.f32.mrb[11].mxu1  ;;  %v10563_v51 = vld [vmem:[#allocation17_spill] sm:$0xff]  ;;  %v10564_v33 = vld [vmem:[#allocation16_spill] sm:$0xff] }
 0x3e2   : > { %v5302_v29 = vadd.f32 %v7854_v17, %v9928_v43  ;;  %v7856_v38 = vadd.f32 %v5120_v56, %v10557_v8  ;;  %7757 = vmatprep.mubr.msk.bf16.mxu0 %vm334_vm1, %v5386_v5 }
 0x3e3   : > { %v5305_v23 = vadd.f32 %v7855_v22, %v9928_v43  ;;  %7758 = vmatmul.mubr.msk.bf16.gmra.mrb[96].mxu0 %vm334_vm1, %v5387_v25  ;;  %v5352_v39 = vmax.f32 %v5304_v63, 0.0 }
 0x3e4   : > { %v5303_v49 = vadd.f32 %v7856_v38, %v9928_v43  ;;  %v5350_v59 = vmax.f32 %v5302_v29, 0.0 }
 0x3e5   : > { %v5353_v36 = vmax.f32 %v5305_v23, 0.0 }
 0x3e6   : > { %v5351_v3 = vmax.f32 %v5303_v49, 0.0  ;;  %v7715_v40 = vpop.f32.mrb[12].mxu1 }
 0x3e7   : > { %v5389_v35 = vpack.c.bf16 %v5353_v36, %v5352_v39  ;;  %v7857_v19 = vadd.f32 %v7715_v40, %v10558_v16  ;;  %v5133_v30 = vpop.f32.mrb[13].mxu1 }
 0x3e8   : > { %v5388_v12 = vpack.c.bf16 %v5351_v3, %v5350_v59  ;;  %v7858_v26 = vadd.f32 %v5133_v30, %v10559_v60  ;;  %v7716_v34 = vpop.f32.mrb[14].mxu1 }
 0x3e9   : > { %v5308_v13 = vadd.f32 %v7857_v19, %v9928_v43  ;;  %v7859_v62 = vadd.f32 %v7716_v34, %v10560_v46  ;;  %v5136_v18 = vpop.f32.mrb[15].mxu1 }
 0x3ea   : > { %v5306_v14 = vadd.f32 %v7858_v26, %v9928_v43  ;;  %v7860_v61 = vadd.f32 %v5136_v18, %v10561_v41  ;;  %7761 = vmatprep.mubr.msk.bf16.mxu0 %vm334_vm1, %v5388_v12 }
 0x3eb   : > { %v5309_v10 = vadd.f32 %v7859_v62, %v9928_v43  ;;  %7762 = vmatmul.mubr.msk.bf16.gmra.mrb[100].mxu0 %vm334_vm1, %v5389_v35  ;;  %v5356_v28 = vmax.f32 %v5308_v13, 0.0 }
 0x3ec   : > { %v5307_v48 = vadd.f32 %v7860_v61, %v9928_v43  ;;  %v5354_v15 = vmax.f32 %v5306_v14, 0.0 }
 0x3ed   : > { %v5357_v54 = vmax.f32 %v5309_v10, 0.0 }
 0x3ee   : > { %v5355_v58 = vmax.f32 %v5307_v48, 0.0  ;;  %v7719_v20 = vpop.f32.mrb[16].mxu1 }
 0x3ef   : > { %v5391_v37 = vpack.c.bf16 %v5357_v54, %v5356_v28  ;;  %v7861_v2 = vadd.f32 %v7719_v20, %v10562_v44  ;;  %v5149_v4 = vpop.f32.mrb[17].mxu1 }
 0x3f0   : > { %v5390_v25 = vpack.c.bf16 %v5355_v58, %v5354_v15  ;;  %v7862_v6 = vadd.f32 %v5149_v4, %v10563_v51  ;;  %v7720_v5 = vpop.f32.mrb[18].mxu1 }
 0x3f1   : > { %v5312_v17 = vadd.f32 %v7861_v2, %v9928_v43  ;;  %v7863_v63 = vadd.f32 %v7720_v5, %v10564_v33  ;;  %v5152_v9 = vpop.f32.mrb[19].mxu1 }
 0x3f2   : > { %v5310_v22 = vadd.f32 %v7862_v6, %v9928_v43  ;;  %v7864_v56 = vadd.f32 %v5152_v9, %v9768_v31  ;;  %7765 = vmatprep.mubr.msk.bf16.mxu0 %vm334_vm1, %v5390_v25 }
 0x3f3   : > { %v5313_v29 = vadd.f32 %v7863_v63, %v9928_v43  ;;  %7766 = vmatmul.mubr.msk.bf16.gmra.mrb[104].mxu0 %vm334_vm1, %v5391_v37  ;;  %v5360_v38 = vmax.f32 %v5312_v17, 0.0 }
 0x3f4   : > { %v5311_v8 = vadd.f32 %v7864_v56, %v9928_v43  ;;  %v5358_v49 = vmax.f32 %v5310_v22, 0.0 }
 0x3f5   : > { %v5361_v23 = vmax.f32 %v5313_v29, 0.0 }
 0x3f6   : > { %v5359_v39 = vmax.f32 %v5311_v8, 0.0  ;;  %v7723_v36 = vpop.f32.mrb[20].mxu1 }
 0x3f7   : > { %v5393_v59 = vpack.c.bf16 %v5361_v23, %v5360_v38  ;;  %v7865_v3 = vadd.f32 %v7723_v36, %v9776_v45  ;;  %v5165_v40 = vpop.f32.mrb[21].mxu1 }
 0x3f8   : > { %v5392_v35 = vpack.c.bf16 %v5359_v39, %v5358_v49  ;;  %v7866_v31 = vadd.f32 %v5165_v40, %v9778_v1  ;;  %v7724_v16 = vpop.f32.mrb[22].mxu1 }
 0x3f9   : > { %v5316_v19 = vadd.f32 %v7865_v3, %v9928_v43  ;;  %v7867_v30 = vadd.f32 %v7724_v16, %v9782_v7  ;;  %v5168_v12 = vpop.f32.mrb[23].mxu1 }
 0x3fa   : > { %v5314_v60 = vadd.f32 %v7866_v31, %v9928_v43  ;;  %v7868_v26 = vadd.f32 %v5168_v12, %v9788_v53  ;;  %7769 = vmatprep.mubr.msk.bf16.mxu0 %vm334_vm1, %v5392_v35 }
 0x3fb   : > { %v5317_v34 = vadd.f32 %v7867_v30, %v9928_v43  ;;  %7770 = vmatmul.mubr.msk.bf16.gmra.mrb[108].mxu0 %vm334_vm1, %v5393_v59  ;;  %v5364_v13 = vmax.f32 %v5316_v19, 0.0 }
 0x3fc   : > { %v5315_v45 = vadd.f32 %v7868_v26, %v9928_v43  ;;  %v5362_v46 = vmax.f32 %v5314_v60, 0.0 }
 0x3fd   : > { %v5365_v1 = vmax.f32 %v5317_v34, 0.0  ;;  %v8271_v34 = vld [vmem:[%s8373_s20 + $0x8] sm:$0xff]  }
 0x3fe   : > { %v5363_v62 = vmax.f32 %v5315_v45, 0.0  ;;  %v7727_v18 = vpop.f32.mrb[24].mxu1  ;;  %v8273_v45 = vld [vmem:[%s8373_s20 + $0x18] sm:$0xff]  }
 0x3ff   : > { %v5395_v14 = vpack.c.bf16 %v5365_v1, %v5364_v13  ;;  %v7869_v7 = vadd.f32 %v7727_v18, %v9791_v24  ;;  %v5181_v41 = vpop.f32.mrb[25].mxu1  ;;  %v8274_v13 = vld [vmem:[%s8373_s20 + $0x20] sm:$0xff]   ;;  %v8275_v1 = vld [vmem:[%s8373_s20 + $0x28] sm:$0xff]  }
 0x400   : > { %v5394_v61 = vpack.c.bf16 %v5363_v62, %v5362_v46  ;;  %v7870_v53 = vadd.f32 %v5181_v41, %v9793_v11  ;;  %v7728_v10 = vpop.f32.mrb[26].mxu1  ;;  %v8276_v46 = vld [vmem:[%s8373_s20 + $0x30] sm:$0xff]   ;;  %v8277_v62 = vld [vmem:[%s8373_s20 + $0x38] sm:$0xff]   ;;  %v8278_v18 = vld [vmem:[%s8373_s20 + $0x40] sm:$0xff]  }
 0x401   : > { %v5320_v48 = vadd.f32 %v7869_v7, %v9928_v43  ;;  %v7871_v28 = vadd.f32 %v7728_v10, %v9798_v47  ;;  %v5184_v54 = vpop.f32.mrb[27].mxu1  ;;  %v8280_v7 = vld [vmem:[%s8373_s20 + $0x50] sm:$0xff]   ;;  %v8281_v41 = vld [vmem:[%s8373_s20 + $0x58] sm:$0xff]  }
 0x402   : > { %v5318_v15 = vadd.f32 %v7870_v53, %v9928_v43  ;;  %v7872_v58 = vadd.f32 %v5184_v54, %v9804_v57  ;;  %7773 = vmatprep.mubr.msk.bf16.mxu0 %vm334_vm1, %v5394_v61  ;;  %v8282_v61 = vld [vmem:[%s8373_s20 + $0x60] sm:$0xff]   ;;  %v8283_v53 = vld [vmem:[%s8373_s20 + $0x68] sm:$0xff]   ;;  %v8284_v10 = vld [vmem:[%s8373_s20 + $0x70] sm:$0xff]  }
 0x403   : > { %v5321_v20 = vadd.f32 %v7871_v28, %v9928_v43  ;;  %7774 = vmatmul.mubr.msk.bf16.gmra.mrb[112].mxu0 %vm334_vm1, %v5395_v14  ;;  %v5368_v37 = vmax.f32 %v5320_v48, 0.0  ;;  %v8279_v14 = vld [vmem:[%s8373_s20 + $0x48] sm:$0xff]   ;;  %v8285_v48 = vld [vmem:[%s8373_s20 + $0x78] sm:$0xff]  }
 0x404   : > { %v5319_v24 = vadd.f32 %v7872_v58, %v9928_v43  ;;  %v5366_v44 = vmax.f32 %v5318_v15, 0.0 }
 0x405   : > { %v5369_v11 = vmax.f32 %v5321_v20, 0.0 }
 0x406   : > { %v5367_v2 = vmax.f32 %v5319_v24, 0.0  ;;  %v7731_v4 = vpop.f32.mrb[28].mxu1 }
 0x407   : > { %v5397_v25 = vpack.c.bf16 %v5369_v11, %v5368_v37  ;;  %v7873_v47 = vadd.f32 %v7731_v4, %v9807_v27  ;;  %v5197_v51 = vpop.f32.mrb[29].mxu1 }
 0x408   : > { %v5396_v6 = vpack.c.bf16 %v5367_v2, %v5366_v44  ;;  %v7874_v57 = vadd.f32 %v5197_v51, %v9809_v55  ;;  %v7732_v5 = vpop.f32.mrb[30].mxu1 }
 0x409   : > { %v5324_v17 = vadd.f32 %v7873_v47, %v9928_v43  ;;  %v7875_v33 = vadd.f32 %v7732_v5, %v9814_v32  ;;  %v5200_v63 = vpop.f32.mrb[31].mxu1 }
 0x40a   : > { %v5322_v9 = vadd.f32 %v7874_v57, %v9928_v43  ;;  %v7876_v22 = vadd.f32 %v5200_v63, %v9820_v21  ;;  %7777 = vmatprep.mubr.msk.bf16.mxu0 %vm334_vm1, %v5396_v6 }
 0x40b   : > { %v5325_v56 = vadd.f32 %v7875_v33, %v9928_v43  ;;  %7778 = vmatmul.mubr.msk.bf16.gmra.mrb[116].mxu0 %vm334_vm1, %v5397_v25  ;;  %v5372_v29 = vmax.f32 %v5324_v17, 0.0 }
 0x40c   : > { %v5323_v27 = vadd.f32 %v7876_v22, %v9928_v43  ;;  %v5370_v8 = vmax.f32 %v5322_v9, 0.0 }
 0x40d   : > { %v5373_v55 = vmax.f32 %v5325_v56, 0.0 }
 0x40e   : > { %v5371_v38 = vmax.f32 %v5323_v27, 0.0  ;;  %v7735_v23 = vpop.f32.mrb[32].mxu1 }
 0x40f   : > { %v5399_v49 = vpack.c.bf16 %v5373_v55, %v5372_v29  ;;  %v7877_v32 = vadd.f32 %v7735_v23, %v9823_v42  ;;  %v5213_v39 = vpop.f32.mrb[33].mxu1 }
 0x410   : > { %v5398_v36 = vpack.c.bf16 %v5371_v38, %v5370_v8  ;;  %v7878_v21 = vadd.f32 %v5213_v39, %v9825_v50  ;;  %v7736_v59 = vpop.f32.mrb[34].mxu1 }
 0x411   : > { %v5328_v3 = vadd.f32 %v7877_v32, %v9928_v43  ;;  %v7879_v40 = vadd.f32 %v7736_v59, %v9830_v52  ;;  %v5216_v35 = vpop.f32.mrb[35].mxu1 }
 0x412   : > { %v5326_v31 = vadd.f32 %v7878_v21, %v9928_v43  ;;  %v7880_v16 = vadd.f32 %v5216_v35, %v9836_v0  ;;  %7781 = vmatprep.mubr.msk.bf16.mxu0 %vm334_vm1, %v5398_v36  ;;  %v8270_v0 = vld [vmem:[%s8373_s20] sm:$0xff]  }
 0x413   : > { %v5329_v42 = vadd.f32 %v7879_v40, %v9928_v43  ;;  %7782 = vmatmul.mubr.msk.bf16.gmra.mrb[120].mxu0 %vm334_vm1, %v5399_v49  ;;  %v5376_v19 = vmax.f32 %v5328_v3, 0.0 }
 0x414   : > { %v5327_v50 = vadd.f32 %v7880_v16, %v9928_v43  ;;  %v5374_v52 = vmax.f32 %v5326_v31, 0.0  ;;  %v8272_v43 = vld [vmem:[%s8373_s20 + $0x10] sm:$0xff]  }
 0x415   : > { %v5377_v30 = vmax.f32 %v5329_v42, 0.0 }
 0x416   : > { %v5375_v12 = vmax.f32 %v5327_v50, 0.0 }
 0x417   : > { %v5401_v60 = vpack.c.bf16 %v5377_v30, %v5376_v19 }
 0x418   : > { %v5400_v26 = vpack.c.bf16 %v5375_v12, %v5374_v52 }
 0x41a   : > { %7785 = vmatprep.mubr.msk.bf16.mxu0 %vm334_vm1, %v5400_v26 }
 0x41b   : > { %7786 = vmatmul.mubr.msk.bf16.gmra.mrb[124].mxu0 %vm334_vm1, %v5401_v60 }
 0x41c   : > { %7797 = vmatprep.mubr.msk.bf16.mxu0 %vm514_vm0, %v8270_v0  ;;  %v10148_v0 = vld [vmem:[%s10278_s6] ss:$0 sm:$0xff] }
 0x423   : > { %7798 = vmatmul.mubr.msk.bf16.vlgmr.msra.gmra.mrb[128].mxu0 %vm514_vm0, %v8271_v34  ;;  %v10153_v34 = vld [vmem:[%s10280_s8] ss:$0 sm:$0xff] }
 0x424   : > { %7801 = vmatprep.mubr.msk.bf16.mxu0 %vm514_vm0, %v8272_v43 }
 0x42b   : > { %7802 = vmatmul.mubr.msk.bf16.gmra.mrb[132].mxu0 %vm514_vm0, %v8273_v45 }
 0x42c   : > { %7805 = vmatprep.mubr.msk.bf16.mxu0 %vm514_vm0, %v8274_v13 }
 0x433   : > { %7806 = vmatmul.mubr.msk.bf16.gmra.mrb[136].mxu0 %vm514_vm0, %v8275_v1 }
 0x434   : > { %7809 = vmatprep.mubr.msk.bf16.mxu0 %vm514_vm0, %v8276_v46 }
 0x43b   : > { %7810 = vmatmul.mubr.msk.bf16.gmra.mrb[140].mxu0 %vm514_vm0, %v8277_v62 }
 0x43c   : > { %7813 = vmatprep.mubr.msk.bf16.mxu0 %vm514_vm0, %v8278_v18 }
 0x443   : > { %7814 = vmatmul.mubr.msk.bf16.gmra.mrb[144].mxu0 %vm514_vm0, %v8279_v14 }
 0x444   : > { %7817 = vmatprep.mubr.msk.bf16.mxu0 %vm514_vm0, %v8280_v7 }
 0x44b   : > { %7818 = vmatmul.mubr.msk.bf16.gmra.mrb[148].mxu0 %vm514_vm0, %v8281_v41 }
 0x44c   : > { %7821 = vmatprep.mubr.msk.bf16.mxu0 %vm514_vm0, %v8282_v61 }
 0x453   : > { %7822 = vmatmul.mubr.msk.bf16.gmra.mrb[152].mxu0 %vm514_vm0, %v8283_v53 }
 0x454   : > { %7825 = vmatprep.mubr.msk.bf16.mxu0 %vm514_vm0, %v8284_v10 }
 0x45b   : > { %7826 = vmatmul.mubr.msk.bf16.gmra.mrb[156].mxu0 %vm514_vm0, %v8285_v48 }
 0x496   : > { %v7743_v28 = vpop.f32.mrb[80].mxu0 }
 0x497   : > { %v5530_v54 = vpop.f32.mrb[81].mxu0 }
 0x498   : > { %v7744_v15 = vpop.f32.mrb[82].mxu0  ;;  %v5531_v46 = vadd.f32 %v10148_v0, %v5530_v54 }
 0x499   : > { %v5533_v58 = vpop.f32.mrb[83].mxu0  ;;  %v5541_v45 = vadd.f32 %v7744_v15, %v10148_v0 }
 0x49a   : > { %v5534_v53 = vadd.f32 %v10148_v0, %v5533_v58 }
 0x49e   : > { %v10091_v20 = vpop.f32.mrb[84].mxu0 }
 0x49f   : > { %v5545_v24 = vpop.f32.mrb[85].mxu0 }
 0x4a0   : > { %v10093_v37 = vpop.f32.mrb[86].mxu0  ;;  %v5546_v14 = vadd.f32 %v10148_v0, %v5545_v24 }
 0x4a1   : > { %v5548_v11 = vpop.f32.mrb[87].mxu0 }
 0x4a6   : > { %v10095_v44 = vpop.f32.mrb[88].mxu0 }
 0x4a7   : > { %v5560_v2 = vpop.f32.mrb[89].mxu0 }
 0x4a8   : > { %v7752_v4 = vpop.f32.mrb[90].mxu0 }
 0x4a9   : > { %v5562_v25 = vpop.f32.mrb[91].mxu0 }
 0x4aa   : > { %v5563_v58 = vadd.f32 %v10148_v0, %v5562_v25  ;;  %v5556_v25 = vadd.f32 %v10093_v37, %v10148_v0 }
 0x4ae   : > { %v7755_v47 = vpop.f32.mrb[92].mxu0 }
 0x4af   : > { %v10097_v51 = vpop.f32.mrb[93].mxu0 }
 0x4b0   : > { %v10099_v6 = vpop.f32.mrb[94].mxu0 }
 0x4b1   : > { %v10101_v57 = vpop.f32.mrb[95].mxu0 }
 0x4b6   : > { %v10103_v5 = vpop.f32.mrb[96].mxu0 }
 0x4b7   : > { %v10105_v17 = vpop.f32.mrb[97].mxu0 }
 0x4b8   : > { %v10107_v33 = vpop.f32.mrb[98].mxu0 }
 0x4b9   : > { %v5592_v63 = vpop.f32.mrb[99].mxu0 }
 0x4be   : > { %v10109_v9 = vpop.f32.mrb[100].mxu0 }
 0x4bf   : > { %v5604_v22 = vpop.f32.mrb[101].mxu0 }
 0x4c0   : > { %v7764_v56 = vpop.f32.mrb[102].mxu0 }
 0x4c1   : > { %v10111_v27 = vpop.f32.mrb[103].mxu0  ;;  %v5553_v56 = vadd.f32 %v10091_v20, %v10148_v0 }
 0x4c6   : > { %v7767_v29 = vpop.f32.mrb[104].mxu0 }
 0x4c7   : > { %v10113_v55 = vpop.f32.mrb[105].mxu0 }
 0x4c8   : > { %v10115_v8 = vpop.f32.mrb[106].mxu0 }
 0x4c9   : > { %v10117_v38 = vpop.f32.mrb[107].mxu0 }
 0x4ce   : > { %v10119_v23 = vpop.f32.mrb[108].mxu0 }
 0x4cf   : > { %v10121_v49 = vpop.f32.mrb[109].mxu0 }
 0x4d0   : > { %v10123_v32 = vpop.f32.mrb[110].mxu0 }
 0x4d1   : > { %v5636_v39 = vpop.f32.mrb[111].mxu0 }
 0x4d6   : > { %v10125_v36 = vpop.f32.mrb[112].mxu0 }
 0x4d7   : > { %v5648_v21 = vpop.f32.mrb[113].mxu0 }
 0x4d8   : > { %v7776_v59 = vpop.f32.mrb[114].mxu0 }
 0x4d9   : > { %v10127_v3 = vpop.f32.mrb[115].mxu0  ;;  %v5568_v59 = vadd.f32 %v10095_v44, %v10148_v0 }
 0x4de   : > { %v7779_v40 = vpop.f32.mrb[116].mxu0 }
 0x4df   : > { %v10129_v35 = vpop.f32.mrb[117].mxu0 }
 0x4e0   : > { %v10131_v31 = vpop.f32.mrb[118].mxu0 }
 0x4e1   : > { %v10133_v16 = vpop.f32.mrb[119].mxu0 }
 0x4e6   : > { %v10135_v42 = vpop.f32.mrb[120].mxu0 }
 0x4e7   : > { %v10137_v50 = vpop.f32.mrb[121].mxu0 }
 0x4e8   : > { %v10139_v19 = vpop.f32.mrb[122].mxu0 }
 0x4e9   : > { %v5680_v30 = vpop.f32.mrb[123].mxu0 }
 0x4ee   : > { %v10141_v52 = vpop.f32.mrb[124].mxu0 }
 0x4ef   : > { %v5692_v12 = vpop.f32.mrb[125].mxu0 }
 0x4f0   : > { %v7788_v60 = vpop.f32.mrb[126].mxu0 }
 0x4f1   : > { %v10143_v26 = vpop.f32.mrb[127].mxu0 }
 0x4f6   : > { %v7799_v43 = vpop.f32.mrb[128].mxu0 }
 0x4f7   : > { %v5947_v13 = vadd.f32 %v7799_v43, %v10153_v34  ;;  %v5938_v1 = vpop.f32.mrb[129].mxu0 }
 0x4f8   : > { %v5939_v62 = vadd.f32 %v10153_v34, %v5938_v1  ;;  %v7800_v18 = vpop.f32.mrb[130].mxu0 }
 0x4f9   : > { %v6079_v7 = vadd.f32 %v5947_v13, %v5541_v45  ;;  %v5950_v41 = vadd.f32 %v7800_v18, %v10153_v34  ;;  %v5941_v61 = vpop.f32.mrb[131].mxu0  ;;  %v5585_v18 = vadd.f32 %v10099_v6, %v10148_v0  ;;  %v5578_v6 = vadd.f32 %v10148_v0, %v10101_v57 }
 0x4fa   : > { %v6065_v10 = vadd.f32 %v5939_v62, %v5531_v46  ;;  %v5942_v48 = vadd.f32 %v10153_v34, %v5941_v61 }
 0x4fb   : > { %v6080_v28 = vadd.f32 %v5950_v41, %v5546_v14  ;;  %v6081_v11 = vmax.f32 %v6079_v7, 0.0  ;;  %v5575_v41 = vadd.f32 %v10148_v0, %v10097_v51 }
 0x4fc   : > { %v6066_v15 = vadd.f32 %v5942_v48, %v5534_v53  ;;  %v6067_v4 = vmax.f32 %v6065_v10, 0.0  ;;  %v5590_v48 = vadd.f32 %v10148_v0, %v10105_v17 }
 0x4fd   : > { %v6082_v2 = vmax.f32 %v6080_v28, 0.0 }
 0x4fe   : > { %v6068_v54 = vmax.f32 %v6066_v15, 0.0  ;;  %v7803_v24 = vpop.f32.mrb[132].mxu0 }
 0x4ff   : > { %v6842_v47 = vpack.c.bf16 %v6082_v2, %v6081_v11  ;;  %v5963_v63 = vadd.f32 %v7803_v24, %v10153_v34  ;;  %v5954_v22 = vpop.f32.mrb[133].mxu0 }
 0x500   : > { %v6837_v29 = vpack.c.bf16 %v6068_v54, %v6067_v4  ;;  %v5955_v39 = vadd.f32 %v10153_v34, %v5954_v22  ;;  %v7804_v21 = vpop.f32.mrb[134].mxu0  ;;  %v5607_v22 = vadd.f32 %v10148_v0, %v10111_v27  ;;  %v5600_v27 = vadd.f32 %v10107_v33, %v10148_v0 }
 0x501   : > { %6914 = vst [vmem:[%s10168_s14 + $0x8] sm:$0xff] %v6842_v47   ;;  %v6109_v40 = vadd.f32 %v5963_v63, %v5563_v58  ;;  %v5966_v30 = vadd.f32 %v7804_v21, %v10153_v34  ;;  %v5957_v12 = vpop.f32.mrb[135].mxu0 }
 0x502   : > { %6838 = vst [vmem:[%s10168_s14] sm:$0xff] %v6837_v29   ;;  %v6094_v60 = vadd.f32 %v5955_v39, %v5553_v56  ;;  %v5958_v43 = vadd.f32 %v10153_v34, %v5957_v12  ;;  %v5597_v39 = vadd.f32 %v10103_v5, %v10148_v0 }
 0x503   : > { %v6110_v20 = vadd.f32 %v5966_v30, %v5568_v59  ;;  %v6111_v13 = vmax.f32 %v6109_v40, 0.0  ;;  %v5612_v30 = vadd.f32 %v10109_v9, %v10148_v0 }
 0x504   : > { %v6095_v45 = vadd.f32 %v5958_v43, %v5556_v25  ;;  %v6096_v46 = vmax.f32 %v6094_v60, 0.0 }
 0x505   : > { %v6112_v1 = vmax.f32 %v6110_v20, 0.0 }
 0x506   : > { %v6097_v62 = vmax.f32 %v6095_v45, 0.0  ;;  %v7807_v44 = vpop.f32.mrb[136].mxu0 }
 0x507   : > { %v6852_v14 = vpack.c.bf16 %v6112_v1, %v6111_v13  ;;  %v5979_v7 = vadd.f32 %v7807_v44, %v10153_v34  ;;  %v5970_v37 = vpop.f32.mrb[137].mxu0  ;;  %v5629_v44 = vadd.f32 %v10115_v8, %v10148_v0  ;;  %v5622_v8 = vadd.f32 %v10148_v0, %v10117_v38 }
 0x508   : > { %v6847_v61 = vpack.c.bf16 %v6097_v62, %v6096_v46  ;;  %v5971_v53 = vadd.f32 %v10153_v34, %v5970_v37  ;;  %v7808_v10 = vpop.f32.mrb[138].mxu0 }
 0x509   : > { %6916 = vst [vmem:[%s10168_s14 + $0x18] sm:$0xff] %v6852_v14   ;;  %v6139_v28 = vadd.f32 %v5979_v7, %v5585_v18  ;;  %v5982_v15 = vadd.f32 %v7808_v10, %v10153_v34  ;;  %v5973_v11 = vpop.f32.mrb[139].mxu0  ;;  %v5619_v7 = vadd.f32 %v10148_v0, %v10113_v55 }
 0x50a   : > { %6915 = vst [vmem:[%s10168_s14 + $0x10] sm:$0xff] %v6847_v61   ;;  %v6124_v2 = vadd.f32 %v5971_v53, %v5575_v41  ;;  %v5974_v4 = vadd.f32 %v10153_v34, %v5973_v11  ;;  %v5634_v53 = vadd.f32 %v10148_v0, %v10121_v49 }
 0x50b   : > { %v6140_v51 = vadd.f32 %v5982_v15, %v5590_v48  ;;  %v6141_v24 = vmax.f32 %v6139_v28, 0.0 }
 0x50c   : > { %v6125_v54 = vadd.f32 %v5974_v4, %v5578_v6  ;;  %v6126_v47 = vmax.f32 %v6124_v2, 0.0 }
 0x50d   : > { %v6142_v58 = vmax.f32 %v6140_v51, 0.0 }
 0x50e   : > { %v6127_v63 = vmax.f32 %v6125_v54, 0.0  ;;  %v7811_v17 = vpop.f32.mrb[140].mxu0 }
 0x50f   : > { %v6862_v56 = vpack.c.bf16 %v6142_v58, %v6141_v24  ;;  %v5995_v29 = vadd.f32 %v7811_v17, %v10153_v34  ;;  %v5986_v57 = vpop.f32.mrb[141].mxu0  ;;  %v5651_v24 = vadd.f32 %v10148_v0, %v10127_v3  ;;  %v5644_v3 = vadd.f32 %v10123_v32, %v10148_v0 }
 0x510   : > { %v6857_v21 = vpack.c.bf16 %v6127_v63, %v6126_v47  ;;  %v5987_v59 = vadd.f32 %v10153_v34, %v5986_v57  ;;  %v7812_v40 = vpop.f32.mrb[142].mxu0  ;;  %v5641_v63 = vadd.f32 %v10119_v23, %v10148_v0 }
 0x511   : > { %6918 = vst [vmem:[%s10168_s14 + $0x28] sm:$0xff] %v6862_v56   ;;  %v6169_v12 = vadd.f32 %v5995_v29, %v5607_v22  ;;  %v5998_v25 = vadd.f32 %v7812_v40, %v10153_v34  ;;  %v5989_v60 = vpop.f32.mrb[143].mxu0  ;;  %v5656_v29 = vadd.f32 %v10125_v36, %v10148_v0 }
 0x512   : > { %6917 = vst [vmem:[%s10168_s14 + $0x20] sm:$0xff] %v6857_v21   ;;  %v6154_v43 = vadd.f32 %v5987_v59, %v5597_v39  ;;  %v5990_v20 = vadd.f32 %v10153_v34, %v5989_v60 }
 0x513   : > { %v6170_v5 = vadd.f32 %v5998_v25, %v5612_v30  ;;  %v6171_v13 = vmax.f32 %v6169_v12, 0.0 }
 0x514   : > { %v6155_v45 = vadd.f32 %v5990_v20, %v5600_v27  ;;  %v6156_v46 = vmax.f32 %v6154_v43, 0.0  ;;  %v5673_v43 = vadd.f32 %v10131_v31, %v10148_v0  ;;  %v5666_v31 = vadd.f32 %v10148_v0, %v10133_v16 }
 0x515   : > { %v6172_v1 = vmax.f32 %v6170_v5, 0.0 }
 0x516   : > { %v6157_v62 = vmax.f32 %v6155_v45, 0.0  ;;  %v7815_v9 = vpop.f32.mrb[144].mxu0  ;;  %v5663_v45 = vadd.f32 %v10148_v0, %v10129_v35 }
 0x517   : > { %v6872_v18 = vpack.c.bf16 %v6172_v1, %v6171_v13  ;;  %v6011_v14 = vadd.f32 %v7815_v9, %v10153_v34  ;;  %v6002_v33 = vpop.f32.mrb[145].mxu0 }
 0x518   : > { %v6867_v37 = vpack.c.bf16 %v6157_v62, %v6156_v46  ;;  %v6003_v41 = vadd.f32 %v10153_v34, %v6002_v33  ;;  %v7816_v61 = vpop.f32.mrb[146].mxu0  ;;  %v5678_v62 = vadd.f32 %v10148_v0, %v10137_v50 }
 0x519   : > { %6920 = vst [vmem:[%s10168_s14 + $0x38] sm:$0xff] %v6872_v18   ;;  %v6199_v10 = vadd.f32 %v6011_v14, %v5629_v44  ;;  %v6014_v48 = vadd.f32 %v7816_v61, %v10153_v34  ;;  %v6005_v28 = vpop.f32.mrb[147].mxu0 }
 0x51a   : > { %6919 = vst [vmem:[%s10168_s14 + $0x30] sm:$0xff] %v6867_v37   ;;  %v6184_v15 = vadd.f32 %v6003_v41, %v5619_v7  ;;  %v6006_v11 = vadd.f32 %v10153_v34, %v6005_v28 }
 0x51b   : > { %v6200_v55 = vadd.f32 %v6014_v48, %v5634_v53  ;;  %v6201_v2 = vmax.f32 %v6199_v10, 0.0  ;;  %v5695_v10 = vadd.f32 %v10148_v0, %v10143_v26 }
 0x51c   : > { %v6185_v6 = vadd.f32 %v6006_v11, %v5622_v8  ;;  %v6186_v51 = vmax.f32 %v6184_v15, 0.0  ;;  %v5685_v8 = vadd.f32 %v10135_v42, %v10148_v0 }
 0x51d   : > { %v6202_v4 = vmax.f32 %v6200_v55, 0.0 }
 0x51e   : > { %v6187_v54 = vmax.f32 %v6185_v6, 0.0  ;;  %v7819_v49 = vpop.f32.mrb[148].mxu0  ;;  %v5700_v6 = vadd.f32 %v10141_v52, %v10148_v0 }
 0x51f   : > { %v6882_v58 = vpack.c.bf16 %v6202_v4, %v6201_v2  ;;  %v6027_v47 = vadd.f32 %v7819_v49, %v10153_v34  ;;  %v6018_v38 = vpop.f32.mrb[149].mxu0 }
 0x520   : > { %v6877_v17 = vpack.c.bf16 %v6187_v54, %v6186_v51  ;;  %v6019_v22 = vadd.f32 %v10153_v34, %v6018_v38  ;;  %v7820_v56 = vpop.f32.mrb[150].mxu0  ;;  %v5688_v51 = vadd.f32 %v10139_v19, %v10148_v0 }
 0x521   : > { %6922 = vst [vmem:[%s10168_s14 + $0x48] sm:$0xff] %v6882_v58   ;;  %v6229_v57 = vadd.f32 %v6027_v47, %v5651_v24  ;;  %v6030_v39 = vadd.f32 %v7820_v56, %v10153_v34  ;;  %v6021_v21 = vpop.f32.mrb[151].mxu0 }
 0x522   : > { %6921 = vst [vmem:[%s10168_s14 + $0x40] sm:$0xff] %v6877_v17   ;;  %v6214_v59 = vadd.f32 %v6019_v22, %v5641_v63  ;;  %v6022_v40 = vadd.f32 %v10153_v34, %v6021_v21 }
 0x523   : > { %v6230_v23 = vadd.f32 %v6030_v39, %v5656_v29  ;;  %v6231_v12 = vmax.f32 %v6229_v57, 0.0 }
 0x524   : > { %v6215_v30 = vadd.f32 %v6022_v40, %v5644_v3  ;;  %v6216_v60 = vmax.f32 %v6214_v59, 0.0 }
 0x525   : > { %v6232_v25 = vmax.f32 %v6230_v23, 0.0 }
 0x526   : > { %v6217_v27 = vmax.f32 %v6215_v30, 0.0  ;;  %v7823_v36 = vpop.f32.mrb[152].mxu0 }
 0x527   : > { %v6892_v20 = vpack.c.bf16 %v6232_v25, %v6231_v12  ;;  %v6043_v5 = vadd.f32 %v7823_v36, %v10153_v34  ;;  %v6034_v32 = vpop.f32.mrb[153].mxu0 }
 0x528   : > { %v6887_v13 = vpack.c.bf16 %v6217_v27, %v6216_v60  ;;  %v6035_v1 = vadd.f32 %v10153_v34, %v6034_v32  ;;  %v7824_v46 = vpop.f32.mrb[154].mxu0 }
 0x529   : > { %6924 = vst [vmem:[%s10168_s14 + $0x58] sm:$0xff] %v6892_v20   ;;  %v6259_v9 = vadd.f32 %v6043_v5, %v5673_v43  ;;  %v6046_v44 = vadd.f32 %v7824_v46, %v10153_v34  ;;  %v6037_v18 = vpop.f32.mrb[155].mxu0 }
 0x52a   : > { %6923 = vst [vmem:[%s10168_s14 + $0x50] sm:$0xff] %v6887_v13   ;;  %v6244_v14 = vadd.f32 %v6035_v1, %v5663_v45  ;;  %v6038_v33 = vadd.f32 %v10153_v34, %v6037_v18 }
 0x52b   : > { %v6260_v35 = vadd.f32 %v6046_v44, %v5678_v62  ;;  %v6261_v37 = vmax.f32 %v6259_v9, 0.0 }
 0x52c   : > { %v6245_v7 = vadd.f32 %v6038_v33, %v5666_v31  ;;  %v6246_v61 = vmax.f32 %v6244_v14, 0.0 }
 0x52d   : > { %v6262_v41 = vmax.f32 %v6260_v35, 0.0 }
 0x52e   : > { %v6247_v53 = vmax.f32 %v6245_v7, 0.0  ;;  %v7827_v50 = vpop.f32.mrb[156].mxu0 }
 0x52f   : > { %v6902_v48 = vpack.c.bf16 %v6262_v41, %v6261_v37  ;;  %v6059_v28 = vadd.f32 %v7827_v50, %v10153_v34  ;;  %v6050_v16 = vpop.f32.mrb[157].mxu0 }
 0x530   : > { %v6897_v15 = vpack.c.bf16 %v6247_v53, %v6246_v61  ;;  %v6051_v11 = vadd.f32 %v10153_v34, %v6050_v16  ;;  %v7828_v55 = vpop.f32.mrb[158].mxu0 }
 0x531   : > { %6926 = vst [vmem:[%s10168_s14 + $0x68] sm:$0xff] %v6902_v48   ;;  %v6289_v2 = vadd.f32 %v6059_v28, %v5695_v10  ;;  %v6062_v26 = vadd.f32 %v7828_v55, %v10153_v34  ;;  %v6053_v4 = vpop.f32.mrb[159].mxu0 }
 0x532   : > { %6925 = vst [vmem:[%s10168_s14 + $0x60] sm:$0xff] %v6897_v15   ;;  %v6274_v54 = vadd.f32 %v6051_v11, %v5685_v8  ;;  %v6054_v42 = vadd.f32 %v10153_v34, %v6053_v4 }
 0x533   : > { %v6290_v49 = vadd.f32 %v6062_v26, %v5700_v6  ;;  %v6291_v58 = vmax.f32 %v6289_v2, 0.0 }
 0x534   : > { %v6275_v24 = vadd.f32 %v6054_v42, %v5688_v51  ;;  %v6276_v38 = vmax.f32 %v6274_v54, 0.0 }
 0x535   : > { %v6292_v47 = vmax.f32 %v6290_v49, 0.0 }
 0x536   : > { %v6277_v52 = vmax.f32 %v6275_v24, 0.0 }
 0x537   : > { %v6912_v63 = vpack.c.bf16 %v6292_v47, %v6291_v58 }
 0x538   : > { %v6907_v17 = vpack.c.bf16 %v6277_v52, %v6276_v38 }
 0x539   : > { %6928 = vst [vmem:[%s10168_s14 + $0x78] sm:$0xff] %v6912_v63  }
 0x53a   : > { %6927 = vst [vmem:[%s10168_s14 + $0x70] sm:$0xff] %v6907_v17  }
 0x53b PF: > { %s19_s30 = sadd.s32 1, %s8295_s30  }
 0x53c   : > { %p16_p4 = scmp.ge.s32.totalorder %s19_s30, 4  }
 0x53e   :  { %18 = sbr.rel (!%p16_p4) target bundleno = 1 (0x1), region = 109 }

</bundles_post_ra>
